<compile_context>
chip_gen: v5e
topology: v5e:2x2
jax: 0.10.0
libtpu: 0.0.40
codegen_flags: <defaults>
</compile_context>

<pallas_src>
import numpy as np
import jax
import jax.numpy as jnp
from jax.experimental import pallas as pl
from jax.experimental.pallas import tpu as pltpu


def _elu(y):
    # ELU(alpha=1): y if y > 0 else exp(y) - 1  (min() keeps exp() in range)
    return jnp.where(y > 0, y, jnp.exp(jnp.minimum(y, 0.0)) - 1.0)


def _conv_out(k, stride, pad, h_in, w_in):
    return ((h_in + 2 * pad - k) // stride + 1,
            (w_in + 2 * pad - k) // stride + 1)


# --------------------------------------------------------------------------
# The single fused Pallas kernel (one batch block per grid step)
# --------------------------------------------------------------------------
def _build_kernel(Bb, Ci, Co, H, W):
    P = H * W
    h2, w2 = _conv_out(5, 2, 2, H, W)
    p2 = h2 * w2
    h3, w3 = _conv_out(3, 2, 1, h2, w2)
    p3 = h3 * w3
    R_o = Bb * Co

    def conv_bn_elu(xin_b, w_ref, g_ref, xcol_ref, sh_ref, col):
        # One conv layer with the k*k taps collapsed into the MXU contraction:
        #  1) gather all taps at once:  Xg = Xin @ Gbig          (one matmul)
        #  2) kk aligned (Bb*Ci)-row VMEM stores build the im2col scratch
        #  3) single weight matmul, K = kk*Bb*Ci (BN scale pre-folded into W)
        xg = jnp.dot(xin_b, g_ref[...],
                     preferred_element_type=jnp.float32)
        xg = xg.astype(jnp.bfloat16)          # exact: 0/1 selection of bf16
        rows, p_out = xcol_ref.shape
        r = xin_b.shape[0]                    # Bb*Ci  (= 8 -> sublane aligned)
        kk = rows // r
        for t in range(kk):
            xcol_ref[t * r:(t + 1) * r, :] = xg[:, t * p_out:(t + 1) * p_out]
        y = jnp.dot(w_ref[...], xcol_ref[...],
                    preferred_element_type=jnp.float32)
        m_rows = w_ref.shape[0]
        return _elu(y + sh_ref[0:m_rows, col:col + 1])   # folded-BN shift+ELU

    def kernel(x_ref, w11_ref, sh_ref,
               w21_ref, g21_ref, w31_ref, g31_ref,
               w22_ref, g22_ref, w32_ref, g32_ref,
               ub_ref, o_ref, xc21, xc31, xc22, xc32):
        x = x_ref[...]                        # (Bb*Ci, P) f32, channels-major
        xb = x.astype(jnp.bfloat16)

        # ---- conv1 (1x1, BN folded) and glob (1x1) share ONE matmul:
        # rows [0:R_o] of w11 = conv1 weights, rows [R_o:2*R_o] = glob weights
        cboth = jnp.dot(w11_ref[...], xb,
                        preferred_element_type=jnp.float32)      # (2*R_o, P)
        c1 = _elu(cboth[0:R_o, :] + sh_ref[0:R_o, 4:5])          # (R_o, P)
        # AdaptiveAvgPool2d(1) + 1x1 conv == mean over pixels of the 1x1 conv
        # (linearity); x16 align_corners upsample of a 1x1 map == broadcast.
        g = jnp.mean(cboth[R_o:2 * R_o, :], axis=1, keepdims=True)   # (R_o,1)

        # ---- pyramid (all intermediates stay in VMEM / vregs)
        d21 = conv_bn_elu(xb, w21_ref, g21_ref, xc21, sh_ref, 0)     # (BbCi,p2)
        d21b = d21.astype(jnp.bfloat16)
        d31 = conv_bn_elu(d21b, w31_ref, g31_ref, xc31, sh_ref, 1)   # (BbCi,p3)
        d22 = conv_bn_elu(d21b, w22_ref, g22_ref, xc22, sh_ref, 2)   # (BbCo,p2)
        d32 = conv_bn_elu(d31.astype(jnp.bfloat16),
                          w32_ref, g32_ref, xc32, sh_ref, 3)         # (BbCo,p3)

        # ---- bilinear x2 upsamples (merged constant, lane-aligned slices)
        u816 = ub_ref[:, 0:P]                  # (p2, P)
        u48 = ub_ref[0:p3, P:P + p2]           # (p3, p2)
        d2 = d22 + jnp.dot(d32.astype(jnp.bfloat16), u48,
                           preferred_element_type=jnp.float32)       # (BbCo,p2)
        d2up = jnp.dot(d2.astype(jnp.bfloat16), u816,
                       preferred_element_type=jnp.float32)           # (BbCo,P)

        o_ref[...] = (c1 * d2up + g).astype(o_ref.dtype)  # lane-dense store

    return kernel


# --------------------------------------------------------------------------
# Wrapper: one pallas_call for the whole module
# --------------------------------------------------------------------------
def fpa_v2_forward(x_nchw, packed, *, out_dtype=jnp.float32):
    B, Ci, H, W = x_nchw.shape
    Bb, Co = packed["Bb"], packed["Co"]
    assert packed["Ci"] == Ci and packed["H"] == H and packed["W"] == W
    assert B % Bb == 0, "batch must be a multiple of the packed batch block"
    P = H * W
    nblk = B // Bb
    h2, w2 = _conv_out(5, 2, 2, H, W)
    p2 = h2 * w2
    h3, w3 = _conv_out(3, 2, 1, h2, w2)
    p3 = h3 * w3

    # NCHW flattened to (B*Ci, P) is already channels-major per example.
    x_flat = x_nchw.reshape(B * Ci, P).astype(jnp.float32)

    names = ("w11", "sh", "w21", "g21", "w31", "g31",
             "w22", "g22", "w32", "g32", "ub")
    consts = [packed[n] for n in names]

    in_specs = [pl.BlockSpec((Bb * Ci, P), lambda i: (i, 0))]
    for c in consts:                 # grid-invariant, full-array blocks
        in_specs.append(pl.BlockSpec(c.shape, lambda i: (0, 0)))

    scratch = [pltpu.VMEM((25 * Bb * Ci, p2), jnp.bfloat16),   # im2col down2_1
               pltpu.VMEM((9 * Bb * Ci, p3), jnp.bfloat16),    # im2col down3_1
               pltpu.VMEM((25 * Bb * Ci, p2), jnp.bfloat16),   # im2col down2_2
               pltpu.VMEM((9 * Bb * Ci, p3), jnp.bfloat16)]    # im2col down3_2

    kernel = _build_kernel(Bb, Ci, Co, H, W)
    out = pl.pallas_call(
        kernel,
        out_shape=jax.ShapeDtypeStruct((B * Co, P), out_dtype),
        grid_spec=pltpu.PrefetchScalarGridSpec(
            num_scalar_prefetch=0,
            grid=(nblk,),
            in_specs=in_specs,
            out_specs=pl.BlockSpec((Bb * Co, P), lambda i: (i, 0)),
            scratch_shapes=scratch),
        compiler_params=pltpu.CompilerParams(
            dimension_semantics=("parallel",),       # shards blocks across TCs
            vmem_limit_bytes=32 * 1024 * 1024),
    )(x_flat, *consts)
    return out.reshape(B, Co, H, W)


# --------------------------------------------------------------------------
# Host-side constants: bilinear (align_corners) matrices, one-shot gather
# matrices, tap/batch-folded conv weights (BN scale folded in).
# --------------------------------------------------------------------------
def _bilinear_matrix_1d(n_in, n_out):
    a = np.zeros((n_out, n_in), dtype=np.float32)
    if n_in == 1:
        a[:, 0] = 1.0
        return a
    for i in range(n_out):
        pos = i * (n_in - 1) / (n_out - 1)
        lo = int(np.floor(pos))
        hi = min(lo + 1, n_in - 1)
        frac = pos - lo
        a[i, lo] += 1.0 - frac
        a[i, hi] += frac
    return a


def _up_matrix_np(h_in, w_in, h_out, w_out):
    m = np.kron(_bilinear_matrix_1d(h_in, h_out),
                _bilinear_matrix_1d(w_in, w_out))     # (p_out, p_in) row-major
    return np.ascontiguousarray(m.T, dtype=np.float32)  # (p_in, p_out)


def _blockdiag_1x1(w_oc, Bb):
    co, ci = w_oc.shape
    out = np.zeros((Bb * co, Bb * ci), np.float32)
    for b in range(Bb):
        out[b * co:(b + 1) * co, b * ci:(b + 1) * ci] = w_oc
    return out


def _im2col_consts(w_oihw, scale, k, stride, pad, h_in, w_in, Bb):
    """Gbig (P_in, kk*P_out) one-shot gather + Wcol (Bb*Co, kk*Bb*Ci) weights."""
    w = np.asarray(w_oihw, np.float32)               # (Co, Ci, k, k)
    s = np.asarray(scale, np.float32).reshape(-1)    # BN gamma/sqrt(var+eps)
    co, ci = w.shape[0], w.shape[1]
    h_out, w_out = _conv_out(k, stride, pad, h_in, w_in)
    p_in, p_out = h_in * w_in, h_out * w_out
    kk = k * k
    # Gbig[q, t*p_out + p] = 1 iff input pixel q feeds output pixel p at tap t
    gbig = np.zeros((p_in, kk * p_out), np.float32)
    for kh in range(k):
        for kw in range(k):
            t = kh * k + kw
            for oy in range(h_out):
                iy = oy * stride + kh - pad
                if iy < 0 or iy >= h_in:
                    continue
                for ox in range(w_out):
                    ix = ox * stride + kw - pad
                    if ix < 0 or ix >= w_in:
                        continue
                    gbig[iy * w_in + ix, t * p_out + oy * w_out + ox] = 1.0
    # Wcol[b*co + o, t*Bb*ci + b*ci + c] = s[o] * W[o, c, kh, kw]
    # (batch block-diagonal so the whole batch block is one matmul; fine for
    #  small Bb -- the zero blocks grow as Bb^2.)
    ws = s.reshape(co, 1, 1, 1) * w
    wcol = np.zeros((Bb * co, kk * Bb * ci), np.float32)
    for b in range(Bb):
        for kh in range(k):
            for kw in range(k):
                t = kh * k + kw
                wcol[b * co:(b + 1) * co,
                     t * Bb * ci + b * ci:t * Bb * ci + (b + 1) * ci] = \
                    ws[:, :, kh, kw]
    return jnp.asarray(wcol, jnp.bfloat16), jnp.asarray(gbig, jnp.bfloat16)


def pack_params(raw, Ci, Co, H, W, Bb):
    P = H * W
    h2, w2 = _conv_out(5, 2, 2, H, W)
    p2 = h2 * w2
    h3, w3 = _conv_out(3, 2, 1, h2, w2)
    p3 = h3 * w3

    w21, g21 = _im2col_consts(raw["w21"], raw["s21"], 5, 2, 2, H, W, Bb)
    w31, g31 = _im2col_consts(raw["w31"], raw["s31"], 3, 2, 1, h2, w2, Bb)
    w22, g22 = _im2col_consts(raw["w22"], raw["s22"], 5, 1, 2, h2, w2, Bb)
    w32, g32 = _im2col_consts(raw["w32"], raw["s32"], 3, 1, 1, h3, w3, Bb)

    # merged 1x1 weights: rows [0:Bb*Co] = conv1 (BN scale folded), rest = glob
    wc1_bd = _blockdiag_1x1(
        np.asarray(raw["sc1"]).reshape(Co, 1) *
        np.asarray(raw["wc1"])[:, :, 0, 0], Bb)
    wg_bd = _blockdiag_1x1(np.asarray(raw["w_glob"])[:, :, 0, 0], Bb)
    w11 = jnp.asarray(np.concatenate([wc1_bd, wg_bd], axis=0), jnp.bfloat16)

    # merged folded-BN shift vectors (one DMA stream instead of five)
    sh = np.zeros((Bb * Co, 5), np.float32)
    for col, (beta, c) in enumerate([(raw["b21"], Ci), (raw["b31"], Ci),
                                     (raw["b22"], Co), (raw["b32"], Co),
                                     (raw["bc1"], Co)]):
        sh[:Bb * c, col] = np.tile(np.asarray(beta).reshape(c), Bb)
    sh = jnp.asarray(sh, jnp.float32)

    # merged bilinear upsample matrices; column split at P (lane-aligned)
    ub = np.zeros((p2, P + p2), np.float32)
    ub[:, :P] = _up_matrix_np(h2, w2, H, W)      # x2:  8x8  -> 16x16
    ub[:p3, P:] = _up_matrix_np(h3, w3, h2, w2)  # x2:  4x4  ->  8x8
    ub = jnp.asarray(ub, jnp.bfloat16)

    return dict(Bb=Bb, Ci=Ci, Co=Co, H=H, W=W,
                w11=w11, sh=sh, ub=ub,
                w21=w21, g21=g21, w31=w31, g31=g31,
                w22=w22, g22=g22, w32=w32, g32=g32)


# --------------------------------------------------------------------------
# Deterministic parameter init (BatchNorm in eval mode: running stats 0 / 1)
# --------------------------------------------------------------------------
def init_params(key, Ci, Co, H, W, Bb):
    ks = jax.random.split(key, 11)

    def conv_w(k, co, ci, ksz):
        fan_in = ci * ksz * ksz
        return jax.random.normal(k, (co, ci, ksz, ksz), jnp.float32) / np.sqrt(fan_in)

    def bn(k, c):
        k1, k2 = jax.random.split(k)
        gamma = 1.0 + 0.1 * jax.random.normal(k1, (c,), jnp.float32)
        beta = 0.05 * jax.random.normal(k2, (c,), jnp.float32)
        # eval-mode BN: running_mean = 0, running_var = 1
        return gamma / jnp.sqrt(1.0 + 1e-5), beta

    raw = {}
    raw["w_glob"] = conv_w(ks[0], Co, Ci, 1)
    raw["w21"] = conv_w(ks[1], Ci, Ci, 5); raw["s21"], raw["b21"] = bn(ks[2], Ci)
    raw["w22"] = conv_w(ks[3], Co, Ci, 5); raw["s22"], raw["b22"] = bn(ks[4], Co)
    raw["w31"] = conv_w(ks[5], Ci, Ci, 3); raw["s31"], raw["b31"] = bn(ks[6], Ci)
    raw["w32"] = conv_w(ks[7], Co, Ci, 3); raw["s32"], raw["b32"] = bn(ks[8], Co)
    raw["wc1"] = conv_w(ks[9], Co, Ci, 1); raw["sc1"], raw["bc1"] = bn(ks[10], Co)
    return pack_params(raw, Ci, Co, H, W, Bb), raw


# --------------------------------------------------------------------------
# Pure-JAX f32/HIGHEST reference (in-script correctness check)
# --------------------------------------------------------------------------
def reference_forward(x_nchw, raw):
    x = jnp.transpose(x_nchw, (0, 2, 3, 1)).astype(jnp.float32)   # NHWC
    hp = jax.lax.Precision.HIGHEST

    def conv(inp, w_oihw, stride, pad):
        w_hwio = jnp.transpose(w_oihw, (2, 3, 1, 0))
        return jax.lax.conv_general_dilated(
            inp, w_hwio, (stride, stride), [(pad, pad), (pad, pad)],
            dimension_numbers=("NHWC", "HWIO", "NHWC"), precision=hp)

    def bn_elu(y, scale, shift):
        y = y * scale.reshape(1, 1, 1, -1) + shift.reshape(1, 1, 1, -1)
        return _elu(y)

    def up2(img, n_in, n_out):
        a = jnp.asarray(_bilinear_matrix_1d(n_in, n_out))
        return jnp.einsum("ih,jw,bhwc->bijc", a, a, img, precision=hp)

    m = jnp.mean(x, axis=(1, 2))
    g = jnp.einsum("bc,oc->bo", m, raw["w_glob"][:, :, 0, 0], precision=hp)
    d21 = bn_elu(conv(x, raw["w21"], 2, 2), raw["s21"], raw["b21"])
    d31 = bn_elu(conv(d21, raw["w31"], 2, 1), raw["s31"], raw["b31"])
    d22 = bn_elu(conv(d21, raw["w22"], 1, 2), raw["s22"], raw["b22"])
    d32 = bn_elu(conv(d31, raw["w32"], 1, 1), raw["s32"], raw["b32"])
    d2 = d22 + up2(d32, d32.shape[1], d22.shape[1])
    d2 = up2(d2, d2.shape[1], x.shape[1])
    c1 = bn_elu(conv(x, raw["wc1"], 1, 0), raw["sc1"], raw["bc1"])
    out = c1 * d2 + g[:, None, None, :]
    return jnp.transpose(out, (0, 3, 1, 2))


if __name__ == "__main__":
    B, Ci, Co, H, W = 2, 4, 8, 16, 16   # spatial must be 16 (x16 glob upsample)
    key = jax.random.PRNGKey(0)
    kx, kp = jax.random.split(key)
    x = jax.random.normal(kx, (B, Ci, H, W), jnp.float32)
    # Bb = B: the whole batch is processed in a single grid step.
    packed, raw = init_params(kp, Ci, Co, H, W, Bb=B)

    out = jax.block_until_ready(fpa_v2_forward(x, packed))
    ref = jax.block_until_ready(reference_forward(x, raw))

    assert out.shape == (B, Co, H, W), out.shape
    # Kernel uses bf16 matmul operands (single-pass MXU) while the reference
    # is f32/HIGHEST -> tolerance covers bf16-level error accumulated through
    # the 4-conv-deep pyramid and the final product.
    np.testing.assert_allclose(np.asarray(out), np.asarray(ref),
                               rtol=5e-2, atol=1e-1)
    print("KERNEL_OK")
</pallas_src>

<mosaic_0001>
module attributes {stable_mosaic.version = 11 : i64} {
  func.func @kernel(%arg0: i32, %arg1: memref<8x256xf32, #tpu.memory_space<vmem>>, %arg2: memref<32x8xbf16, #tpu.memory_space<vmem>>, %arg3: memref<16x5xf32, #tpu.memory_space<vmem>>, %arg4: memref<8x200xbf16, #tpu.memory_space<vmem>>, %arg5: memref<256x1600xbf16, #tpu.memory_space<vmem>>, %arg6: memref<8x72xbf16, #tpu.memory_space<vmem>>, %arg7: memref<64x144xbf16, #tpu.memory_space<vmem>>, %arg8: memref<16x200xbf16, #tpu.memory_space<vmem>>, %arg9: memref<64x1600xbf16, #tpu.memory_space<vmem>>, %arg10: memref<16x72xbf16, #tpu.memory_space<vmem>>, %arg11: memref<16x144xbf16, #tpu.memory_space<vmem>>, %arg12: memref<64x320xbf16, #tpu.memory_space<vmem>>, %arg13: memref<16x256xf32, #tpu.memory_space<vmem>>, %arg14: memref<200x64xbf16, #tpu.memory_space<vmem>>, %arg15: memref<72x16xbf16, #tpu.memory_space<vmem>>, %arg16: memref<200x64xbf16, #tpu.memory_space<vmem>>, %arg17: memref<72x16xbf16, #tpu.memory_space<vmem>>) attributes {dimension_semantics = [#tpu.dimension_semantics<parallel>], iteration_bounds = array<i64: 1>, scalar_prefetch = 0 : i64, scratch_operands = 4 : i64, tpu.core_type = #tpu.core_type<tc>, window_params = [{transform_indices = @transform_0, window_bounds = array<i64: 8, 256>}, {pipeline_mode = #tpu.pipeline_mode<synchronous>, transform_indices = @transform_1, window_bounds = array<i64: 32, 8>}, {pipeline_mode = #tpu.pipeline_mode<synchronous>, transform_indices = @transform_2, window_bounds = array<i64: 16, 5>}, {pipeline_mode = #tpu.pipeline_mode<synchronous>, transform_indices = @transform_3, window_bounds = array<i64: 8, 200>}, {pipeline_mode = #tpu.pipeline_mode<synchronous>, transform_indices = @transform_4, window_bounds = array<i64: 256, 1600>}, {pipeline_mode = #tpu.pipeline_mode<synchronous>, transform_indices = @transform_5, window_bounds = array<i64: 8, 72>}, {pipeline_mode = #tpu.pipeline_mode<synchronous>, transform_indices = @transform_6, window_bounds = array<i64: 64, 144>}, {pipeline_mode = #tpu.pipeline_mode<synchronous>, transform_indices = @transform_7, window_bounds = array<i64: 16, 200>}, {pipeline_mode = #tpu.pipeline_mode<synchronous>, transform_indices = @transform_8, window_bounds = array<i64: 64, 1600>}, {pipeline_mode = #tpu.pipeline_mode<synchronous>, transform_indices = @transform_9, window_bounds = array<i64: 16, 72>}, {pipeline_mode = #tpu.pipeline_mode<synchronous>, transform_indices = @transform_10, window_bounds = array<i64: 16, 144>}, {pipeline_mode = #tpu.pipeline_mode<synchronous>, transform_indices = @transform_11, window_bounds = array<i64: 64, 320>}, {transform_indices = @transform_12, window_bounds = array<i64: 16, 256>}]} {
    %c0 = arith.constant 0 : index
    %c0_0 = arith.constant 0 : index
    %0 = vector.load %arg1[%c0, %c0_0] : memref<8x256xf32, #tpu.memory_space<vmem>>, vector<8x256xf32>
    %1 = arith.truncf %0 : vector<8x256xf32> to vector<8x256xbf16>
    %c0_1 = arith.constant 0 : index
    %c0_2 = arith.constant 0 : index
    %2 = vector.load %arg2[%c0_1, %c0_2] : memref<32x8xbf16, #tpu.memory_space<vmem>>, vector<32x8xbf16>
    %cst = arith.constant dense<0.000000e+00> : vector<32x256xf32>
    %3 = tpu.matmul %2, %1, %cst {dimension_numbers = #tpu.dot_dimension_numbers<[1], [0], [0], [1], [0, 0, 1, 1], [], []>} : vector<32x8xbf16>, vector<8x256xbf16>, vector<32x256xf32> -> vector<32x256xf32>
    %4 = vector.extract_strided_slice %3 {offsets = [0, 0], sizes = [16, 256], strides = [1, 1]} : vector<32x256xf32> to vector<16x256xf32>
    %c0_3 = arith.constant 0 : index
    %c4 = arith.constant 4 : index
    %5 = vector.load %arg3[%c0_3, %c4] : memref<16x5xf32, #tpu.memory_space<vmem>>, vector<16x1xf32>
    %6 = vector.broadcast %5 : vector<16x1xf32> to vector<16x256xf32>
    %7 = arith.addf %4, %6 : vector<16x256xf32>
    %cst_4 = arith.constant 0.000000e+00 : f32
    %8 = vector.broadcast %cst_4 : f32 to vector<16x256xf32>
    %9 = arith.cmpf ogt, %7, %8 : vector<16x256xf32>
    %cst_5 = arith.constant 0.000000e+00 : f32
    %10 = vector.broadcast %cst_5 : f32 to vector<16x256xf32>
    %11 = arith.minimumf %7, %10 : vector<16x256xf32>
    %12 = math.exp %11 : vector<16x256xf32>
    %cst_6 = arith.constant 1.000000e+00 : f32
    %13 = vector.broadcast %cst_6 : f32 to vector<16x256xf32>
    %14 = arith.subf %12, %13 : vector<16x256xf32>
    %15 = arith.select %9, %7, %14 : vector<16x256xi1>, vector<16x256xf32>
    %16 = vector.extract_strided_slice %3 {offsets = [16, 0], sizes = [16, 256], strides = [1, 1]} : vector<32x256xf32> to vector<16x256xf32>
    %cst_7 = arith.constant dense<0.000000e+00> : vector<16xf32>
    %17 = vector.multi_reduction <add>, %16, %cst_7 [1] : vector<16x256xf32> to vector<16xf32>
    %18 = vector.shape_cast %17 : vector<16xf32> to vector<16x1xf32>
    %cst_8 = arith.constant 2.560000e+02 : f32
    %19 = vector.broadcast %cst_8 : f32 to vector<16x1xf32>
    %20 = arith.divf %18, %19 : vector<16x1xf32>
    %c0_9 = arith.constant 0 : index
    %c0_10 = arith.constant 0 : index
    %21 = vector.load %arg5[%c0_9, %c0_10] : memref<256x1600xbf16, #tpu.memory_space<vmem>>, vector<256x1600xbf16>
    %cst_11 = arith.constant dense<0.000000e+00> : vector<8x1600xf32>
    %22 = tpu.matmul %1, %21, %cst_11 {dimension_numbers = #tpu.dot_dimension_numbers<[1], [0], [0], [1], [0, 0, 1, 1], [], []>} : vector<8x256xbf16>, vector<256x1600xbf16>, vector<8x1600xf32> -> vector<8x1600xf32>
    %23 = arith.truncf %22 : vector<8x1600xf32> to vector<8x1600xbf16>
    %24 = vector.extract_strided_slice %23 {offsets = [0, 0], sizes = [8, 64], strides = [1, 1]} : vector<8x1600xbf16> to vector<8x64xbf16>
    %c0_12 = arith.constant 0 : index
    %c0_13 = arith.constant 0 : index
    %25 = vector.load %arg14[%c0_12, %c0_13] : memref<200x64xbf16, #tpu.memory_space<vmem>>, vector<8x64xbf16>
    tpu.vector_store %arg14[%c0_12, %c0_13], %24 {strides = array<i32>} : memref<200x64xbf16, #tpu.memory_space<vmem>>, vector<8x64xbf16>,
    %26 = vector.extract_strided_slice %23 {offsets = [0, 64], sizes = [8, 64], strides = [1, 1]} : vector<8x1600xbf16> to vector<8x64xbf16>
    %c8 = arith.constant 8 : index
    %c0_14 = arith.constant 0 : index
    %27 = vector.load %arg14[%c8, %c0_14] : memref<200x64xbf16, #tpu.memory_space<vmem>>, vector<8x64xbf16>
    tpu.vector_store %arg14[%c8, %c0_14], %26 {strides = array<i32>} : memref<200x64xbf16, #tpu.memory_space<vmem>>, vector<8x64xbf16>,
    %28 = vector.extract_strided_slice %23 {offsets = [0, 128], sizes = [8, 64], strides = [1, 1]} : vector<8x1600xbf16> to vector<8x64xbf16>
    %c16 = arith.constant 16 : index
    %c0_15 = arith.constant 0 : index
    %29 = vector.load %arg14[%c16, %c0_15] : memref<200x64xbf16, #tpu.memory_space<vmem>>, vector<8x64xbf16>
    tpu.vector_store %arg14[%c16, %c0_15], %28 {strides = array<i32>} : memref<200x64xbf16, #tpu.memory_space<vmem>>, vector<8x64xbf16>,
    %30 = vector.extract_strided_slice %23 {offsets = [0, 192], sizes = [8, 64], strides = [1, 1]} : vector<8x1600xbf16> to vector<8x64xbf16>
    %c24 = arith.constant 24 : index
    %c0_16 = arith.constant 0 : index
    %31 = vector.load %arg14[%c24, %c0_16] : memref<200x64xbf16, #tpu.memory_space<vmem>>, vector<8x64xbf16>
    tpu.vector_store %arg14[%c24, %c0_16], %30 {strides = array<i32>} : memref<200x64xbf16, #tpu.memory_space<vmem>>, vector<8x64xbf16>,
    %32 = vector.extract_strided_slice %23 {offsets = [0, 256], sizes = [8, 64], strides = [1, 1]} : vector<8x1600xbf16> to vector<8x64xbf16>
    %c32 = arith.constant 32 : index
    %c0_17 = arith.constant 0 : index
    %33 = vector.load %arg14[%c32, %c0_17] : memref<200x64xbf16, #tpu.memory_space<vmem>>, vector<8x64xbf16>
    tpu.vector_store %arg14[%c32, %c0_17], %32 {strides = array<i32>} : memref<200x64xbf16, #tpu.memory_space<vmem>>, vector<8x64xbf16>,
    %34 = vector.extract_strided_slice %23 {offsets = [0, 320], sizes = [8, 64], strides = [1, 1]} : vector<8x1600xbf16> to vector<8x64xbf16>
    %c40 = arith.constant 40 : index
    %c0_18 = arith.constant 0 : index
    %35 = vector.load %arg14[%c40, %c0_18] : memref<200x64xbf16, #tpu.memory_space<vmem>>, vector<8x64xbf16>
    tpu.vector_store %arg14[%c40, %c0_18], %34 {strides = array<i32>} : memref<200x64xbf16, #tpu.memory_space<vmem>>, vector<8x64xbf16>,
    %36 = vector.extract_strided_slice %23 {offsets = [0, 384], sizes = [8, 64], strides = [1, 1]} : vector<8x1600xbf16> to vector<8x64xbf16>
    %c48 = arith.constant 48 : index
    %c0_19 = arith.constant 0 : index
    %37 = vector.load %arg14[%c48, %c0_19] : memref<200x64xbf16, #tpu.memory_space<vmem>>, vector<8x64xbf16>
    tpu.vector_store %arg14[%c48, %c0_19], %36 {strides = array<i32>} : memref<200x64xbf16, #tpu.memory_space<vmem>>, vector<8x64xbf16>,
    %38 = vector.extract_strided_slice %23 {offsets = [0, 448], sizes = [8, 64], strides = [1, 1]} : vector<8x1600xbf16> to vector<8x64xbf16>
    %c56 = arith.constant 56 : index
    %c0_20 = arith.constant 0 : index
    %39 = vector.load %arg14[%c56, %c0_20] : memref<200x64xbf16, #tpu.memory_space<vmem>>, vector<8x64xbf16>
    tpu.vector_store %arg14[%c56, %c0_20], %38 {strides = array<i32>} : memref<200x64xbf16, #tpu.memory_space<vmem>>, vector<8x64xbf16>,
    %40 = vector.extract_strided_slice %23 {offsets = [0, 512], sizes = [8, 64], strides = [1, 1]} : vector<8x1600xbf16> to vector<8x64xbf16>
    %c64 = arith.constant 64 : index
    %c0_21 = arith.constant 0 : index
    %41 = vector.load %arg14[%c64, %c0_21] : memref<200x64xbf16, #tpu.memory_space<vmem>>, vector<8x64xbf16>
    tpu.vector_store %arg14[%c64, %c0_21], %40 {strides = array<i32>} : memref<200x64xbf16, #tpu.memory_space<vmem>>, vector<8x64xbf16>,
    %42 = vector.extract_strided_slice %23 {offsets = [0, 576], sizes = [8, 64], strides = [1, 1]} : vector<8x1600xbf16> to vector<8x64xbf16>
    %c72 = arith.constant 72 : index
    %c0_22 = arith.constant 0 : index
    %43 = vector.load %arg14[%c72, %c0_22] : memref<200x64xbf16, #tpu.memory_space<vmem>>, vector<8x64xbf16>
    tpu.vector_store %arg14[%c72, %c0_22], %42 {strides = array<i32>} : memref<200x64xbf16, #tpu.memory_space<vmem>>, vector<8x64xbf16>,
    %44 = vector.extract_strided_slice %23 {offsets = [0, 640], sizes = [8, 64], strides = [1, 1]} : vector<8x1600xbf16> to vector<8x64xbf16>
    %c80 = arith.constant 80 : index
    %c0_23 = arith.constant 0 : index
    %45 = vector.load %arg14[%c80, %c0_23] : memref<200x64xbf16, #tpu.memory_space<vmem>>, vector<8x64xbf16>
    tpu.vector_store %arg14[%c80, %c0_23], %44 {strides = array<i32>} : memref<200x64xbf16, #tpu.memory_space<vmem>>, vector<8x64xbf16>,
    %46 = vector.extract_strided_slice %23 {offsets = [0, 704], sizes = [8, 64], strides = [1, 1]} : vector<8x1600xbf16> to vector<8x64xbf16>
    %c88 = arith.constant 88 : index
    %c0_24 = arith.constant 0 : index
    %47 = vector.load %arg14[%c88, %c0_24] : memref<200x64xbf16, #tpu.memory_space<vmem>>, vector<8x64xbf16>
    tpu.vector_store %arg14[%c88, %c0_24], %46 {strides = array<i32>} : memref<200x64xbf16, #tpu.memory_space<vmem>>, vector<8x64xbf16>,
    %48 = vector.extract_strided_slice %23 {offsets = [0, 768], sizes = [8, 64], strides = [1, 1]} : vector<8x1600xbf16> to vector<8x64xbf16>
    %c96 = arith.constant 96 : index
    %c0_25 = arith.constant 0 : index
    %49 = vector.load %arg14[%c96, %c0_25] : memref<200x64xbf16, #tpu.memory_space<vmem>>, vector<8x64xbf16>
    tpu.vector_store %arg14[%c96, %c0_25], %48 {strides = array<i32>} : memref<200x64xbf16, #tpu.memory_space<vmem>>, vector<8x64xbf16>,
    %50 = vector.extract_strided_slice %23 {offsets = [0, 832], sizes = [8, 64], strides = [1, 1]} : vector<8x1600xbf16> to vector<8x64xbf16>
    %c104 = arith.constant 104 : index
    %c0_26 = arith.constant 0 : index
    %51 = vector.load %arg14[%c104, %c0_26] : memref<200x64xbf16, #tpu.memory_space<vmem>>, vector<8x64xbf16>
    tpu.vector_store %arg14[%c104, %c0_26], %50 {strides = array<i32>} : memref<200x64xbf16, #tpu.memory_space<vmem>>, vector<8x64xbf16>,
    %52 = vector.extract_strided_slice %23 {offsets = [0, 896], sizes = [8, 64], strides = [1, 1]} : vector<8x1600xbf16> to vector<8x64xbf16>
    %c112 = arith.constant 112 : index
    %c0_27 = arith.constant 0 : index
    %53 = vector.load %arg14[%c112, %c0_27] : memref<200x64xbf16, #tpu.memory_space<vmem>>, vector<8x64xbf16>
    tpu.vector_store %arg14[%c112, %c0_27], %52 {strides = array<i32>} : memref<200x64xbf16, #tpu.memory_space<vmem>>, vector<8x64xbf16>,
    %54 = vector.extract_strided_slice %23 {offsets = [0, 960], sizes = [8, 64], strides = [1, 1]} : vector<8x1600xbf16> to vector<8x64xbf16>
    %c120 = arith.constant 120 : index
    %c0_28 = arith.constant 0 : index
    %55 = vector.load %arg14[%c120, %c0_28] : memref<200x64xbf16, #tpu.memory_space<vmem>>, vector<8x64xbf16>
    tpu.vector_store %arg14[%c120, %c0_28], %54 {strides = array<i32>} : memref<200x64xbf16, #tpu.memory_space<vmem>>, vector<8x64xbf16>,
    %56 = vector.extract_strided_slice %23 {offsets = [0, 1024], sizes = [8, 64], strides = [1, 1]} : vector<8x1600xbf16> to vector<8x64xbf16>
    %c128 = arith.constant 128 : index
    %c0_29 = arith.constant 0 : index
    %57 = vector.load %arg14[%c128, %c0_29] : memref<200x64xbf16, #tpu.memory_space<vmem>>, vector<8x64xbf16>
    tpu.vector_store %arg14[%c128, %c0_29], %56 {strides = array<i32>} : memref<200x64xbf16, #tpu.memory_space<vmem>>, vector<8x64xbf16>,
    %58 = vector.extract_strided_slice %23 {offsets = [0, 1088], sizes = [8, 64], strides = [1, 1]} : vector<8x1600xbf16> to vector<8x64xbf16>
    %c136 = arith.constant 136 : index
    %c0_30 = arith.constant 0 : index
    %59 = vector.load %arg14[%c136, %c0_30] : memref<200x64xbf16, #tpu.memory_space<vmem>>, vector<8x64xbf16>
    tpu.vector_store %arg14[%c136, %c0_30], %58 {strides = array<i32>} : memref<200x64xbf16, #tpu.memory_space<vmem>>, vector<8x64xbf16>,
    %60 = vector.extract_strided_slice %23 {offsets = [0, 1152], sizes = [8, 64], strides = [1, 1]} : vector<8x1600xbf16> to vector<8x64xbf16>
    %c144 = arith.constant 144 : index
    %c0_31 = arith.constant 0 : index
    %61 = vector.load %arg14[%c144, %c0_31] : memref<200x64xbf16, #tpu.memory_space<vmem>>, vector<8x64xbf16>
    tpu.vector_store %arg14[%c144, %c0_31], %60 {strides = array<i32>} : memref<200x64xbf16, #tpu.memory_space<vmem>>, vector<8x64xbf16>,
    %62 = vector.extract_strided_slice %23 {offsets = [0, 1216], sizes = [8, 64], strides = [1, 1]} : vector<8x1600xbf16> to vector<8x64xbf16>
    %c152 = arith.constant 152 : index
    %c0_32 = arith.constant 0 : index
    %63 = vector.load %arg14[%c152, %c0_32] : memref<200x64xbf16, #tpu.memory_space<vmem>>, vector<8x64xbf16>
    tpu.vector_store %arg14[%c152, %c0_32], %62 {strides = array<i32>} : memref<200x64xbf16, #tpu.memory_space<vmem>>, vector<8x64xbf16>,
    %64 = vector.extract_strided_slice %23 {offsets = [0, 1280], sizes = [8, 64], strides = [1, 1]} : vector<8x1600xbf16> to vector<8x64xbf16>
    %c160 = arith.constant 160 : index
    %c0_33 = arith.constant 0 : index
    %65 = vector.load %arg14[%c160, %c0_33] : memref<200x64xbf16, #tpu.memory_space<vmem>>, vector<8x64xbf16>
    tpu.vector_store %arg14[%c160, %c0_33], %64 {strides = array<i32>} : memref<200x64xbf16, #tpu.memory_space<vmem>>, vector<8x64xbf16>,
    %66 = vector.extract_strided_slice %23 {offsets = [0, 1344], sizes = [8, 64], strides = [1, 1]} : vector<8x1600xbf16> to vector<8x64xbf16>
    %c168 = arith.constant 168 : index
    %c0_34 = arith.constant 0 : index
    %67 = vector.load %arg14[%c168, %c0_34] : memref<200x64xbf16, #tpu.memory_space<vmem>>, vector<8x64xbf16>
    tpu.vector_store %arg14[%c168, %c0_34], %66 {strides = array<i32>} : memref<200x64xbf16, #tpu.memory_space<vmem>>, vector<8x64xbf16>,
    %68 = vector.extract_strided_slice %23 {offsets = [0, 1408], sizes = [8, 64], strides = [1, 1]} : vector<8x1600xbf16> to vector<8x64xbf16>
    %c176 = arith.constant 176 : index
    %c0_35 = arith.constant 0 : index
    %69 = vector.load %arg14[%c176, %c0_35] : memref<200x64xbf16, #tpu.memory_space<vmem>>, vector<8x64xbf16>
    tpu.vector_store %arg14[%c176, %c0_35], %68 {strides = array<i32>} : memref<200x64xbf16, #tpu.memory_space<vmem>>, vector<8x64xbf16>,
    %70 = vector.extract_strided_slice %23 {offsets = [0, 1472], sizes = [8, 64], strides = [1, 1]} : vector<8x1600xbf16> to vector<8x64xbf16>
    %c184 = arith.constant 184 : index
    %c0_36 = arith.constant 0 : index
    %71 = vector.load %arg14[%c184, %c0_36] : memref<200x64xbf16, #tpu.memory_space<vmem>>, vector<8x64xbf16>
    tpu.vector_store %arg14[%c184, %c0_36], %70 {strides = array<i32>} : memref<200x64xbf16, #tpu.memory_space<vmem>>, vector<8x64xbf16>,
    %72 = vector.extract_strided_slice %23 {offsets = [0, 1536], sizes = [8, 64], strides = [1, 1]} : vector<8x1600xbf16> to vector<8x64xbf16>
    %c192 = arith.constant 192 : index
    %c0_37 = arith.constant 0 : index
    %73 = vector.load %arg14[%c192, %c0_37] : memref<200x64xbf16, #tpu.memory_space<vmem>>, vector<8x64xbf16>
    tpu.vector_store %arg14[%c192, %c0_37], %72 {strides = array<i32>} : memref<200x64xbf16, #tpu.memory_space<vmem>>, vector<8x64xbf16>,
    %c0_38 = arith.constant 0 : index
    %c0_39 = arith.constant 0 : index
    %74 = vector.load %arg4[%c0_38, %c0_39] : memref<8x200xbf16, #tpu.memory_space<vmem>>, vector<8x200xbf16>
    %c0_40 = arith.constant 0 : index
    %c0_41 = arith.constant 0 : index
    %75 = vector.load %arg14[%c0_40, %c0_41] : memref<200x64xbf16, #tpu.memory_space<vmem>>, vector<200x64xbf16>
    %cst_42 = arith.constant dense<0.000000e+00> : vector<8x64xf32>
    %76 = tpu.matmul %74, %75, %cst_42 {dimension_numbers = #tpu.dot_dimension_numbers<[1], [0], [0], [1], [0, 0, 1, 1], [], []>} : vector<8x200xbf16>, vector<200x64xbf16>, vector<8x64xf32> -> vector<8x64xf32>
    %c0_43 = arith.constant 0 : index
    %c0_44 = arith.constant 0 : index
    %77 = vector.load %arg3[%c0_43, %c0_44] : memref<16x5xf32, #tpu.memory_space<vmem>>, vector<8x1xf32>
    %78 = vector.broadcast %77 : vector<8x1xf32> to vector<8x64xf32>
    %79 = arith.addf %76, %78 : vector<8x64xf32>
    %cst_45 = arith.constant 0.000000e+00 : f32
    %80 = vector.broadcast %cst_45 : f32 to vector<8x64xf32>
    %81 = arith.cmpf ogt, %79, %80 : vector<8x64xf32>
    %cst_46 = arith.constant 0.000000e+00 : f32
    %82 = vector.broadcast %cst_46 : f32 to vector<8x64xf32>
    %83 = arith.minimumf %79, %82 : vector<8x64xf32>
    %84 = math.exp %83 : vector<8x64xf32>
    %cst_47 = arith.constant 1.000000e+00 : f32
    %85 = vector.broadcast %cst_47 : f32 to vector<8x64xf32>
    %86 = arith.subf %84, %85 : vector<8x64xf32>
    %87 = arith.select %81, %79, %86 : vector<8x64xi1>, vector<8x64xf32>
    %88 = arith.truncf %87 : vector<8x64xf32> to vector<8x64xbf16>
    %c0_48 = arith.constant 0 : index
    %c0_49 = arith.constant 0 : index
    %89 = vector.load %arg7[%c0_48, %c0_49] : memref<64x144xbf16, #tpu.memory_space<vmem>>, vector<64x144xbf16>
    %cst_50 = arith.constant dense<0.000000e+00> : vector<8x144xf32>
    %90 = tpu.matmul %88, %89, %cst_50 {dimension_numbers = #tpu.dot_dimension_numbers<[1], [0], [0], [1], [0, 0, 1, 1], [], []>} : vector<8x64xbf16>, vector<64x144xbf16>, vector<8x144xf32> -> vector<8x144xf32>
    %91 = arith.truncf %90 : vector<8x144xf32> to vector<8x144xbf16>
    %92 = vector.extract_strided_slice %91 {offsets = [0, 0], sizes = [8, 16], strides = [1, 1]} : vector<8x144xbf16> to vector<8x16xbf16>
    %c0_51 = arith.constant 0 : index
    %c0_52 = arith.constant 0 : index
    %93 = vector.load %arg15[%c0_51, %c0_52] : memref<72x16xbf16, #tpu.memory_space<vmem>>, vector<8x16xbf16>
    tpu.vector_store %arg15[%c0_51, %c0_52], %92 {strides = array<i32>} : memref<72x16xbf16, #tpu.memory_space<vmem>>, vector<8x16xbf16>,
    %94 = vector.extract_strided_slice %91 {offsets = [0, 16], sizes = [8, 16], strides = [1, 1]} : vector<8x144xbf16> to vector<8x16xbf16>
    %c8_53 = arith.constant 8 : index
    %c0_54 = arith.constant 0 : index
    %95 = vector.load %arg15[%c8_53, %c0_54] : memref<72x16xbf16, #tpu.memory_space<vmem>>, vector<8x16xbf16>
    tpu.vector_store %arg15[%c8_53, %c0_54], %94 {strides = array<i32>} : memref<72x16xbf16, #tpu.memory_space<vmem>>, vector<8x16xbf16>,
    %96 = vector.extract_strided_slice %91 {offsets = [0, 32], sizes = [8, 16], strides = [1, 1]} : vector<8x144xbf16> to vector<8x16xbf16>
    %c16_55 = arith.constant 16 : index
    %c0_56 = arith.constant 0 : index
    %97 = vector.load %arg15[%c16_55, %c0_56] : memref<72x16xbf16, #tpu.memory_space<vmem>>, vector<8x16xbf16>
    tpu.vector_store %arg15[%c16_55, %c0_56], %96 {strides = array<i32>} : memref<72x16xbf16, #tpu.memory_space<vmem>>, vector<8x16xbf16>,
    %98 = vector.extract_strided_slice %91 {offsets = [0, 48], sizes = [8, 16], strides = [1, 1]} : vector<8x144xbf16> to vector<8x16xbf16>
    %c24_57 = arith.constant 24 : index
    %c0_58 = arith.constant 0 : index
    %99 = vector.load %arg15[%c24_57, %c0_58] : memref<72x16xbf16, #tpu.memory_space<vmem>>, vector<8x16xbf16>
    tpu.vector_store %arg15[%c24_57, %c0_58], %98 {strides = array<i32>} : memref<72x16xbf16, #tpu.memory_space<vmem>>, vector<8x16xbf16>,
    %100 = vector.extract_strided_slice %91 {offsets = [0, 64], sizes = [8, 16], strides = [1, 1]} : vector<8x144xbf16> to vector<8x16xbf16>
    %c32_59 = arith.constant 32 : index
    %c0_60 = arith.constant 0 : index
    %101 = vector.load %arg15[%c32_59, %c0_60] : memref<72x16xbf16, #tpu.memory_space<vmem>>, vector<8x16xbf16>
    tpu.vector_store %arg15[%c32_59, %c0_60], %100 {strides = array<i32>} : memref<72x16xbf16, #tpu.memory_space<vmem>>, vector<8x16xbf16>,
    %102 = vector.extract_strided_slice %91 {offsets = [0, 80], sizes = [8, 16], strides = [1, 1]} : vector<8x144xbf16> to vector<8x16xbf16>
    %c40_61 = arith.constant 40 : index
    %c0_62 = arith.constant 0 : index
    %103 = vector.load %arg15[%c40_61, %c0_62] : memref<72x16xbf16, #tpu.memory_space<vmem>>, vector<8x16xbf16>
    tpu.vector_store %arg15[%c40_61, %c0_62], %102 {strides = array<i32>} : memref<72x16xbf16, #tpu.memory_space<vmem>>, vector<8x16xbf16>,
    %104 = vector.extract_strided_slice %91 {offsets = [0, 96], sizes = [8, 16], strides = [1, 1]} : vector<8x144xbf16> to vector<8x16xbf16>
    %c48_63 = arith.constant 48 : index
    %c0_64 = arith.constant 0 : index
    %105 = vector.load %arg15[%c48_63, %c0_64] : memref<72x16xbf16, #tpu.memory_space<vmem>>, vector<8x16xbf16>
    tpu.vector_store %arg15[%c48_63, %c0_64], %104 {strides = array<i32>} : memref<72x16xbf16, #tpu.memory_space<vmem>>, vector<8x16xbf16>,
    %106 = vector.extract_strided_slice %91 {offsets = [0, 112], sizes = [8, 16], strides = [1, 1]} : vector<8x144xbf16> to vector<8x16xbf16>
    %c56_65 = arith.constant 56 : index
    %c0_66 = arith.constant 0 : index
    %107 = vector.load %arg15[%c56_65, %c0_66] : memref<72x16xbf16, #tpu.memory_space<vmem>>, vector<8x16xbf16>
    tpu.vector_store %arg15[%c56_65, %c0_66], %106 {strides = array<i32>} : memref<72x16xbf16, #tpu.memory_space<vmem>>, vector<8x16xbf16>,
    %108 = vector.extract_strided_slice %91 {offsets = [0, 128], sizes = [8, 16], strides = [1, 1]} : vector<8x144xbf16> to vector<8x16xbf16>
    %c64_67 = arith.constant 64 : index
    %c0_68 = arith.constant 0 : index
    %109 = vector.load %arg15[%c64_67, %c0_68] : memref<72x16xbf16, #tpu.memory_space<vmem>>, vector<8x16xbf16>
    tpu.vector_store %arg15[%c64_67, %c0_68], %108 {strides = array<i32>} : memref<72x16xbf16, #tpu.memory_space<vmem>>, vector<8x16xbf16>,
    %c0_69 = arith.constant 0 : index
    %c0_70 = arith.constant 0 : index
    %110 = vector.load %arg6[%c0_69, %c0_70] : memref<8x72xbf16, #tpu.memory_space<vmem>>, vector<8x72xbf16>
    %c0_71 = arith.constant 0 : index
    %c0_72 = arith.constant 0 : index
    %111 = vector.load %arg15[%c0_71, %c0_72] : memref<72x16xbf16, #tpu.memory_space<vmem>>, vector<72x16xbf16>
    %cst_73 = arith.constant dense<0.000000e+00> : vector<8x16xf32>
    %112 = tpu.matmul %110, %111, %cst_73 {dimension_numbers = #tpu.dot_dimension_numbers<[1], [0], [0], [1], [0, 0, 1, 1], [], []>} : vector<8x72xbf16>, vector<72x16xbf16>, vector<8x16xf32> -> vector<8x16xf32>
    %c0_74 = arith.constant 0 : index
    %c1 = arith.constant 1 : index
    %113 = vector.load %arg3[%c0_74, %c1] : memref<16x5xf32, #tpu.memory_space<vmem>>, vector<8x1xf32>
    %114 = vector.broadcast %113 : vector<8x1xf32> to vector<8x16xf32>
    %115 = arith.addf %112, %114 : vector<8x16xf32>
    %cst_75 = arith.constant 0.000000e+00 : f32
    %116 = vector.broadcast %cst_75 : f32 to vector<8x16xf32>
    %117 = arith.cmpf ogt, %115, %116 : vector<8x16xf32>
    %cst_76 = arith.constant 0.000000e+00 : f32
    %118 = vector.broadcast %cst_76 : f32 to vector<8x16xf32>
    %119 = arith.minimumf %115, %118 : vector<8x16xf32>
    %120 = math.exp %119 : vector<8x16xf32>
    %cst_77 = arith.constant 1.000000e+00 : f32
    %121 = vector.broadcast %cst_77 : f32 to vector<8x16xf32>
    %122 = arith.subf %120, %121 : vector<8x16xf32>
    %123 = arith.select %117, %115, %122 : vector<8x16xi1>, vector<8x16xf32>
    %c0_78 = arith.constant 0 : index
    %c0_79 = arith.constant 0 : index
    %124 = vector.load %arg9[%c0_78, %c0_79] : memref<64x1600xbf16, #tpu.memory_space<vmem>>, vector<64x1600xbf16>
    %cst_80 = arith.constant dense<0.000000e+00> : vector<8x1600xf32>
    %125 = tpu.matmul %88, %124, %cst_80 {dimension_numbers = #tpu.dot_dimension_numbers<[1], [0], [0], [1], [0, 0, 1, 1], [], []>} : vector<8x64xbf16>, vector<64x1600xbf16>, vector<8x1600xf32> -> vector<8x1600xf32>
    %126 = arith.truncf %125 : vector<8x1600xf32> to vector<8x1600xbf16>
    %127 = vector.extract_strided_slice %126 {offsets = [0, 0], sizes = [8, 64], strides = [1, 1]} : vector<8x1600xbf16> to vector<8x64xbf16>
    %c0_81 = arith.constant 0 : index
    %c0_82 = arith.constant 0 : index
    %128 = vector.load %arg16[%c0_81, %c0_82] : memref<200x64xbf16, #tpu.memory_space<vmem>>, vector<8x64xbf16>
    tpu.vector_store %arg16[%c0_81, %c0_82], %127 {strides = array<i32>} : memref<200x64xbf16, #tpu.memory_space<vmem>>, vector<8x64xbf16>,
    %129 = vector.extract_strided_slice %126 {offsets = [0, 64], sizes = [8, 64], strides = [1, 1]} : vector<8x1600xbf16> to vector<8x64xbf16>
    %c8_83 = arith.constant 8 : index
    %c0_84 = arith.constant 0 : index
    %130 = vector.load %arg16[%c8_83, %c0_84] : memref<200x64xbf16, #tpu.memory_space<vmem>>, vector<8x64xbf16>
    tpu.vector_store %arg16[%c8_83, %c0_84], %129 {strides = array<i32>} : memref<200x64xbf16, #tpu.memory_space<vmem>>, vector<8x64xbf16>,
    %131 = vector.extract_strided_slice %126 {offsets = [0, 128], sizes = [8, 64], strides = [1, 1]} : vector<8x1600xbf16> to vector<8x64xbf16>
    %c16_85 = arith.constant 16 : index
    %c0_86 = arith.constant 0 : index
    %132 = vector.load %arg16[%c16_85, %c0_86] : memref<200x64xbf16, #tpu.memory_space<vmem>>, vector<8x64xbf16>
    tpu.vector_store %arg16[%c16_85, %c0_86], %131 {strides = array<i32>} : memref<200x64xbf16, #tpu.memory_space<vmem>>, vector<8x64xbf16>,
    %133 = vector.extract_strided_slice %126 {offsets = [0, 192], sizes = [8, 64], strides = [1, 1]} : vector<8x1600xbf16> to vector<8x64xbf16>
    %c24_87 = arith.constant 24 : index
    %c0_88 = arith.constant 0 : index
    %134 = vector.load %arg16[%c24_87, %c0_88] : memref<200x64xbf16, #tpu.memory_space<vmem>>, vector<8x64xbf16>
    tpu.vector_store %arg16[%c24_87, %c0_88], %133 {strides = array<i32>} : memref<200x64xbf16, #tpu.memory_space<vmem>>, vector<8x64xbf16>,
    %135 = vector.extract_strided_slice %126 {offsets = [0, 256], sizes = [8, 64], strides = [1, 1]} : vector<8x1600xbf16> to vector<8x64xbf16>
    %c32_89 = arith.constant 32 : index
    %c0_90 = arith.constant 0 : index
    %136 = vector.load %arg16[%c32_89, %c0_90] : memref<200x64xbf16, #tpu.memory_space<vmem>>, vector<8x64xbf16>
    tpu.vector_store %arg16[%c32_89, %c0_90], %135 {strides = array<i32>} : memref<200x64xbf16, #tpu.memory_space<vmem>>, vector<8x64xbf16>,
    %137 = vector.extract_strided_slice %126 {offsets = [0, 320], sizes = [8, 64], strides = [1, 1]} : vector<8x1600xbf16> to vector<8x64xbf16>
    %c40_91 = arith.constant 40 : index
    %c0_92 = arith.constant 0 : index
    %138 = vector.load %arg16[%c40_91, %c0_92] : memref<200x64xbf16, #tpu.memory_space<vmem>>, vector<8x64xbf16>
    tpu.vector_store %arg16[%c40_91, %c0_92], %137 {strides = array<i32>} : memref<200x64xbf16, #tpu.memory_space<vmem>>, vector<8x64xbf16>,
    %139 = vector.extract_strided_slice %126 {offsets = [0, 384], sizes = [8, 64], strides = [1, 1]} : vector<8x1600xbf16> to vector<8x64xbf16>
    %c48_93 = arith.constant 48 : index
    %c0_94 = arith.constant 0 : index
    %140 = vector.load %arg16[%c48_93, %c0_94] : memref<200x64xbf16, #tpu.memory_space<vmem>>, vector<8x64xbf16>
    tpu.vector_store %arg16[%c48_93, %c0_94], %139 {strides = array<i32>} : memref<200x64xbf16, #tpu.memory_space<vmem>>, vector<8x64xbf16>,
    %141 = vector.extract_strided_slice %126 {offsets = [0, 448], sizes = [8, 64], strides = [1, 1]} : vector<8x1600xbf16> to vector<8x64xbf16>
    %c56_95 = arith.constant 56 : index
    %c0_96 = arith.constant 0 : index
    %142 = vector.load %arg16[%c56_95, %c0_96] : memref<200x64xbf16, #tpu.memory_space<vmem>>, vector<8x64xbf16>
    tpu.vector_store %arg16[%c56_95, %c0_96], %141 {strides = array<i32>} : memref<200x64xbf16, #tpu.memory_space<vmem>>, vector<8x64xbf16>,
    %143 = vector.extract_strided_slice %126 {offsets = [0, 512], sizes = [8, 64], strides = [1, 1]} : vector<8x1600xbf16> to vector<8x64xbf16>
    %c64_97 = arith.constant 64 : index
    %c0_98 = arith.constant 0 : index
    %144 = vector.load %arg16[%c64_97, %c0_98] : memref<200x64xbf16, #tpu.memory_space<vmem>>, vector<8x64xbf16>
    tpu.vector_store %arg16[%c64_97, %c0_98], %143 {strides = array<i32>} : memref<200x64xbf16, #tpu.memory_space<vmem>>, vector<8x64xbf16>,
    %145 = vector.extract_strided_slice %126 {offsets = [0, 576], sizes = [8, 64], strides = [1, 1]} : vector<8x1600xbf16> to vector<8x64xbf16>
    %c72_99 = arith.constant 72 : index
    %c0_100 = arith.constant 0 : index
    %146 = vector.load %arg16[%c72_99, %c0_100] : memref<200x64xbf16, #tpu.memory_space<vmem>>, vector<8x64xbf16>
    tpu.vector_store %arg16[%c72_99, %c0_100], %145 {strides = array<i32>} : memref<200x64xbf16, #tpu.memory_space<vmem>>, vector<8x64xbf16>,
    %147 = vector.extract_strided_slice %126 {offsets = [0, 640], sizes = [8, 64], strides = [1, 1]} : vector<8x1600xbf16> to vector<8x64xbf16>
    %c80_101 = arith.constant 80 : index
    %c0_102 = arith.constant 0 : index
    %148 = vector.load %arg16[%c80_101, %c0_102] : memref<200x64xbf16, #tpu.memory_space<vmem>>, vector<8x64xbf16>
    tpu.vector_store %arg16[%c80_101, %c0_102], %147 {strides = array<i32>} : memref<200x64xbf16, #tpu.memory_space<vmem>>, vector<8x64xbf16>,
    %149 = vector.extract_strided_slice %126 {offsets = [0, 704], sizes = [8, 64], strides = [1, 1]} : vector<8x1600xbf16> to vector<8x64xbf16>
    %c88_103 = arith.constant 88 : index
    %c0_104 = arith.constant 0 : index
    %150 = vector.load %arg16[%c88_103, %c0_104] : memref<200x64xbf16, #tpu.memory_space<vmem>>, vector<8x64xbf16>
    tpu.vector_store %arg16[%c88_103, %c0_104], %149 {strides = array<i32>} : memref<200x64xbf16, #tpu.memory_space<vmem>>, vector<8x64xbf16>,
    %151 = vector.extract_strided_slice %126 {offsets = [0, 768], sizes = [8, 64], strides = [1, 1]} : vector<8x1600xbf16> to vector<8x64xbf16>
    %c96_105 = arith.constant 96 : index
    %c0_106 = arith.constant 0 : index
    %152 = vector.load %arg16[%c96_105, %c0_106] : memref<200x64xbf16, #tpu.memory_space<vmem>>, vector<8x64xbf16>
    tpu.vector_store %arg16[%c96_105, %c0_106], %151 {strides = array<i32>} : memref<200x64xbf16, #tpu.memory_space<vmem>>, vector<8x64xbf16>,
    %153 = vector.extract_strided_slice %126 {offsets = [0, 832], sizes = [8, 64], strides = [1, 1]} : vector<8x1600xbf16> to vector<8x64xbf16>
    %c104_107 = arith.constant 104 : index
    %c0_108 = arith.constant 0 : index
    %154 = vector.load %arg16[%c104_107, %c0_108] : memref<200x64xbf16, #tpu.memory_space<vmem>>, vector<8x64xbf16>
    tpu.vector_store %arg16[%c104_107, %c0_108], %153 {strides = array<i32>} : memref<200x64xbf16, #tpu.memory_space<vmem>>, vector<8x64xbf16>,
    %155 = vector.extract_strided_slice %126 {offsets = [0, 896], sizes = [8, 64], strides = [1, 1]} : vector<8x1600xbf16> to vector<8x64xbf16>
    %c112_109 = arith.constant 112 : index
    %c0_110 = arith.constant 0 : index
    %156 = vector.load %arg16[%c112_109, %c0_110] : memref<200x64xbf16, #tpu.memory_space<vmem>>, vector<8x64xbf16>
    tpu.vector_store %arg16[%c112_109, %c0_110], %155 {strides = array<i32>} : memref<200x64xbf16, #tpu.memory_space<vmem>>, vector<8x64xbf16>,
    %157 = vector.extract_strided_slice %126 {offsets = [0, 960], sizes = [8, 64], strides = [1, 1]} : vector<8x1600xbf16> to vector<8x64xbf16>
    %c120_111 = arith.constant 120 : index
    %c0_112 = arith.constant 0 : index
    %158 = vector.load %arg16[%c120_111, %c0_112] : memref<200x64xbf16, #tpu.memory_space<vmem>>, vector<8x64xbf16>
    tpu.vector_store %arg16[%c120_111, %c0_112], %157 {strides = array<i32>} : memref<200x64xbf16, #tpu.memory_space<vmem>>, vector<8x64xbf16>,
    %159 = vector.extract_strided_slice %126 {offsets = [0, 1024], sizes = [8, 64], strides = [1, 1]} : vector<8x1600xbf16> to vector<8x64xbf16>
    %c128_113 = arith.constant 128 : index
    %c0_114 = arith.constant 0 : index
    %160 = vector.load %arg16[%c128_113, %c0_114] : memref<200x64xbf16, #tpu.memory_space<vmem>>, vector<8x64xbf16>
    tpu.vector_store %arg16[%c128_113, %c0_114], %159 {strides = array<i32>} : memref<200x64xbf16, #tpu.memory_space<vmem>>, vector<8x64xbf16>,
    %161 = vector.extract_strided_slice %126 {offsets = [0, 1088], sizes = [8, 64], strides = [1, 1]} : vector<8x1600xbf16> to vector<8x64xbf16>
    %c136_115 = arith.constant 136 : index
    %c0_116 = arith.constant 0 : index
    %162 = vector.load %arg16[%c136_115, %c0_116] : memref<200x64xbf16, #tpu.memory_space<vmem>>, vector<8x64xbf16>
    tpu.vector_store %arg16[%c136_115, %c0_116], %161 {strides = array<i32>} : memref<200x64xbf16, #tpu.memory_space<vmem>>, vector<8x64xbf16>,
    %163 = vector.extract_strided_slice %126 {offsets = [0, 1152], sizes = [8, 64], strides = [1, 1]} : vector<8x1600xbf16> to vector<8x64xbf16>
    %c144_117 = arith.constant 144 : index
    %c0_118 = arith.constant 0 : index
    %164 = vector.load %arg16[%c144_117, %c0_118] : memref<200x64xbf16, #tpu.memory_space<vmem>>, vector<8x64xbf16>
    tpu.vector_store %arg16[%c144_117, %c0_118], %163 {strides = array<i32>} : memref<200x64xbf16, #tpu.memory_space<vmem>>, vector<8x64xbf16>,
    %165 = vector.extract_strided_slice %126 {offsets = [0, 1216], sizes = [8, 64], strides = [1, 1]} : vector<8x1600xbf16> to vector<8x64xbf16>
    %c152_119 = arith.constant 152 : index
    %c0_120 = arith.constant 0 : index
    %166 = vector.load %arg16[%c152_119, %c0_120] : memref<200x64xbf16, #tpu.memory_space<vmem>>, vector<8x64xbf16>
    tpu.vector_store %arg16[%c152_119, %c0_120], %165 {strides = array<i32>} : memref<200x64xbf16, #tpu.memory_space<vmem>>, vector<8x64xbf16>,
    %167 = vector.extract_strided_slice %126 {offsets = [0, 1280], sizes = [8, 64], strides = [1, 1]} : vector<8x1600xbf16> to vector<8x64xbf16>
    %c160_121 = arith.constant 160 : index
    %c0_122 = arith.constant 0 : index
    %168 = vector.load %arg16[%c160_121, %c0_122] : memref<200x64xbf16, #tpu.memory_space<vmem>>, vector<8x64xbf16>
    tpu.vector_store %arg16[%c160_121, %c0_122], %167 {strides = array<i32>} : memref<200x64xbf16, #tpu.memory_space<vmem>>, vector<8x64xbf16>,
    %169 = vector.extract_strided_slice %126 {offsets = [0, 1344], sizes = [8, 64], strides = [1, 1]} : vector<8x1600xbf16> to vector<8x64xbf16>
    %c168_123 = arith.constant 168 : index
    %c0_124 = arith.constant 0 : index
    %170 = vector.load %arg16[%c168_123, %c0_124] : memref<200x64xbf16, #tpu.memory_space<vmem>>, vector<8x64xbf16>
    tpu.vector_store %arg16[%c168_123, %c0_124], %169 {strides = array<i32>} : memref<200x64xbf16, #tpu.memory_space<vmem>>, vector<8x64xbf16>,
    %171 = vector.extract_strided_slice %126 {offsets = [0, 1408], sizes = [8, 64], strides = [1, 1]} : vector<8x1600xbf16> to vector<8x64xbf16>
    %c176_125 = arith.constant 176 : index
    %c0_126 = arith.constant 0 : index
    %172 = vector.load %arg16[%c176_125, %c0_126] : memref<200x64xbf16, #tpu.memory_space<vmem>>, vector<8x64xbf16>
    tpu.vector_store %arg16[%c176_125, %c0_126], %171 {strides = array<i32>} : memref<200x64xbf16, #tpu.memory_space<vmem>>, vector<8x64xbf16>,
    %173 = vector.extract_strided_slice %126 {offsets = [0, 1472], sizes = [8, 64], strides = [1, 1]} : vector<8x1600xbf16> to vector<8x64xbf16>
    %c184_127 = arith.constant 184 : index
    %c0_128 = arith.constant 0 : index
    %174 = vector.load %arg16[%c184_127, %c0_128] : memref<200x64xbf16, #tpu.memory_space<vmem>>, vector<8x64xbf16>
    tpu.vector_store %arg16[%c184_127, %c0_128], %173 {strides = array<i32>} : memref<200x64xbf16, #tpu.memory_space<vmem>>, vector<8x64xbf16>,
    %175 = vector.extract_strided_slice %126 {offsets = [0, 1536], sizes = [8, 64], strides = [1, 1]} : vector<8x1600xbf16> to vector<8x64xbf16>
    %c192_129 = arith.constant 192 : index
    %c0_130 = arith.constant 0 : index
    %176 = vector.load %arg16[%c192_129, %c0_130] : memref<200x64xbf16, #tpu.memory_space<vmem>>, vector<8x64xbf16>
    tpu.vector_store %arg16[%c192_129, %c0_130], %175 {strides = array<i32>} : memref<200x64xbf16, #tpu.memory_space<vmem>>, vector<8x64xbf16>,
    %c0_131 = arith.constant 0 : index
    %c0_132 = arith.constant 0 : index
    %177 = vector.load %arg8[%c0_131, %c0_132] : memref<16x200xbf16, #tpu.memory_space<vmem>>, vector<16x200xbf16>
    %c0_133 = arith.constant 0 : index
    %c0_134 = arith.constant 0 : index
    %178 = vector.load %arg16[%c0_133, %c0_134] : memref<200x64xbf16, #tpu.memory_space<vmem>>, vector<200x64xbf16>
    %cst_135 = arith.constant dense<0.000000e+00> : vector<16x64xf32>
    %179 = tpu.matmul %177, %178, %cst_135 {dimension_numbers = #tpu.dot_dimension_numbers<[1], [0], [0], [1], [0, 0, 1, 1], [], []>} : vector<16x200xbf16>, vector<200x64xbf16>, vector<16x64xf32> -> vector<16x64xf32>
    %c0_136 = arith.constant 0 : index
    %c2 = arith.constant 2 : index
    %180 = vector.load %arg3[%c0_136, %c2] : memref<16x5xf32, #tpu.memory_space<vmem>>, vector<16x1xf32>
    %181 = vector.broadcast %180 : vector<16x1xf32> to vector<16x64xf32>
    %182 = arith.addf %179, %181 : vector<16x64xf32>
    %cst_137 = arith.constant 0.000000e+00 : f32
    %183 = vector.broadcast %cst_137 : f32 to vector<16x64xf32>
    %184 = arith.cmpf ogt, %182, %183 : vector<16x64xf32>
    %cst_138 = arith.constant 0.000000e+00 : f32
    %185 = vector.broadcast %cst_138 : f32 to vector<16x64xf32>
    %186 = arith.minimumf %182, %185 : vector<16x64xf32>
    %187 = math.exp %186 : vector<16x64xf32>
    %cst_139 = arith.constant 1.000000e+00 : f32
    %188 = vector.broadcast %cst_139 : f32 to vector<16x64xf32>
    %189 = arith.subf %187, %188 : vector<16x64xf32>
    %190 = arith.select %184, %182, %189 : vector<16x64xi1>, vector<16x64xf32>
    %191 = arith.truncf %123 : vector<8x16xf32> to vector<8x16xbf16>
    %c0_140 = arith.constant 0 : index
    %c0_141 = arith.constant 0 : index
    %192 = vector.load %arg11[%c0_140, %c0_141] : memref<16x144xbf16, #tpu.memory_space<vmem>>, vector<16x144xbf16>
    %cst_142 = arith.constant dense<0.000000e+00> : vector<8x144xf32>
    %193 = tpu.matmul %191, %192, %cst_142 {dimension_numbers = #tpu.dot_dimension_numbers<[1], [0], [0], [1], [0, 0, 1, 1], [], []>} : vector<8x16xbf16>, vector<16x144xbf16>, vector<8x144xf32> -> vector<8x144xf32>
    %194 = arith.truncf %193 : vector<8x144xf32> to vector<8x144xbf16>
    %195 = vector.extract_strided_slice %194 {offsets = [0, 0], sizes = [8, 16], strides = [1, 1]} : vector<8x144xbf16> to vector<8x16xbf16>
    %c0_143 = arith.constant 0 : index
    %c0_144 = arith.constant 0 : index
    %196 = vector.load %arg17[%c0_143, %c0_144] : memref<72x16xbf16, #tpu.memory_space<vmem>>, vector<8x16xbf16>
    tpu.vector_store %arg17[%c0_143, %c0_144], %195 {strides = array<i32>} : memref<72x16xbf16, #tpu.memory_space<vmem>>, vector<8x16xbf16>,
    %197 = vector.extract_strided_slice %194 {offsets = [0, 16], sizes = [8, 16], strides = [1, 1]} : vector<8x144xbf16> to vector<8x16xbf16>
    %c8_145 = arith.constant 8 : index
    %c0_146 = arith.constant 0 : index
    %198 = vector.load %arg17[%c8_145, %c0_146] : memref<72x16xbf16, #tpu.memory_space<vmem>>, vector<8x16xbf16>
    tpu.vector_store %arg17[%c8_145, %c0_146], %197 {strides = array<i32>} : memref<72x16xbf16, #tpu.memory_space<vmem>>, vector<8x16xbf16>,
    %199 = vector.extract_strided_slice %194 {offsets = [0, 32], sizes = [8, 16], strides = [1, 1]} : vector<8x144xbf16> to vector<8x16xbf16>
    %c16_147 = arith.constant 16 : index
    %c0_148 = arith.constant 0 : index
    %200 = vector.load %arg17[%c16_147, %c0_148] : memref<72x16xbf16, #tpu.memory_space<vmem>>, vector<8x16xbf16>
    tpu.vector_store %arg17[%c16_147, %c0_148], %199 {strides = array<i32>} : memref<72x16xbf16, #tpu.memory_space<vmem>>, vector<8x16xbf16>,
    %201 = vector.extract_strided_slice %194 {offsets = [0, 48], sizes = [8, 16], strides = [1, 1]} : vector<8x144xbf16> to vector<8x16xbf16>
    %c24_149 = arith.constant 24 : index
    %c0_150 = arith.constant 0 : index
    %202 = vector.load %arg17[%c24_149, %c0_150] : memref<72x16xbf16, #tpu.memory_space<vmem>>, vector<8x16xbf16>
    tpu.vector_store %arg17[%c24_149, %c0_150], %201 {strides = array<i32>} : memref<72x16xbf16, #tpu.memory_space<vmem>>, vector<8x16xbf16>,
    %203 = vector.extract_strided_slice %194 {offsets = [0, 64], sizes = [8, 16], strides = [1, 1]} : vector<8x144xbf16> to vector<8x16xbf16>
    %c32_151 = arith.constant 32 : index
    %c0_152 = arith.constant 0 : index
    %204 = vector.load %arg17[%c32_151, %c0_152] : memref<72x16xbf16, #tpu.memory_space<vmem>>, vector<8x16xbf16>
    tpu.vector_store %arg17[%c32_151, %c0_152], %203 {strides = array<i32>} : memref<72x16xbf16, #tpu.memory_space<vmem>>, vector<8x16xbf16>,
    %205 = vector.extract_strided_slice %194 {offsets = [0, 80], sizes = [8, 16], strides = [1, 1]} : vector<8x144xbf16> to vector<8x16xbf16>
    %c40_153 = arith.constant 40 : index
    %c0_154 = arith.constant 0 : index
    %206 = vector.load %arg17[%c40_153, %c0_154] : memref<72x16xbf16, #tpu.memory_space<vmem>>, vector<8x16xbf16>
    tpu.vector_store %arg17[%c40_153, %c0_154], %205 {strides = array<i32>} : memref<72x16xbf16, #tpu.memory_space<vmem>>, vector<8x16xbf16>,
    %207 = vector.extract_strided_slice %194 {offsets = [0, 96], sizes = [8, 16], strides = [1, 1]} : vector<8x144xbf16> to vector<8x16xbf16>
    %c48_155 = arith.constant 48 : index
    %c0_156 = arith.constant 0 : index
    %208 = vector.load %arg17[%c48_155, %c0_156] : memref<72x16xbf16, #tpu.memory_space<vmem>>, vector<8x16xbf16>
    tpu.vector_store %arg17[%c48_155, %c0_156], %207 {strides = array<i32>} : memref<72x16xbf16, #tpu.memory_space<vmem>>, vector<8x16xbf16>,
    %209 = vector.extract_strided_slice %194 {offsets = [0, 112], sizes = [8, 16], strides = [1, 1]} : vector<8x144xbf16> to vector<8x16xbf16>
    %c56_157 = arith.constant 56 : index
    %c0_158 = arith.constant 0 : index
    %210 = vector.load %arg17[%c56_157, %c0_158] : memref<72x16xbf16, #tpu.memory_space<vmem>>, vector<8x16xbf16>
    tpu.vector_store %arg17[%c56_157, %c0_158], %209 {strides = array<i32>} : memref<72x16xbf16, #tpu.memory_space<vmem>>, vector<8x16xbf16>,
    %211 = vector.extract_strided_slice %194 {offsets = [0, 128], sizes = [8, 16], strides = [1, 1]} : vector<8x144xbf16> to vector<8x16xbf16>
    %c64_159 = arith.constant 64 : index
    %c0_160 = arith.constant 0 : index
    %212 = vector.load %arg17[%c64_159, %c0_160] : memref<72x16xbf16, #tpu.memory_space<vmem>>, vector<8x16xbf16>
    tpu.vector_store %arg17[%c64_159, %c0_160], %211 {strides = array<i32>} : memref<72x16xbf16, #tpu.memory_space<vmem>>, vector<8x16xbf16>,
    %c0_161 = arith.constant 0 : index
    %c0_162 = arith.constant 0 : index
    %213 = vector.load %arg10[%c0_161, %c0_162] : memref<16x72xbf16, #tpu.memory_space<vmem>>, vector<16x72xbf16>
    %c0_163 = arith.constant 0 : index
    %c0_164 = arith.constant 0 : index
    %214 = vector.load %arg17[%c0_163, %c0_164] : memref<72x16xbf16, #tpu.memory_space<vmem>>, vector<72x16xbf16>
    %cst_165 = arith.constant dense<0.000000e+00> : vector<16x16xf32>
    %215 = tpu.matmul %213, %214, %cst_165 {dimension_numbers = #tpu.dot_dimension_numbers<[1], [0], [0], [1], [0, 0, 1, 1], [], []>} : vector<16x72xbf16>, vector<72x16xbf16>, vector<16x16xf32> -> vector<16x16xf32>
    %c0_166 = arith.constant 0 : index
    %c3 = arith.constant 3 : index
    %216 = vector.load %arg3[%c0_166, %c3] : memref<16x5xf32, #tpu.memory_space<vmem>>, vector<16x1xf32>
    %217 = vector.broadcast %216 : vector<16x1xf32> to vector<16x16xf32>
    %218 = arith.addf %215, %217 : vector<16x16xf32>
    %cst_167 = arith.constant 0.000000e+00 : f32
    %219 = vector.broadcast %cst_167 : f32 to vector<16x16xf32>
    %220 = arith.cmpf ogt, %218, %219 : vector<16x16xf32>
    %cst_168 = arith.constant 0.000000e+00 : f32
    %221 = vector.broadcast %cst_168 : f32 to vector<16x16xf32>
    %222 = arith.minimumf %218, %221 : vector<16x16xf32>
    %223 = math.exp %222 : vector<16x16xf32>
    %cst_169 = arith.constant 1.000000e+00 : f32
    %224 = vector.broadcast %cst_169 : f32 to vector<16x16xf32>
    %225 = arith.subf %223, %224 : vector<16x16xf32>
    %226 = arith.select %220, %218, %225 : vector<16x16xi1>, vector<16x16xf32>
    %c0_170 = arith.constant 0 : index
    %c0_171 = arith.constant 0 : index
    %227 = vector.load %arg12[%c0_170, %c0_171] : memref<64x320xbf16, #tpu.memory_space<vmem>>, vector<64x256xbf16>
    %c0_172 = arith.constant 0 : index
    %c256 = arith.constant 256 : index
    %228 = vector.load %arg12[%c0_172, %c256] : memref<64x320xbf16, #tpu.memory_space<vmem>>, vector<16x64xbf16>
    %229 = arith.truncf %226 : vector<16x16xf32> to vector<16x16xbf16>
    %cst_173 = arith.constant dense<0.000000e+00> : vector<16x64xf32>
    %230 = tpu.matmul %229, %228, %cst_173 {dimension_numbers = #tpu.dot_dimension_numbers<[1], [0], [0], [1], [0, 0, 1, 1], [], []>} : vector<16x16xbf16>, vector<16x64xbf16>, vector<16x64xf32> -> vector<16x64xf32>
    %231 = arith.addf %190, %230 : vector<16x64xf32>
    %232 = arith.truncf %231 : vector<16x64xf32> to vector<16x64xbf16>
    %cst_174 = arith.constant dense<0.000000e+00> : vector<16x256xf32>
    %233 = tpu.matmul %232, %227, %cst_174 {dimension_numbers = #tpu.dot_dimension_numbers<[1], [0], [0], [1], [0, 0, 1, 1], [], []>} : vector<16x64xbf16>, vector<64x256xbf16>, vector<16x256xf32> -> vector<16x256xf32>
    %234 = arith.mulf %15, %233 : vector<16x256xf32>
    %235 = vector.broadcast %20 : vector<16x1xf32> to vector<16x256xf32>
    %236 = arith.addf %234, %235 : vector<16x256xf32>
    %c0_175 = arith.constant 0 : index
    %c0_176 = arith.constant 0 : index
    %237 = vector.load %arg13[%c0_175, %c0_176] : memref<16x256xf32, #tpu.memory_space<vmem>>, vector<16x256xf32>
    tpu.vector_store %arg13[%c0_175, %c0_176], %236 {strides = array<i32>} : memref<16x256xf32, #tpu.memory_space<vmem>>, vector<16x256xf32>,
    return
  }
  func.func @transform_0(%arg0: i32) -> (i32, i32) {
    %c0_i32 = arith.constant 0 : i32
    %c0_i32_0 = arith.constant 0 : i32
    return %arg0, %c0_i32 : i32, i32
  }
  func.func @transform_1(%arg0: i32) -> (i32, i32) {
    %c0_i32 = arith.constant 0 : i32
    %c0_i32_0 = arith.constant 0 : i32
    %c0_i32_1 = arith.constant 0 : i32
    return %c0_i32, %c0_i32_0 : i32, i32
  }
  func.func @transform_2(%arg0: i32) -> (i32, i32) {
    %c0_i32 = arith.constant 0 : i32
    %c0_i32_0 = arith.constant 0 : i32
    %c0_i32_1 = arith.constant 0 : i32
    return %c0_i32, %c0_i32_0 : i32, i32
  }
  func.func @transform_3(%arg0: i32) -> (i32, i32) {
    %c0_i32 = arith.constant 0 : i32
    %c0_i32_0 = arith.constant 0 : i32
    %c0_i32_1 = arith.constant 0 : i32
    return %c0_i32, %c0_i32_0 : i32, i32
  }
  func.func @transform_4(%arg0: i32) -> (i32, i32) {
    %c0_i32 = arith.constant 0 : i32
    %c0_i32_0 = arith.constant 0 : i32
    %c0_i32_1 = arith.constant 0 : i32
    return %c0_i32, %c0_i32_0 : i32, i32
  }
  func.func @transform_5(%arg0: i32) -> (i32, i32) {
    %c0_i32 = arith.constant 0 : i32
    %c0_i32_0 = arith.constant 0 : i32
    %c0_i32_1 = arith.constant 0 : i32
    return %c0_i32, %c0_i32_0 : i32, i32
  }
  func.func @transform_6(%arg0: i32) -> (i32, i32) {
    %c0_i32 = arith.constant 0 : i32
    %c0_i32_0 = arith.constant 0 : i32
    %c0_i32_1 = arith.constant 0 : i32
    return %c0_i32, %c0_i32_0 : i32, i32
  }
  func.func @transform_7(%arg0: i32) -> (i32, i32) {
    %c0_i32 = arith.constant 0 : i32
    %c0_i32_0 = arith.constant 0 : i32
    %c0_i32_1 = arith.constant 0 : i32
    return %c0_i32, %c0_i32_0 : i32, i32
  }
  func.func @transform_8(%arg0: i32) -> (i32, i32) {
    %c0_i32 = arith.constant 0 : i32
    %c0_i32_0 = arith.constant 0 : i32
    %c0_i32_1 = arith.constant 0 : i32
    return %c0_i32, %c0_i32_0 : i32, i32
  }
  func.func @transform_9(%arg0: i32) -> (i32, i32) {
    %c0_i32 = arith.constant 0 : i32
    %c0_i32_0 = arith.constant 0 : i32
    %c0_i32_1 = arith.constant 0 : i32
    return %c0_i32, %c0_i32_0 : i32, i32
  }
  func.func @transform_10(%arg0: i32) -> (i32, i32) {
    %c0_i32 = arith.constant 0 : i32
    %c0_i32_0 = arith.constant 0 : i32
    %c0_i32_1 = arith.constant 0 : i32
    return %c0_i32, %c0_i32_0 : i32, i32
  }
  func.func @transform_11(%arg0: i32) -> (i32, i32) {
    %c0_i32 = arith.constant 0 : i32
    %c0_i32_0 = arith.constant 0 : i32
    %c0_i32_1 = arith.constant 0 : i32
    return %c0_i32, %c0_i32_0 : i32, i32
  }
  func.func @transform_12(%arg0: i32) -> (i32, i32) {
    %c0_i32 = arith.constant 0 : i32
    %c0_i32_0 = arith.constant 0 : i32
    return %arg0, %c0_i32 : i32, i32
  }
}

</mosaic_0001>

<bundles_post_ra>
// kernel: tpu_custom_call.1
= control target key start
LH: loop header
LB: loop body
LE: loop exit
PB: predicated region body
PF: predicated region fallthrough
CT: control target
= control target key end

     0   :  { %vm68_vm0 = vcmask 1043456   ;;  %vm61_vm1 = vcmask 64512   ;;  %s6967_s0 = inlined_call_operand.vmem [shape: f32[8,256], index: 0, kind: input, shape index: {}]   ;;  %s6968_s1 = inlined_call_operand.vmem [shape: bf16[32,8], index: 1, kind: input, shape index: {}]   ;;  %s6969_s2 = inlined_call_operand.vmem [shape: f32[16,5], index: 2, kind: input, shape index: {}]   ;;  %s6970_s3 = inlined_call_operand.vmem [shape: bf16[8,200], index: 3, kind: input, shape index: {}]   ;;  %s6971_s4 = inlined_call_operand.vmem [shape: bf16[256,1600], index: 4, kind: input, shape index: {}]   ;;  %s6972_s5 = inlined_call_operand.vmem [shape: bf16[8,72], index: 5, kind: input, shape index: {}]   ;;  %s6973_s6 = inlined_call_operand.vmem [shape: bf16[64,144], index: 6, kind: input, shape index: {}]   ;;  %s6974_s7 = inlined_call_operand.vmem [shape: bf16[16,200], index: 7, kind: input, shape index: {}]   ;;  %s6975_s8 = inlined_call_operand.vmem [shape: bf16[64,1600], index: 8, kind: input, shape index: {}]   ;;  %s6976_s9 = inlined_call_operand.vmem [shape: bf16[16,72], index: 9, kind: input, shape index: {}]   ;;  %s6977_s10 = inlined_call_operand.vmem [shape: bf16[16,144], index: 10, kind: input, shape index: {}]   ;;  %s6978_s11 = inlined_call_operand.vmem [shape: bf16[64,320], index: 11, kind: input, shape index: {}]   ;;  %s6979_s12 = inlined_call_operand.hbm [shape: f32[16,256], index: 12, kind: output, shape index: {}]  }
   0x1   :  { %v3623_v0 = vld [vmem:[%s6971_s4 + $0x2d8] sm:$0xf]  ;;  %v4642_v1 = vld [vmem:[%s6971_s4 + $0x308] sm:$0xf0]  ;;  %v43_v5 = vld [vmem:[%s6967_s0] sm:$0xff] }
   0x2   :  { %v4039_v2 = vld [vmem:[%s6971_s4 + $0x618] sm:$0xf]  ;;  %v3624_v3 = vor.u32 %v4642_v1, %v3623_v0  ;;  %v4746_v4 = vld [vmem:[%s6971_s4 + $0x648] sm:$0xf0]  ;;  %v5029_v8 = vpack.c.bf16 %v43_v5, %v43_v5  ;;  %v4636_v10 = vld [vmem:[%s6971_s4 + $0x2dc] sm:$0xf] }
   0x3   :  { %v44_v6 = vld [vmem:[%s6967_s0 + $0x8] sm:$0xff]  ;;  %v4040_v7 = vor.u32 %v4746_v4, %v4039_v2  ;;  %v3625_v11 = vld [vmem:[%s6971_s4 + $0x30c] sm:$0xf0]  ;;  %v4740_v12 = vld [vmem:[%s6971_s4 + $0x61c] sm:$0xf] }
   0x4   :  { %v5031_v9 = vpack.c.bf16 %v44_v6, %v44_v6  ;;  %1448 = vmatpush.bf16.msra.mxu2 %v3624_v3  ;;  %v3628_v13 = vor.u32 %v4636_v10, %v3625_v11  ;;  %v4041_v14 = vld [vmem:[%s6971_s4 + $0x64c] sm:$0xf0]  ;;  %v4629_v16 = vld [vmem:[%s6971_s4 + $0x2a0] sm:$0xf0]  ;;  %v70_v17 = vsel %vm68_vm0, %v5029_v8, 0 }
   0x5   :  { %v3571_v15 = vld [vmem:[%s6971_s4 + $0x270] sm:$0xf]  ;;  %1461 = vmatpush.bf16.msra.mxu3 %v4040_v7  ;;  %v4044_v19 = vor.u32 %v4740_v12, %v4041_v14  ;;  %v4733_v22 = vld [vmem:[%s6971_s4 + $0x5e0] sm:$0xf0]  ;;  %82 = vmatpush.bf16.msra.mxu0 %v70_v17  ;;  %v4623_v25 = vld [vmem:[%s6971_s4 + $0x274] sm:$0xf] }
   0x6   :  { %v73_v18 = vsel %vm68_vm0, %v5031_v9, 0  ;;  %v3572_v20 = vor.u32 %v4629_v16, %v3571_v15  ;;  %v3987_v21 = vld [vmem:[%s6971_s4 + $0x5b0] sm:$0xf]  ;;  %v4543_v24 = vld [vmem:[%s6968_s1] sm:$0xff]  ;;  %v3573_v26 = vld [vmem:[%s6971_s4 + $0x2a4] sm:$0xf0] }
   0x7   :  { %101 = vmatpush.bf16.msra.mxu1 %v73_v18  ;;  %v3988_v23 = vor.u32 %v4733_v22, %v3987_v21  ;;  %v3576_v27 = vor.u32 %v4623_v25, %v3573_v26  ;;  %v4727_v28 = vld [vmem:[%s6971_s4 + $0x5b4] sm:$0xf]  ;;  %v3989_v29 = vld [vmem:[%s6971_s4 + $0x5e4] sm:$0xf0]  ;;  %v4616_v32 = vld [vmem:[%s6971_s4 + $0x238] sm:$0xf0] }
   0x8   :  { %v3519_v30 = vld [vmem:[%s6971_s4 + $0x208] sm:$0xf]  ;;  %1449 = vmatpush.bf16.msra.mxu2 %v3572_v20  ;;  %v3992_v31 = vor.u32 %v4727_v28, %v3989_v29  ;;  %v4720_v34 = vld [vmem:[%s6971_s4 + $0x578] sm:$0xf0]  ;;  %3249 = vmatmul.msk.bf16.vlgmr.msra.gmra.mxu0 %vm61_vm1, %v4543_v24  ;;  %v4610_v37 = vld [vmem:[%s6971_s4 + $0x20c] sm:$0xf] }
   0x9   :  { %1474 = vmatpush.bf16.msrb.mxu0 %v3628_v13  ;;  %v3935_v33 = vld [vmem:[%s6971_s4 + $0x548] sm:$0xf]  ;;  %1462 = vmatpush.bf16.msra.mxu3 %v3988_v23  ;;  %v3520_v35 = vor.u32 %v4616_v32, %v3519_v30  ;;  %v3521_v38 = vld [vmem:[%s6971_s4 + $0x23c] sm:$0xf0]  ;;  %v4714_v39 = vld [vmem:[%s6971_s4 + $0x54c] sm:$0xf] }
   0xa   :  { %v3936_v36 = vor.u32 %v4720_v34, %v3935_v33  ;;  %3251 = vmatmul.msk.bf16.vlgmr.msra.gmra.mxu1 %vm61_vm1, %v4543_v24  ;;  %v3937_v40 = vld [vmem:[%s6971_s4 + $0x57c] sm:$0xf0]  ;;  %v4603_v42 = vld [vmem:[%s6971_s4 + $0x1d0] sm:$0xf0]  ;;  %v3524_v43 = vor.u32 %v4610_v37, %v3521_v38  ;;  %v4597_v47 = vld [vmem:[%s6971_s4 + $0x1a4] sm:$0xf] }
   0xb   :  { %1487 = vmatpush.bf16.msrb.mxu1 %v4044_v19  ;;  %v3467_v41 = vld [vmem:[%s6971_s4 + $0x1a0] sm:$0xf]  ;;  %v3940_v44 = vor.u32 %v4714_v39, %v3937_v40  ;;  %v4707_v46 = vld [vmem:[%s6971_s4 + $0x510] sm:$0xf0]  ;;  %v3469_v49 = vld [vmem:[%s6971_s4 + $0x1d4] sm:$0xf0] }
   0xc   :  { %v3883_v45 = vld [vmem:[%s6971_s4 + $0x4e0] sm:$0xf]  ;;  %1450 = vmatpush.bf16.msra.mxu2 %v3520_v35  ;;  %v3468_v48 = vor.u32 %v4603_v42, %v3467_v41  ;;  %v4701_v50 = vld [vmem:[%s6971_s4 + $0x4e4] sm:$0xf]  ;;  %v3885_v51 = vld [vmem:[%s6971_s4 + $0x514] sm:$0xf0]  ;;  %v3472_v57 = vor.u32 %v4597_v47, %v3469_v49 }
   0xd   :  { %1475 = vmatpush.bf16.msrb.mxu0 %v3576_v27  ;;  %1463 = vmatpush.bf16.msra.mxu3 %v3936_v36  ;;  %v3884_v52 = vor.u32 %v4707_v46, %v3883_v45  ;;  %v3415_v53 = vld [vmem:[%s6971_s4 + $0x138] sm:$0xf]  ;;  %v4590_v54 = vld [vmem:[%s6971_s4 + $0x168] sm:$0xf0]  ;;  %v3888_v58 = vor.u32 %v4701_v50, %v3885_v51  ;;  %v4584_v59 = vld [vmem:[%s6971_s4 + $0x13c] sm:$0xf] }
   0xe   :  { %v3831_v55 = vld [vmem:[%s6971_s4 + $0x478] sm:$0xf]  ;;  %v4694_v56 = vld [vmem:[%s6971_s4 + $0x4a8] sm:$0xf0]  ;;  %v3416_v60 = vor.u32 %v4590_v54, %v3415_v53  ;;  %v3417_v61 = vld [vmem:[%s6971_s4 + $0x16c] sm:$0xf0] }
   0xf   :  { %1488 = vmatpush.bf16.msrb.mxu1 %v3992_v31  ;;  %v4688_v62 = vld [vmem:[%s6971_s4 + $0x47c] sm:$0xf]  ;;  %v3833_v63 = vld [vmem:[%s6971_s4 + $0x4ac] sm:$0xf0]  ;;  %v3832_v0 = vor.u32 %v4694_v56, %v3831_v55  ;;  %v4577_v2 = vld [vmem:[%s6971_s4 + $0x100] sm:$0xf0]  ;;  %v3420_v5 = vor.u32 %v4584_v59, %v3417_v61 }
  0x10   :  { %1451 = vmatpush.bf16.msra.mxu2 %v3468_v48  ;;  %v3363_v1 = vld [vmem:[%s6971_s4 + $0xd0] sm:$0xf]  ;;  %v4681_v4 = vld [vmem:[%s6971_s4 + $0x440] sm:$0xf0]  ;;  %v3836_v6 = vor.u32 %v4688_v62, %v3833_v63  ;;  %v4571_v7 = vld [vmem:[%s6971_s4 + $0xd4] sm:$0xf] }
  0x11   :  { %1476 = vmatpush.bf16.msrb.mxu0 %v3524_v43  ;;  %1464 = vmatpush.bf16.msra.mxu3 %v3884_v52  ;;  %v3779_v3 = vld [vmem:[%s6971_s4 + $0x410] sm:$0xf]  ;;  %v3364_v10 = vor.u32 %v4577_v2, %v3363_v1  ;;  %v3365_v11 = vld [vmem:[%s6971_s4 + $0x104] sm:$0xf0]  ;;  %v4675_v12 = vld [vmem:[%s6971_s4 + $0x414] sm:$0xf] }
  0x12   :  { %v3781_v13 = vld [vmem:[%s6971_s4 + $0x444] sm:$0xf0]  ;;  %v3780_v14 = vor.u32 %v4681_v4, %v3779_v3  ;;  %v4564_v17 = vld [vmem:[%s6971_s4 + $0x98] sm:$0xf0]  ;;  %v3368_v20 = vor.u32 %v4571_v7, %v3365_v11  ;;  %v4558_v22 = vld [vmem:[%s6971_s4 + $0x6c] sm:$0xf] }
  0x13   :  { %1489 = vmatpush.bf16.msrb.mxu1 %v3940_v44  ;;  %v4544_v15 = vld [vmem:[%s6968_s1 + $0x8] sm:$0xff]  ;;  %v4668_v19 = vld [vmem:[%s6971_s4 + $0x3d8] sm:$0xf0]  ;;  %v3784_v21 = vor.u32 %v4675_v12, %v3781_v13  ;;  %v3313_v24 = vld [vmem:[%s6971_s4 + $0x9c] sm:$0xf0] }
  0x14   :  { %1452 = vmatpush.bf16.msra.mxu2 %v3416_v60  ;;  %v3311_v16 = vld [vmem:[%s6971_s4 + $0x68] sm:$0xf]  ;;  %v4662_v25 = vld [vmem:[%s6971_s4 + $0x3ac] sm:$0xf]  ;;  %v3729_v26 = vld [vmem:[%s6971_s4 + $0x3dc] sm:$0xf0]  ;;  %v3316_v34 = vor.u32 %v4558_v22, %v3313_v24 }
  0x15   :  { %1477 = vmatpush.bf16.msrb.mxu0 %v3472_v57  ;;  %1465 = vmatpush.bf16.msra.mxu3 %v3832_v0  ;;  %v3727_v18 = vld [vmem:[%s6971_s4 + $0x3a8] sm:$0xf]  ;;  %v3312_v23 = vor.u32 %v4564_v17, %v3311_v16  ;;  %v3259_v28 = vld [vmem:[%s6971_s4] sm:$0xf]  ;;  %v4551_v29 = vld [vmem:[%s6971_s4 + $0x30] sm:$0xf0]  ;;  %v3732_v35 = vor.u32 %v4662_v25, %v3729_v26 }
  0x16   :  { %v3728_v27 = vor.u32 %v4668_v19, %v3727_v18  ;;  %v3675_v30 = vld [vmem:[%s6971_s4 + $0x340] sm:$0xf]  ;;  %v4655_v31 = vld [vmem:[%s6971_s4 + $0x370] sm:$0xf0]  ;;  %v4545_v38 = vld [vmem:[%s6971_s4 + $0x4] sm:$0xf]  ;;  %v3260_v39 = vor.u32 %v4551_v29, %v3259_v28 }
  0x17   :  { %1490 = vmatpush.bf16.msrb.mxu1 %v3888_v58  ;;  %v3631_v32 = vld [vmem:[%s6971_s4 + $0x2e0] sm:$0xf]  ;;  %v4643_v33 = vld [vmem:[%s6971_s4 + $0x310] sm:$0xf0]  ;;  %v3261_v40 = vld [vmem:[%s6971_s4 + $0x34] sm:$0xf0]  ;;  %v3676_v43 = vor.u32 %v4655_v31, %v3675_v30 }
  0x18   :  { %1453 = vmatpush.bf16.msra.mxu2 %v3364_v10  ;;  %3250 = vmatmul.msk.bf16.gmra.mxu0 %vm61_vm1, %v4544_v15  ;;  %v4047_v36 = vld [vmem:[%s6971_s4 + $0x620] sm:$0xf]  ;;  %v4747_v37 = vld [vmem:[%s6971_s4 + $0x650] sm:$0xf0]  ;;  %v4649_v41 = vld [vmem:[%s6971_s4 + $0x344] sm:$0xf]  ;;  %v3632_v44 = vor.u32 %v4643_v33, %v3631_v32  ;;  %v3264_v51 = vor.u32 %v4545_v38, %v3261_v40 }
  0x19   :  { %1478 = vmatpush.bf16.msrb.mxu0 %v3420_v5  ;;  %1466 = vmatpush.bf16.msra.mxu3 %v3780_v14  ;;  %v3677_v42 = vld [vmem:[%s6971_s4 + $0x374] sm:$0xf0]  ;;  %v4637_v45 = vld [vmem:[%s6971_s4 + $0x2e4] sm:$0xf]  ;;  %v4048_v47 = vor.u32 %v4747_v37, %v4047_v36  ;;  %v4630_v53 = vld [vmem:[%s6971_s4 + $0x2a8] sm:$0xf0] }
  0x1a   :  { %3252 = vmatmul.msk.bf16.gmra.mxu1 %vm61_vm1, %v4544_v15  ;;  %v3633_v46 = vld [vmem:[%s6971_s4 + $0x314] sm:$0xf0]  ;;  %v4741_v48 = vld [vmem:[%s6971_s4 + $0x624] sm:$0xf]  ;;  %v3680_v52 = vor.u32 %v4649_v41, %v3677_v42  ;;  %v4734_v55 = vld [vmem:[%s6971_s4 + $0x5e8] sm:$0xf0] }
  0x1b   :  { %1491 = vmatpush.bf16.msrb.mxu1 %v3836_v6  ;;  %v4049_v49 = vld [vmem:[%s6971_s4 + $0x654] sm:$0xf0]  ;;  %v3636_v56 = vor.u32 %v4637_v45, %v3633_v46  ;;  %v4624_v58 = vld [vmem:[%s6971_s4 + $0x27c] sm:$0xf]  ;;  %v3581_v61 = vld [vmem:[%s6971_s4 + $0x2ac] sm:$0xf0] }
  0x1c   :  { %1454 = vmatpush.bf16.msra.mxu2 %v3312_v23  ;;  %v3579_v50 = vld [vmem:[%s6971_s4 + $0x278] sm:$0xf]  ;;  %v4052_v57 = vor.u32 %v4741_v48, %v4049_v49  ;;  %v4728_v62 = vld [vmem:[%s6971_s4 + $0x5bc] sm:$0xf]  ;;  %v3997_v63 = vld [vmem:[%s6971_s4 + $0x5ec] sm:$0xf0]  ;;  %v3584_v4 = vor.u32 %v4624_v58, %v3581_v61 }
  0x1d   :  { %1479 = vmatpush.bf16.msrb.mxu0 %v3368_v20  ;;  %1467 = vmatpush.bf16.msra.mxu3 %v3728_v27  ;;  %v3995_v54 = vld [vmem:[%s6971_s4 + $0x5b8] sm:$0xf]  ;;  %v3580_v59 = vor.u32 %v4630_v53, %v3579_v50  ;;  %v3527_v0 = vld [vmem:[%s6971_s4 + $0x210] sm:$0xf]  ;;  %v4617_v1 = vld [vmem:[%s6971_s4 + $0x240] sm:$0xf0]  ;;  %v4000_v5 = vor.u32 %v4728_v62, %v3997_v63 }
  0x1e   :  { %v3996_v60 = vor.u32 %v4734_v55, %v3995_v54  ;;  %v3943_v2 = vld [vmem:[%s6971_s4 + $0x550] sm:$0xf]  ;;  %v4721_v3 = vld [vmem:[%s6971_s4 + $0x580] sm:$0xf0]  ;;  %v4611_v6 = vld [vmem:[%s6971_s4 + $0x214] sm:$0xf]  ;;  %v3528_v12 = vor.u32 %v4617_v1, %v3527_v0 }
  0x1f   :  { %1492 = vmatpush.bf16.msrb.mxu1 %v3784_v21  ;;  %v3529_v7 = vld [vmem:[%s6971_s4 + $0x244] sm:$0xf0]  ;;  %v4715_v10 = vld [vmem:[%s6971_s4 + $0x554] sm:$0xf]  ;;  %v3944_v13 = vor.u32 %v4721_v3, %v3943_v2  ;;  %v4604_v15 = vld [vmem:[%s6971_s4 + $0x1d8] sm:$0xf0] }
  0x20   :  { %1455 = vmatpush.bf16.msra.mxu2 %v3260_v39  ;;  %v3945_v11 = vld [vmem:[%s6971_s4 + $0x584] sm:$0xf0]  ;;  %v4708_v17 = vld [vmem:[%s6971_s4 + $0x518] sm:$0xf0]  ;;  %v3532_v18 = vor.u32 %v4611_v6, %v3529_v7  ;;  %v4598_v20 = vld [vmem:[%s6971_s4 + $0x1ac] sm:$0xf] }
  0x21   :  { %1480 = vmatpush.bf16.msrb.mxu0 %v3316_v34  ;;  %1468 = vmatpush.bf16.msra.mxu3 %v3676_v43  ;;  %v3475_v14 = vld [vmem:[%s6971_s4 + $0x1a8] sm:$0xf]  ;;  %v3948_v19 = vor.u32 %v4715_v10, %v3945_v11  ;;  %v3477_v21 = vld [vmem:[%s6971_s4 + $0x1dc] sm:$0xf0]  ;;  %v4702_v22 = vld [vmem:[%s6971_s4 + $0x4ec] sm:$0xf] }
  0x22   :  { %v3891_v16 = vld [vmem:[%s6971_s4 + $0x4e8] sm:$0xf]  ;;  %v3893_v23 = vld [vmem:[%s6971_s4 + $0x51c] sm:$0xf0]  ;;  %v3476_v24 = vor.u32 %v4604_v15, %v3475_v14  ;;  %v4591_v27 = vld [vmem:[%s6971_s4 + $0x170] sm:$0xf0]  ;;  %v3480_v30 = vor.u32 %v4598_v20, %v3477_v21 }
  0x23   :  { %1493 = vmatpush.bf16.msrb.mxu1 %v3732_v35  ;;  %1456 = vmatmul.bf16.vlgmr.msra.gmra.mxu2 %v5029_v8  ;;  %v3892_v25 = vor.u32 %v4708_v17, %v3891_v16  ;;  %v3423_v26 = vld [vmem:[%s6971_s4 + $0x140] sm:$0xf]  ;;  %v4695_v29 = vld [vmem:[%s6971_s4 + $0x4b0] sm:$0xf0]  ;;  %v3896_v31 = vor.u32 %v4702_v22, %v3893_v23  ;;  %v4585_v32 = vld [vmem:[%s6971_s4 + $0x144] sm:$0xf] }
  0x24   :  { %1500 = vmatpush.bf16.msrb.mxu2 %v3632_v44  ;;  %1469 = vmatmul.bf16.vlgmr.msra.gmra.mxu3 %v5031_v9  ;;  %v3839_v28 = vld [vmem:[%s6971_s4 + $0x480] sm:$0xf]  ;;  %v3425_v33 = vld [vmem:[%s6971_s4 + $0x174] sm:$0xf0]  ;;  %v4689_v34 = vld [vmem:[%s6971_s4 + $0x484] sm:$0xf]  ;;  %v3424_v36 = vor.u32 %v4591_v27, %v3423_v26 }
  0x25   :  { %1513 = vmatpush.bf16.msrb.mxu3 %v4048_v47  ;;  %1481 = vmatpush.bf16.msrb.mxu0 %v3264_v51  ;;  %v3841_v35 = vld [vmem:[%s6971_s4 + $0x4b4] sm:$0xf0]  ;;  %v3840_v37 = vor.u32 %v4695_v29, %v3839_v28  ;;  %v4578_v39 = vld [vmem:[%s6971_s4 + $0x108] sm:$0xf0]  ;;  %v3428_v42 = vor.u32 %v4585_v32, %v3425_v33  ;;  %v4572_v44 = vld [vmem:[%s6971_s4 + $0xdc] sm:$0xf] }
  0x26   :  { %v3371_v38 = vld [vmem:[%s6971_s4 + $0xd8] sm:$0xf]  ;;  %v4682_v41 = vld [vmem:[%s6971_s4 + $0x448] sm:$0xf0]  ;;  %v3844_v43 = vor.u32 %v4689_v34, %v3841_v35  ;;  %v3373_v45 = vld [vmem:[%s6971_s4 + $0x10c] sm:$0xf0] }
  0x27   :  { %1494 = vmatpush.bf16.msrb.mxu1 %v3680_v52  ;;  %v3787_v40 = vld [vmem:[%s6971_s4 + $0x418] sm:$0xf]  ;;  %v4676_v46 = vld [vmem:[%s6971_s4 + $0x41c] sm:$0xf]  ;;  %v3789_v47 = vld [vmem:[%s6971_s4 + $0x44c] sm:$0xf0]  ;;  %v3372_v48 = vor.u32 %v4578_v39, %v3371_v38  ;;  %v3376_v54 = vor.u32 %v4572_v44, %v3373_v45 }
  0x28   :  { %1501 = vmatpush.bf16.msrb.mxu2 %v3580_v59  ;;  %1482 = vmatmul.bf16.vlgmr.msrb.gmra.mxu0 %v5029_v8  ;;  %v3788_v49 = vor.u32 %v4682_v41, %v3787_v40  ;;  %v3319_v50 = vld [vmem:[%s6971_s4 + $0x70] sm:$0xf]  ;;  %v4565_v51 = vld [vmem:[%s6971_s4 + $0xa0] sm:$0xf0]  ;;  %v3792_v55 = vor.u32 %v4676_v46, %v3789_v47  ;;  %v4663_v58 = vld [vmem:[%s6971_s4 + $0x3b4] sm:$0xf] }
  0x29   :  { %1526 = vmatpush.bf16.msra.mxu0 %v3636_v56  ;;  %1514 = vmatpush.bf16.msrb.mxu3 %v3996_v60  ;;  %v3735_v52 = vld [vmem:[%s6971_s4 + $0x3b0] sm:$0xf]  ;;  %v4669_v53 = vld [vmem:[%s6971_s4 + $0x3e0] sm:$0xf0]  ;;  %v4559_v56 = vld [vmem:[%s6971_s4 + $0x74] sm:$0xf]  ;;  %v3320_v60 = vor.u32 %v4565_v51, %v3319_v50 }
  0x2a   :  { %1495 = vmatmul.bf16.vlgmr.msrb.gmra.mxu1 %v5031_v9  ;;  %v3737_v59 = vld [vmem:[%s6971_s4 + $0x3e4] sm:$0xf0]  ;;  %v3736_v61 = vor.u32 %v4669_v53, %v3735_v52  ;;  %v4552_v63 = vld [vmem:[%s6971_s4 + $0x38] sm:$0xf0]  ;;  %v4546_v10 = vld [vmem:[%s6971_s4 + $0xc] sm:$0xf] }
  0x2b   :  { %1539 = vmatpush.bf16.msra.mxu1 %v4052_v57  ;;  %v3321_v57 = vld [vmem:[%s6971_s4 + $0xa4] sm:$0xf0]  ;;  %v4656_v1 = vld [vmem:[%s6971_s4 + $0x378] sm:$0xf0]  ;;  %v3269_v11 = vld [vmem:[%s6971_s4 + $0x3c] sm:$0xf0] }
  0x2c   :  { %1502 = vmatpush.bf16.msrb.mxu2 %v3528_v12  ;;  %v3267_v62 = vld [vmem:[%s6971_s4 + $0x8] sm:$0xf]  ;;  %v4644_v3 = vld [vmem:[%s6971_s4 + $0x318] sm:$0xf0]  ;;  %v4650_v12 = vld [vmem:[%s6971_s4 + $0x34c] sm:$0xf]  ;;  %v3272_v23 = vor.u32 %v4546_v10, %v3269_v11 }
  0x2d   :  { %1527 = vmatpush.bf16.msra.mxu0 %v3584_v4  ;;  %1515 = vmatpush.bf16.msrb.mxu3 %v3944_v13  ;;  %v3683_v0 = vld [vmem:[%s6971_s4 + $0x348] sm:$0xf]  ;;  %v3324_v4 = vor.u32 %v4559_v56, %v3321_v57  ;;  %v4748_v7 = vld [vmem:[%s6971_s4 + $0x658] sm:$0xf0]  ;;  %v3685_v13 = vld [vmem:[%s6971_s4 + $0x37c] sm:$0xf0]  ;;  %v3268_v14 = vor.u32 %v4552_v63, %v3267_v62 }
  0x2e   :  { %v3639_v2 = vld [vmem:[%s6971_s4 + $0x2e8] sm:$0xf]  ;;  %v3684_v15 = vor.u32 %v4656_v1, %v3683_v0  ;;  %v4638_v16 = vld [vmem:[%s6971_s4 + $0x2ec] sm:$0xf]  ;;  %v3641_v17 = vld [vmem:[%s6971_s4 + $0x31c] sm:$0xf0] }
  0x2f   :  { %1540 = vmatpush.bf16.msra.mxu1 %v4000_v5  ;;  %v3740_v5 = vor.u32 %v4663_v58, %v3737_v59  ;;  %v4055_v6 = vld [vmem:[%s6971_s4 + $0x628] sm:$0xf]  ;;  %v4742_v20 = vld [vmem:[%s6971_s4 + $0x62c] sm:$0xf]  ;;  %v4057_v21 = vld [vmem:[%s6971_s4 + $0x65c] sm:$0xf0]  ;;  %v3644_v28 = vor.u32 %v4638_v16, %v3641_v17 }
  0x30   :  { %1503 = vmatpush.bf16.msrb.mxu2 %v3476_v24  ;;  %v3587_v22 = vld [vmem:[%s6971_s4 + $0x280] sm:$0xf]  ;;  %v3688_v24 = vor.u32 %v4650_v12, %v3685_v13  ;;  %v4735_v27 = vld [vmem:[%s6971_s4 + $0x5f0] sm:$0xf0]  ;;  %v4060_v29 = vor.u32 %v4742_v20, %v4057_v21  ;;  %v4729_v34 = vld [vmem:[%s6971_s4 + $0x5c4] sm:$0xf] }
  0x31   :  { %1528 = vmatpush.bf16.msra.mxu0 %v3532_v18  ;;  %1516 = vmatpush.bf16.msrb.mxu3 %v3892_v25  ;;  %v3640_v18 = vor.u32 %v4644_v3, %v3639_v2  ;;  %v4631_v25 = vld [vmem:[%s6971_s4 + $0x2b0] sm:$0xf0]  ;;  %v4003_v26 = vld [vmem:[%s6971_s4 + $0x5c0] sm:$0xf]  ;;  %v4005_v35 = vld [vmem:[%s6971_s4 + $0x5f4] sm:$0xf0] }
  0x32   :  { %v3588_v32 = vor.u32 %v4631_v25, %v3587_v22  ;;  %v4004_v33 = vor.u32 %v4735_v27, %v4003_v26  ;;  %v3951_v38 = vld [vmem:[%s6971_s4 + $0x558] sm:$0xf]  ;;  %v4722_v39 = vld [vmem:[%s6971_s4 + $0x588] sm:$0xf0]  ;;  %v4008_v41 = vor.u32 %v4729_v34, %v4005_v35  ;;  %v4716_v46 = vld [vmem:[%s6971_s4 + $0x55c] sm:$0xf] }
  0x33   :  { %1541 = vmatpush.bf16.msra.mxu1 %v3948_v19  ;;  %v4056_v19 = vor.u32 %v4748_v7, %v4055_v6  ;;  %v3952_v45 = vor.u32 %v4722_v39, %v3951_v38  ;;  %v3953_v47 = vld [vmem:[%s6971_s4 + $0x58c] sm:$0xf0]  ;;  %v4709_v51 = vld [vmem:[%s6971_s4 + $0x520] sm:$0xf0]  ;;  %v4703_v58 = vld [vmem:[%s6971_s4 + $0x4f4] sm:$0xf] }
  0x34   :  { %1504 = vmatpush.bf16.msrb.mxu2 %v3424_v36  ;;  %v3535_v36 = vld [vmem:[%s6971_s4 + $0x218] sm:$0xf]  ;;  %v3899_v50 = vld [vmem:[%s6971_s4 + $0x4f0] sm:$0xf]  ;;  %v3956_v53 = vor.u32 %v4716_v46, %v3953_v47  ;;  %v3901_v59 = vld [vmem:[%s6971_s4 + $0x524] sm:$0xf0] }
  0x35   :  { %1529 = vmatpush.bf16.msra.mxu0 %v3480_v30  ;;  %1517 = vmatpush.bf16.msrb.mxu3 %v3840_v37  ;;  %v4625_v30 = vld [vmem:[%s6971_s4 + $0x284] sm:$0xf]  ;;  %v4618_v37 = vld [vmem:[%s6971_s4 + $0x248] sm:$0xf0]  ;;  %v3900_v57 = vor.u32 %v4709_v51, %v3899_v50  ;;  %v3847_v62 = vld [vmem:[%s6971_s4 + $0x488] sm:$0xf]  ;;  %v3904_v1 = vor.u32 %v4703_v58, %v3901_v59 }
  0x36   :  { %v3536_v44 = vor.u32 %v4618_v37, %v3535_v36  ;;  %v4696_v63 = vld [vmem:[%s6971_s4 + $0x4b8] sm:$0xf0]  ;;  %v4586_v2 = vld [vmem:[%s6971_s4 + $0x14c] sm:$0xf]  ;;  %v3433_v3 = vld [vmem:[%s6971_s4 + $0x17c] sm:$0xf0] }
  0x37   :  { %1542 = vmatpush.bf16.msra.mxu1 %v3896_v31  ;;  %v3589_v31 = vld [vmem:[%s6971_s4 + $0x2b4] sm:$0xf0]  ;;  %v4690_v6 = vld [vmem:[%s6971_s4 + $0x48c] sm:$0xf]  ;;  %v3849_v7 = vld [vmem:[%s6971_s4 + $0x4bc] sm:$0xf0] }
  0x38   :  { %1505 = vmatpush.bf16.msrb.mxu2 %v3372_v48  ;;  %v3592_v40 = vor.u32 %v4625_v30, %v3589_v31  ;;  %v3483_v48 = vld [vmem:[%s6971_s4 + $0x1b0] sm:$0xf]  ;;  %v3379_v10 = vld [vmem:[%s6971_s4 + $0xe0] sm:$0xf]  ;;  %v4579_v11 = vld [vmem:[%s6971_s4 + $0x110] sm:$0xf0] }
  0x39   :  { %1530 = vmatpush.bf16.msra.mxu0 %v3428_v42  ;;  %1518 = vmatpush.bf16.msrb.mxu3 %v3788_v49  ;;  %v4612_v42 = vld [vmem:[%s6971_s4 + $0x21c] sm:$0xf]  ;;  %v4605_v49 = vld [vmem:[%s6971_s4 + $0x1e0] sm:$0xf0]  ;;  %v3795_v12 = vld [vmem:[%s6971_s4 + $0x420] sm:$0xf] }
  0x3a   :  { %v3484_v56 = vor.u32 %v4605_v49, %v3483_v48  ;;  %v4683_v13 = vld [vmem:[%s6971_s4 + $0x450] sm:$0xf0]  ;;  %v4573_v16 = vld [vmem:[%s6971_s4 + $0xe4] sm:$0xf]  ;;  %v3381_v17 = vld [vmem:[%s6971_s4 + $0x114] sm:$0xf0] }
  0x3b   :  { %1543 = vmatpush.bf16.msra.mxu1 %v3844_v43  ;;  %v3537_v43 = vld [vmem:[%s6971_s4 + $0x24c] sm:$0xf0]  ;;  %v4677_v20 = vld [vmem:[%s6971_s4 + $0x424] sm:$0xf]  ;;  %v3797_v21 = vld [vmem:[%s6971_s4 + $0x454] sm:$0xf0]  ;;  %v3384_v27 = vor.u32 %v4573_v16, %v3381_v17 }
  0x3c   :  { %1506 = vmatpush.bf16.msrb.mxu2 %v3320_v60  ;;  %v3540_v52 = vor.u32 %v4612_v42, %v3537_v43  ;;  %v3431_v60 = vld [vmem:[%s6971_s4 + $0x148] sm:$0xf]  ;;  %v3327_v22 = vld [vmem:[%s6971_s4 + $0x78] sm:$0xf]  ;;  %v4670_v25 = vld [vmem:[%s6971_s4 + $0x3e8] sm:$0xf0] }
  0x3d   :  { %1531 = vmatpush.bf16.msra.mxu0 %v3376_v54  ;;  %1519 = vmatpush.bf16.msrb.mxu3 %v3736_v61  ;;  %v4599_v54 = vld [vmem:[%s6971_s4 + $0x1b4] sm:$0xf]  ;;  %v4592_v61 = vld [vmem:[%s6971_s4 + $0x178] sm:$0xf0]  ;;  %v3745_v31 = vld [vmem:[%s6971_s4 + $0x3ec] sm:$0xf0] }
  0x3e   :  { %v4560_v26 = vld [vmem:[%s6971_s4 + $0x7c] sm:$0xf]  ;;  %v3275_v34 = vld [vmem:[%s6971_s4 + $0x10] sm:$0xf]  ;;  %v4553_v35 = vld [vmem:[%s6971_s4 + $0x40] sm:$0xf0] }
  0x3f   :  { %1544 = vmatpush.bf16.msra.mxu1 %v3792_v55  ;;  %v3485_v55 = vld [vmem:[%s6971_s4 + $0x1e4] sm:$0xf0]  ;;  %v4664_v30 = vld [vmem:[%s6971_s4 + $0x3bc] sm:$0xf] }
  0x40   :  { %1507 = vmatpush.bf16.msrb.mxu2 %v3268_v14  ;;  %v3488_v0 = vor.u32 %v4599_v54, %v3485_v55  ;;  %v3436_v14 = vor.u32 %v4586_v2, %v3433_v3 }
  0x41   :  { %1532 = vmatpush.bf16.msra.mxu0 %v3324_v4  ;;  %1520 = vmatpush.bf16.msrb.mxu3 %v3684_v15  ;;  %v3432_v4 = vor.u32 %v4592_v61, %v3431_v60  ;;  %v3852_v15 = vor.u32 %v4690_v6, %v3849_v7 }
  0x43   :  { %1545 = vmatpush.bf16.msra.mxu1 %v3740_v5  ;;  %1508 = vmatmul.bf16.vlgmr.msrb.gmra.mxu2 %v5029_v8  ;;  %v3848_v5 = vor.u32 %v4696_v63, %v3847_v62 }
  0x44   :  { %1552 = vmatpush.bf16.msra.mxu2 %v3640_v18  ;;  %1521 = vmatmul.bf16.vlgmr.msrb.gmra.mxu3 %v5031_v9  ;;  %v3380_v18 = vor.u32 %v4579_v11, %v3379_v10 }
  0x45   :  { %1565 = vmatpush.bf16.msra.mxu3 %v4056_v19  ;;  %1533 = vmatpush.bf16.msra.mxu0 %v3272_v23  ;;  %v3796_v19 = vor.u32 %v4683_v13, %v3795_v12  ;;  %v4566_v23 = vld [vmem:[%s6971_s4 + $0xa8] sm:$0xf0] }
  0x47   :  { %1546 = vmatpush.bf16.msra.mxu1 %v3688_v24  ;;  %v3743_v24 = vld [vmem:[%s6971_s4 + $0x3b8] sm:$0xf] }
  0x48   :  { %1553 = vmatpush.bf16.msra.mxu2 %v3588_v32  ;;  %1534 = vmatmul.bf16.vlgmr.msra.gmra.mxu0 %v5029_v8  ;;  %v3328_v32 = vor.u32 %v4566_v23, %v3327_v22 }
  0x49   :  { %1578 = vmatpush.bf16.msrb.mxu0 %v3644_v28  ;;  %1566 = vmatpush.bf16.msra.mxu3 %v4004_v33  ;;  %v3800_v28 = vor.u32 %v4677_v20, %v3797_v21  ;;  %v3744_v33 = vor.u32 %v4670_v25, %v3743_v24 }
  0x4a   :  { %1547 = vmatmul.bf16.vlgmr.msra.gmra.mxu1 %v5031_v9 }
  0x4b   :  { %1591 = vmatpush.bf16.msrb.mxu1 %v4060_v29  ;;  %v3329_v29 = vld [vmem:[%s6971_s4 + $0xac] sm:$0xf0] }
  0x4c   :  { %1554 = vmatpush.bf16.msra.mxu2 %v3536_v44 }
  0x4d   :  { %1579 = vmatpush.bf16.msrb.mxu0 %v3592_v40  ;;  %1567 = vmatpush.bf16.msra.mxu3 %v3952_v45 }
  0x4f   :  { %1592 = vmatpush.bf16.msrb.mxu1 %v4008_v41 }
  0x50   :  { %1555 = vmatpush.bf16.msra.mxu2 %v3484_v56 }
  0x51   :  { %1580 = vmatpush.bf16.msrb.mxu0 %v3540_v52  ;;  %1568 = vmatpush.bf16.msra.mxu3 %v3900_v57 }
  0x53   :  { %1593 = vmatpush.bf16.msrb.mxu1 %v3956_v53 }
  0x54   :  { %1556 = vmatpush.bf16.msra.mxu2 %v3432_v4 }
  0x55   :  { %1581 = vmatpush.bf16.msrb.mxu0 %v3488_v0  ;;  %1569 = vmatpush.bf16.msra.mxu3 %v3848_v5 }
  0x57   :  { %1594 = vmatpush.bf16.msrb.mxu1 %v3904_v1 }
  0x58   :  { %1557 = vmatpush.bf16.msra.mxu2 %v3380_v18 }
  0x59   :  { %1582 = vmatpush.bf16.msrb.mxu0 %v3436_v14  ;;  %1570 = vmatpush.bf16.msra.mxu3 %v3796_v19 }
  0x5b   :  { %1595 = vmatpush.bf16.msrb.mxu1 %v3852_v15 }
  0x5c   :  { %17 = vsyncpa [#allocation7], 0  ;;  %v3691_v36 = vld [vmem:[%s6971_s4 + $0x350] sm:$0xf]  ;;  %v4657_v37 = vld [vmem:[%s6971_s4 + $0x380] sm:$0xf0]  ;;  %v3332_v42 = vor.u32 %v4560_v26, %v3329_v29  ;;  %v3748_v43 = vor.u32 %v4664_v30, %v3745_v31  ;;  %1558 = vmatpush.bf16.msra.mxu2 %v3328_v32  ;;  %v3276_v47 = vor.u32 %v4553_v35, %v3275_v34 }
  0x5d   :  { %v3647_v38 = vld [vmem:[%s6971_s4 + $0x2f0] sm:$0xf]  ;;  %v4645_v39 = vld [vmem:[%s6971_s4 + $0x320] sm:$0xf0]  ;;  %1583 = vmatpush.bf16.msrb.mxu0 %v3384_v27  ;;  %v4547_v44 = vld [vmem:[%s6971_s4 + $0x14] sm:$0xf]  ;;  %1571 = vmatpush.bf16.msra.mxu3 %v3744_v33  ;;  %v3692_v48 = vor.u32 %v4657_v37, %v3691_v36 }
  0x5e   :  { %v4063_v40 = vld [vmem:[%s6971_s4 + $0x630] sm:$0xf]  ;;  %v4749_v41 = vld [vmem:[%s6971_s4 + $0x660] sm:$0xf0]  ;;  %v3277_v45 = vld [vmem:[%s6971_s4 + $0x44] sm:$0xf0]  ;;  %v3648_v52 = vor.u32 %v4645_v39, %v3647_v38 }
  0x5f   :  { %1596 = vmatpush.bf16.msrb.mxu1 %v3800_v28  ;;  %v4651_v46 = vld [vmem:[%s6971_s4 + $0x354] sm:$0xf]  ;;  %v3693_v49 = vld [vmem:[%s6971_s4 + $0x384] sm:$0xf0]  ;;  %v4064_v53 = vor.u32 %v4749_v41, %v4063_v40  ;;  %v4632_v57 = vld [vmem:[%s6971_s4 + $0x2b8] sm:$0xf0]  ;;  %v3280_v60 = vor.u32 %v4547_v44, %v3277_v45 }
  0x60   :  { %v4639_v50 = vld [vmem:[%s6971_s4 + $0x2f4] sm:$0xf]  ;;  %v3649_v51 = vld [vmem:[%s6971_s4 + $0x324] sm:$0xf0]  ;;  %v4736_v59 = vld [vmem:[%s6971_s4 + $0x5f8] sm:$0xf0]  ;;  %v3696_v61 = vor.u32 %v4651_v46, %v3693_v49  ;;  %1559 = vmatpush.bf16.msra.mxu2 %v3276_v47 }
  0x61   :  { %v4743_v54 = vld [vmem:[%s6971_s4 + $0x634] sm:$0xf]  ;;  %v4065_v55 = vld [vmem:[%s6971_s4 + $0x664] sm:$0xf0]  ;;  %1584 = vmatpush.bf16.msrb.mxu0 %v3332_v42  ;;  %1572 = vmatpush.bf16.msra.mxu3 %v3692_v48  ;;  %v3652_v62 = vor.u32 %v4639_v50, %v3649_v51  ;;  %v4626_v0 = vld [vmem:[%s6971_s4 + $0x28c] sm:$0xf] }
  0x62   :  { %v3595_v56 = vld [vmem:[%s6971_s4 + $0x288] sm:$0xf]  ;;  %v4068_v63 = vor.u32 %v4743_v54, %v4065_v55  ;;  %v3597_v1 = vld [vmem:[%s6971_s4 + $0x2bc] sm:$0xf0]  ;;  %v4730_v4 = vld [vmem:[%s6971_s4 + $0x5cc] sm:$0xf] }
  0x63   :  { %v4011_v58 = vld [vmem:[%s6971_s4 + $0x5c8] sm:$0xf]  ;;  %1597 = vmatpush.bf16.msrb.mxu1 %v3748_v43  ;;  %v3596_v2 = vor.u32 %v4632_v57, %v3595_v56  ;;  %v4013_v5 = vld [vmem:[%s6971_s4 + $0x5fc] sm:$0xf0]  ;;  %v4619_v7 = vld [vmem:[%s6971_s4 + $0x250] sm:$0xf0]  ;;  %v3600_v12 = vor.u32 %v4626_v0, %v3597_v1  ;;  %1560 = vmatmul.bf16.vlgmr.msra.gmra.mxu2 %v5029_v8 }
  0x64   :  { %1604 = vmatpush.bf16.msrb.mxu2 %v3648_v52  ;;  %v4012_v3 = vor.u32 %v4736_v59, %v4011_v58  ;;  %v3543_v6 = vld [vmem:[%s6971_s4 + $0x220] sm:$0xf]  ;;  %v4723_v11 = vld [vmem:[%s6971_s4 + $0x590] sm:$0xf0]  ;;  %v4016_v13 = vor.u32 %v4730_v4, %v4013_v5  ;;  %v4613_v14 = vld [vmem:[%s6971_s4 + $0x224] sm:$0xf]  ;;  %1573 = vmatmul.bf16.vlgmr.msra.gmra.mxu3 %v5031_v9 }
  0x65   :  { %1617 = vmatpush.bf16.msrb.mxu3 %v4064_v53  ;;  %v3959_v10 = vld [vmem:[%s6971_s4 + $0x560] sm:$0xf]  ;;  %1585 = vmatpush.bf16.msrb.mxu0 %v3280_v60  ;;  %v3545_v15 = vld [vmem:[%s6971_s4 + $0x254] sm:$0xf0]  ;;  %v3544_v16 = vor.u32 %v4619_v7, %v3543_v6  ;;  %v4717_v18 = vld [vmem:[%s6971_s4 + $0x564] sm:$0xf] }
  0x66   :  { %v3960_v17 = vor.u32 %v4723_v11, %v3959_v10  ;;  %v3961_v19 = vld [vmem:[%s6971_s4 + $0x594] sm:$0xf0]  ;;  %v4606_v21 = vld [vmem:[%s6971_s4 + $0x1e8] sm:$0xf0]  ;;  %v3548_v24 = vor.u32 %v4613_v14, %v3545_v15  ;;  %v4600_v26 = vld [vmem:[%s6971_s4 + $0x1bc] sm:$0xf] }
  0x67   :  { %1598 = vmatpush.bf16.msrb.mxu1 %v3696_v61  ;;  %v3491_v20 = vld [vmem:[%s6971_s4 + $0x1b8] sm:$0xf]  ;;  %v4710_v23 = vld [vmem:[%s6971_s4 + $0x528] sm:$0xf0]  ;;  %v3964_v25 = vor.u32 %v4717_v18, %v3961_v19  ;;  %v3493_v27 = vld [vmem:[%s6971_s4 + $0x1ec] sm:$0xf0] }
  0x68   :  { %1605 = vmatpush.bf16.msrb.mxu2 %v3596_v2  ;;  %v3907_v22 = vld [vmem:[%s6971_s4 + $0x4f8] sm:$0xf]  ;;  %1586 = vmatmul.bf16.vlgmr.msrb.gmra.mxu0 %v5029_v8  ;;  %v3492_v28 = vor.u32 %v4606_v21, %v3491_v20  ;;  %v4704_v30 = vld [vmem:[%s6971_s4 + $0x4fc] sm:$0xf]  ;;  %v3909_v31 = vld [vmem:[%s6971_s4 + $0x52c] sm:$0xf0]  ;;  %v3496_v36 = vor.u32 %v4600_v26, %v3493_v27 }
  0x69   :  { %1630 = vmatpush.bf16.msra.mxu0 %v3652_v62  ;;  %1618 = vmatpush.bf16.msrb.mxu3 %v4012_v3  ;;  %v3908_v29 = vor.u32 %v4710_v23, %v3907_v22  ;;  %v3439_v32 = vld [vmem:[%s6971_s4 + $0x150] sm:$0xf]  ;;  %v4593_v33 = vld [vmem:[%s6971_s4 + $0x180] sm:$0xf0]  ;;  %v3912_v37 = vor.u32 %v4704_v30, %v3909_v31  ;;  %v4587_v38 = vld [vmem:[%s6971_s4 + $0x154] sm:$0xf] }
  0x6a   :  { %1599 = vmatmul.bf16.vlgmr.msrb.gmra.mxu1 %v5031_v9  ;;  %v3855_v34 = vld [vmem:[%s6971_s4 + $0x490] sm:$0xf]  ;;  %v4697_v35 = vld [vmem:[%s6971_s4 + $0x4c0] sm:$0xf0]  ;;  %v3441_v39 = vld [vmem:[%s6971_s4 + $0x184] sm:$0xf0]  ;;  %v3440_v40 = vor.u32 %v4593_v33, %v3439_v32 }
  0x6b   :  { %1643 = vmatpush.bf16.msra.mxu1 %v4068_v63  ;;  %v3856_v41 = vor.u32 %v4697_v35, %v3855_v34  ;;  %v4691_v42 = vld [vmem:[%s6971_s4 + $0x494] sm:$0xf]  ;;  %v3857_v43 = vld [vmem:[%s6971_s4 + $0x4c4] sm:$0xf0]  ;;  %v4580_v45 = vld [vmem:[%s6971_s4 + $0x118] sm:$0xf0]  ;;  %v3444_v48 = vor.u32 %v4587_v38, %v3441_v39 }
  0x6c   :  { %1606 = vmatpush.bf16.msrb.mxu2 %v3544_v16  ;;  %v3387_v44 = vld [vmem:[%s6971_s4 + $0xe8] sm:$0xf]  ;;  %v4684_v47 = vld [vmem:[%s6971_s4 + $0x458] sm:$0xf0]  ;;  %v3860_v49 = vor.u32 %v4691_v42, %v3857_v43  ;;  %v4574_v50 = vld [vmem:[%s6971_s4 + $0xec] sm:$0xf] }
  0x6d   :  { %1631 = vmatpush.bf16.msra.mxu0 %v3600_v12  ;;  %1619 = vmatpush.bf16.msrb.mxu3 %v3960_v17  ;;  %v3803_v46 = vld [vmem:[%s6971_s4 + $0x428] sm:$0xf]  ;;  %v3389_v51 = vld [vmem:[%s6971_s4 + $0x11c] sm:$0xf0]  ;;  %v3388_v52 = vor.u32 %v4580_v45, %v3387_v44  ;;  %v4678_v54 = vld [vmem:[%s6971_s4 + $0x42c] sm:$0xf] }
  0x6e   :  { %v3804_v53 = vor.u32 %v4684_v47, %v3803_v46  ;;  %v3805_v55 = vld [vmem:[%s6971_s4 + $0x45c] sm:$0xf0]  ;;  %v4567_v57 = vld [vmem:[%s6971_s4 + $0xb0] sm:$0xf0]  ;;  %v3392_v60 = vor.u32 %v4574_v50, %v3389_v51  ;;  %v4561_v62 = vld [vmem:[%s6971_s4 + $0x84] sm:$0xf] }
  0x6f   :  { %1644 = vmatpush.bf16.msra.mxu1 %v4016_v13  ;;  %v3335_v56 = vld [vmem:[%s6971_s4 + $0x80] sm:$0xf]  ;;  %v4671_v59 = vld [vmem:[%s6971_s4 + $0x3f0] sm:$0xf0]  ;;  %v3808_v61 = vor.u32 %v4678_v54, %v3805_v55  ;;  %v3337_v63 = vld [vmem:[%s6971_s4 + $0xb4] sm:$0xf0] }
  0x70   :  { %1607 = vmatpush.bf16.msrb.mxu2 %v3492_v28  ;;  %v3751_v58 = vld [vmem:[%s6971_s4 + $0x3c0] sm:$0xf]  ;;  %v4665_v0 = vld [vmem:[%s6971_s4 + $0x3c4] sm:$0xf]  ;;  %v3336_v1 = vor.u32 %v4567_v57, %v3335_v56  ;;  %v3753_v3 = vld [vmem:[%s6971_s4 + $0x3f4] sm:$0xf0]  ;;  %v3340_v14 = vor.u32 %v4561_v62, %v3337_v63 }
  0x71   :  { %1632 = vmatpush.bf16.msra.mxu0 %v3548_v24  ;;  %1620 = vmatpush.bf16.msrb.mxu3 %v3908_v29  ;;  %v3752_v2 = vor.u32 %v4671_v59, %v3751_v58  ;;  %v3283_v4 = vld [vmem:[%s6971_s4 + $0x18] sm:$0xf]  ;;  %v4554_v5 = vld [vmem:[%s6971_s4 + $0x48] sm:$0xf0]  ;;  %v3756_v15 = vor.u32 %v4665_v0, %v3753_v3  ;;  %v4548_v16 = vld [vmem:[%s6971_s4 + $0x1c] sm:$0xf] }
  0x72   :  { %v3699_v6 = vld [vmem:[%s6971_s4 + $0x358] sm:$0xf]  ;;  %v4658_v7 = vld [vmem:[%s6971_s4 + $0x388] sm:$0xf0]  ;;  %v3284_v17 = vor.u32 %v4554_v5, %v3283_v4  ;;  %v3285_v19 = vld [vmem:[%s6971_s4 + $0x4c] sm:$0xf0] }
  0x73   :  { %1645 = vmatpush.bf16.msra.mxu1 %v3964_v25  ;;  %v3655_v10 = vld [vmem:[%s6971_s4 + $0x2f8] sm:$0xf]  ;;  %v4646_v11 = vld [vmem:[%s6971_s4 + $0x328] sm:$0xf0]  ;;  %v3700_v18 = vor.u32 %v4658_v7, %v3699_v6  ;;  %v4652_v20 = vld [vmem:[%s6971_s4 + $0x35c] sm:$0xf]  ;;  %v3288_v29 = vor.u32 %v4548_v16, %v3285_v19 }
  0x74   :  { %1608 = vmatpush.bf16.msrb.mxu2 %v3440_v40  ;;  %v4071_v12 = vld [vmem:[%s6971_s4 + $0x638] sm:$0xf]  ;;  %v4750_v13 = vld [vmem:[%s6971_s4 + $0x668] sm:$0xf0]  ;;  %v3701_v21 = vld [vmem:[%s6971_s4 + $0x38c] sm:$0xf0]  ;;  %v3656_v22 = vor.u32 %v4646_v11, %v3655_v10 }
  0x75   :  { %1633 = vmatpush.bf16.msra.mxu0 %v3496_v36  ;;  %1621 = vmatpush.bf16.msrb.mxu3 %v3856_v41  ;;  %v4072_v23 = vor.u32 %v4750_v13, %v4071_v12  ;;  %v4640_v24 = vld [vmem:[%s6971_s4 + $0x2fc] sm:$0xf]  ;;  %v3657_v25 = vld [vmem:[%s6971_s4 + $0x32c] sm:$0xf0]  ;;  %v3704_v30 = vor.u32 %v4652_v20, %v3701_v21  ;;  %v4633_v31 = vld [vmem:[%s6971_s4 + $0x2c0] sm:$0xf0] }
  0x76   :  { %v4744_v26 = vld [vmem:[%s6971_s4 + $0x63c] sm:$0xf]  ;;  %v4073_v27 = vld [vmem:[%s6971_s4 + $0x66c] sm:$0xf0]  ;;  %v4737_v33 = vld [vmem:[%s6971_s4 + $0x600] sm:$0xf0]  ;;  %v3660_v34 = vor.u32 %v4640_v24, %v3657_v25 }
  0x77   :  { %1646 = vmatpush.bf16.msra.mxu1 %v3912_v37  ;;  %v3603_v28 = vld [vmem:[%s6971_s4 + $0x290] sm:$0xf]  ;;  %v4076_v35 = vor.u32 %v4744_v26, %v4073_v27  ;;  %v4627_v36 = vld [vmem:[%s6971_s4 + $0x294] sm:$0xf]  ;;  %v3605_v37 = vld [vmem:[%s6971_s4 + $0x2c4] sm:$0xf0] }
  0x78   :  { %1609 = vmatpush.bf16.msrb.mxu2 %v3388_v52  ;;  %v4019_v32 = vld [vmem:[%s6971_s4 + $0x5d0] sm:$0xf]  ;;  %v3604_v38 = vor.u32 %v4633_v31, %v3603_v28  ;;  %v4731_v40 = vld [vmem:[%s6971_s4 + $0x5d4] sm:$0xf]  ;;  %v4021_v41 = vld [vmem:[%s6971_s4 + $0x604] sm:$0xf0]  ;;  %v3608_v46 = vor.u32 %v4627_v36, %v3605_v37 }
  0x79   :  { %1634 = vmatpush.bf16.msra.mxu0 %v3444_v48  ;;  %1622 = vmatpush.bf16.msrb.mxu3 %v3804_v53  ;;  %v4020_v39 = vor.u32 %v4737_v33, %v4019_v32  ;;  %v3551_v42 = vld [vmem:[%s6971_s4 + $0x228] sm:$0xf]  ;;  %v4620_v43 = vld [vmem:[%s6971_s4 + $0x258] sm:$0xf0]  ;;  %v4024_v47 = vor.u32 %v4731_v40, %v4021_v41  ;;  %v4614_v48 = vld [vmem:[%s6971_s4 + $0x22c] sm:$0xf] }
  0x7a   :  { %v3967_v44 = vld [vmem:[%s6971_s4 + $0x568] sm:$0xf]  ;;  %v4724_v45 = vld [vmem:[%s6971_s4 + $0x598] sm:$0xf0]  ;;  %v3552_v50 = vor.u32 %v4620_v43, %v3551_v42  ;;  %v4718_v52 = vld [vmem:[%s6971_s4 + $0x56c] sm:$0xf] }
  0x7b   :  { %1647 = vmatpush.bf16.msra.mxu1 %v3860_v49  ;;  %v3553_v49 = vld [vmem:[%s6971_s4 + $0x25c] sm:$0xf0]  ;;  %v3968_v51 = vor.u32 %v4724_v45, %v3967_v44  ;;  %v4607_v55 = vld [vmem:[%s6971_s4 + $0x1f0] sm:$0xf0]  ;;  %v4705_v0 = vld [vmem:[%s6971_s4 + $0x504] sm:$0xf] }
  0x7c   :  { %1610 = vmatpush.bf16.msrb.mxu2 %v3336_v1  ;;  %v3969_v53 = vld [vmem:[%s6971_s4 + $0x59c] sm:$0xf0]  ;;  %v4711_v57 = vld [vmem:[%s6971_s4 + $0x530] sm:$0xf0]  ;;  %v3556_v58 = vor.u32 %v4614_v48, %v3553_v49  ;;  %v3917_v1 = vld [vmem:[%s6971_s4 + $0x534] sm:$0xf0] }
  0x7d   :  { %1635 = vmatpush.bf16.msra.mxu0 %v3392_v60  ;;  %1623 = vmatpush.bf16.msrb.mxu3 %v3752_v2  ;;  %v3499_v54 = vld [vmem:[%s6971_s4 + $0x1c0] sm:$0xf]  ;;  %v3972_v59 = vor.u32 %v4718_v52, %v3969_v53  ;;  %v4601_v60 = vld [vmem:[%s6971_s4 + $0x1c4] sm:$0xf]  ;;  %v3447_v2 = vld [vmem:[%s6971_s4 + $0x158] sm:$0xf]  ;;  %v3920_v10 = vor.u32 %v4705_v0, %v3917_v1 }
  0x7e   :  { %v3915_v56 = vld [vmem:[%s6971_s4 + $0x500] sm:$0xf]  ;;  %v3500_v62 = vor.u32 %v4607_v55, %v3499_v54  ;;  %v4594_v3 = vld [vmem:[%s6971_s4 + $0x188] sm:$0xf0]  ;;  %v3863_v4 = vld [vmem:[%s6971_s4 + $0x498] sm:$0xf] }
  0x7f   :  { %1648 = vmatpush.bf16.msra.mxu1 %v3808_v61  ;;  %v3501_v61 = vld [vmem:[%s6971_s4 + $0x1f4] sm:$0xf0]  ;;  %v3916_v63 = vor.u32 %v4711_v57, %v3915_v56  ;;  %v4698_v5 = vld [vmem:[%s6971_s4 + $0x4c8] sm:$0xf0]  ;;  %v4588_v11 = vld [vmem:[%s6971_s4 + $0x15c] sm:$0xf] }
  0x80   :  { %1611 = vmatpush.bf16.msrb.mxu2 %v3284_v17  ;;  %v3504_v7 = vor.u32 %v4601_v60, %v3501_v61  ;;  %v3449_v12 = vld [vmem:[%s6971_s4 + $0x18c] sm:$0xf0]  ;;  %v4692_v16 = vld [vmem:[%s6971_s4 + $0x49c] sm:$0xf]  ;;  %v4581_v19 = vld [vmem:[%s6971_s4 + $0x120] sm:$0xf0] }
  0x81   :  { %1636 = vmatpush.bf16.msra.mxu0 %v3340_v14  ;;  %1624 = vmatpush.bf16.msrb.mxu3 %v3700_v18  ;;  %v3448_v14 = vor.u32 %v4594_v3, %v3447_v2  ;;  %v3865_v17 = vld [vmem:[%s6971_s4 + $0x4cc] sm:$0xf0]  ;;  %v4685_v21 = vld [vmem:[%s6971_s4 + $0x460] sm:$0xf0]  ;;  %v4575_v24 = vld [vmem:[%s6971_s4 + $0xf4] sm:$0xf] }
  0x82   :  { %v3395_v18 = vld [vmem:[%s6971_s4 + $0xf0] sm:$0xf]  ;;  %v3397_v25 = vld [vmem:[%s6971_s4 + $0x124] sm:$0xf0]  ;;  %v4679_v28 = vld [vmem:[%s6971_s4 + $0x434] sm:$0xf] }
  0x83   :  { %1649 = vmatpush.bf16.msra.mxu1 %v3756_v15  ;;  %1612 = vmatmul.bf16.vlgmr.msrb.gmra.mxu2 %v5029_v8  ;;  %v3864_v15 = vor.u32 %v4698_v5, %v3863_v4  ;;  %v3811_v20 = vld [vmem:[%s6971_s4 + $0x430] sm:$0xf]  ;;  %v3396_v26 = vor.u32 %v4581_v19, %v3395_v18  ;;  %v4568_v31 = vld [vmem:[%s6971_s4 + $0xb8] sm:$0xf0]  ;;  %v3759_v32 = vld [vmem:[%s6971_s4 + $0x3c8] sm:$0xf] }
  0x84   :  { %1656 = vmatpush.bf16.msra.mxu2 %v3656_v22  ;;  %1625 = vmatmul.bf16.vlgmr.msrb.gmra.mxu3 %v5031_v9  ;;  %v3452_v22 = vor.u32 %v4588_v11, %v3449_v12  ;;  %v3812_v27 = vor.u32 %v4685_v21, %v3811_v20  ;;  %v4672_v33 = vld [vmem:[%s6971_s4 + $0x3f8] sm:$0xf0]  ;;  %v4562_v37 = vld [vmem:[%s6971_s4 + $0x8c] sm:$0xf]  ;;  %v3761_v43 = vld [vmem:[%s6971_s4 + $0x3fc] sm:$0xf0] }
  0x85   :  { %1669 = vmatpush.bf16.msra.mxu3 %v4072_v23  ;;  %1637 = vmatpush.bf16.msra.mxu0 %v3288_v29  ;;  %v5927_v6 = vpop.f32.mrf.mxu0  ;;  %v3868_v23 = vor.u32 %v4692_v16, %v3865_v17  ;;  %v3813_v29 = vld [vmem:[%s6971_s4 + $0x464] sm:$0xf0]  ;;  %v3760_v42 = vor.u32 %v4672_v33, %v3759_v32  ;;  %v3291_v44 = vld [vmem:[%s6971_s4 + $0x20] sm:$0xf]  ;;  %v4555_v45 = vld [vmem:[%s6971_s4 + $0x50] sm:$0xf0] }
  0x86   :  { %v3816_v36 = vor.u32 %v4679_v28, %v3813_v29  ;;  %v3663_v48 = vld [vmem:[%s6971_s4 + $0x300] sm:$0xf]  ;;  %v4647_v49 = vld [vmem:[%s6971_s4 + $0x330] sm:$0xf0]  ;;  %v4549_v54 = vld [vmem:[%s6971_s4 + $0x24] sm:$0xf]  ;;  %v3292_v55 = vor.u32 %v4555_v45, %v3291_v44 }
  0x87   :  { %1650 = vmatpush.bf16.msra.mxu1 %v3704_v30  ;;  %v5935_v13 = vpop.f32.mrf.mxu1  ;;  %v3343_v30 = vld [vmem:[%s6971_s4 + $0x88] sm:$0xf]  ;;  %v3293_v57 = vld [vmem:[%s6971_s4 + $0x54] sm:$0xf0]  ;;  %v3664_v60 = vor.u32 %v4647_v49, %v3663_v48  ;;  %v4745_v0 = vld [vmem:[%s6971_s4 + $0x644] sm:$0xf] }
  0x88   :  { %1657 = vmatpush.bf16.msra.mxu2 %v3604_v38  ;;  %1638 = vmatmul.bf16.vlgmr.msra.gmra.mxu0 %v5029_v8  ;;  %v3345_v38 = vld [vmem:[%s6971_s4 + $0xbc] sm:$0xf0]  ;;  %v3344_v41 = vor.u32 %v4568_v31, %v3343_v30  ;;  %v4081_v1 = vld [vmem:[%s6971_s4 + $0x674] sm:$0xf0]  ;;  %v3296_v4 = vor.u32 %v4549_v54, %v3293_v57  ;;  %v4738_v11 = vld [vmem:[%s6971_s4 + $0x608] sm:$0xf0] }
  0x89   :  { %1682 = vmatpush.bf16.msrb.mxu0 %v3660_v34  ;;  %1670 = vmatpush.bf16.msra.mxu3 %v4020_v39  ;;  %v4666_v39 = vld [vmem:[%s6971_s4 + $0x3cc] sm:$0xf]  ;;  %v3348_v52 = vor.u32 %v4562_v37, %v3345_v38  ;;  %v3611_v2 = vld [vmem:[%s6971_s4 + $0x298] sm:$0xf]  ;;  %v4084_v16 = vor.u32 %v4745_v0, %v4081_v1  ;;  %v4628_v17 = vld [vmem:[%s6971_s4 + $0x29c] sm:$0xf] }
  0x8a   :  { %1651 = vmatmul.bf16.vlgmr.msra.gmra.mxu1 %v5031_v9  ;;  %v3764_v53 = vor.u32 %v4666_v39, %v3761_v43  ;;  %v3613_v18 = vld [vmem:[%s6971_s4 + $0x2cc] sm:$0xf0]  ;;  %v4732_v21 = vld [vmem:[%s6971_s4 + $0x5dc] sm:$0xf]  ;;  %v4615_v29 = vld [vmem:[%s6971_s4 + $0x234] sm:$0xf] }
  0x8b   :  { %1695 = vmatpush.bf16.msrb.mxu1 %v4076_v35  ;;  %v3400_v35 = vor.u32 %v4575_v24, %v3397_v25  ;;  %v4621_v24 = vld [vmem:[%s6971_s4 + $0x260] sm:$0xf0]  ;;  %v3975_v25 = vld [vmem:[%s6971_s4 + $0x570] sm:$0xf]  ;;  %v3561_v30 = vld [vmem:[%s6971_s4 + $0x264] sm:$0xf0] }
  0x8c   :  { %1658 = vmatpush.bf16.msra.mxu2 %v3552_v50  ;;  %v4079_v50 = vld [vmem:[%s6971_s4 + $0x640] sm:$0xf]  ;;  %v4719_v33 = vld [vmem:[%s6971_s4 + $0x574] sm:$0xf]  ;;  %v4608_v38 = vld [vmem:[%s6971_s4 + $0x1f8] sm:$0xf0]  ;;  %v3564_v43 = vor.u32 %v4615_v29, %v3561_v30 }
  0x8d   :  { %1683 = vmatpush.bf16.msrb.mxu0 %v3608_v46  ;;  %1671 = vmatpush.bf16.msra.mxu3 %v3968_v51  ;;  %v5979_v34 = vpop.f32.mrf.mxu0  ;;  %v3707_v46 = vld [vmem:[%s6971_s4 + $0x360] sm:$0xf]  ;;  %v4751_v51 = vld [vmem:[%s6971_s4 + $0x670] sm:$0xf0]  ;;  %v3923_v39 = vld [vmem:[%s6971_s4 + $0x508] sm:$0xf] }
  0x8e   :  { %v4080_v61 = vor.u32 %v4751_v51, %v4079_v50  ;;  %v4602_v45 = vld [vmem:[%s6971_s4 + $0x1cc] sm:$0xf]  ;;  %v3925_v50 = vld [vmem:[%s6971_s4 + $0x53c] sm:$0xf0]  ;;  %v4699_v54 = vld [vmem:[%s6971_s4 + $0x4d0] sm:$0xf0] }
  0x8f   :  { %1696 = vmatpush.bf16.msrb.mxu1 %v4024_v47  ;;  %v5990_v40 = vpop.f32.mrf.mxu1  ;;  %v4659_v47 = vld [vmem:[%s6971_s4 + $0x390] sm:$0xf0]  ;;  %v4706_v49 = vld [vmem:[%s6971_s4 + $0x50c] sm:$0xf]  ;;  %v3455_v51 = vld [vmem:[%s6971_s4 + $0x160] sm:$0xf] }
  0x90   :  { %1659 = vmatpush.bf16.msra.mxu2 %v3500_v62  ;;  %v3708_v56 = vor.u32 %v4659_v47, %v3707_v46  ;;  %v4641_v62 = vld [vmem:[%s6971_s4 + $0x304] sm:$0xf]  ;;  %v3509_v46 = vld [vmem:[%s6971_s4 + $0x1fc] sm:$0xf0]  ;;  %v4582_v0 = vld [vmem:[%s6971_s4 + $0x128] sm:$0xf0] }
  0x91   :  { %1684 = vmatpush.bf16.msrb.mxu0 %v3556_v58  ;;  %1672 = vmatpush.bf16.msra.mxu3 %v3916_v63  ;;  %v4653_v58 = vld [vmem:[%s6971_s4 + $0x364] sm:$0xf]  ;;  %v3665_v63 = vld [vmem:[%s6971_s4 + $0x334] sm:$0xf0]  ;;  %vm1793_vm2 = vcmask 519168   ;;  %s4931_s28 = smov 64  }
  0x92   :  { %v4589_v57 = vld [vmem:[%s6971_s4 + $0x164] sm:$0xf]  ;;  %v3819_v1 = vld [vmem:[%s6971_s4 + $0x438] sm:$0xf]  ;;  %v3353_v30 = vld [vmem:[%s6971_s4 + $0xc4] sm:$0xf0] }
  0x93   :  { %1697 = vmatpush.bf16.msrb.mxu1 %v3972_v59  ;;  %v3709_v59 = vld [vmem:[%s6971_s4 + $0x394] sm:$0xf0]  ;;  %vm1980_vm3 = vcmask 588800   ;;  %vm2068_vm5 = vcmask 523264   ;;  %vm2099_vm6 = vcmask 125952   ;;  %s4934_s13 = smov 16  }
  0x94   :  { %1660 = vmatpush.bf16.msra.mxu2 %v3448_v14  ;;  %v3712_v5 = vor.u32 %v4653_v58, %v3709_v59  ;;  %v3457_v58 = vld [vmem:[%s6971_s4 + $0x194] sm:$0xf0]  ;;  %s4935_s14 = smov 32   ;;  %s4936_s15 = smov 48   ;;  %vm2952_vm8 = vcmask 130048  }
  0x95   :  { %1685 = vmatpush.bf16.msrb.mxu0 %v3504_v7  ;;  %1673 = vmatpush.bf16.msra.mxu3 %v3864_v15  ;;  %v89_v3 = vpop.f32.mrf.mxu0  ;;  %v4634_v7 = vld [vmem:[%s6971_s4 + $0x2c8] sm:$0xf0]  ;;  %v3668_v15 = vor.u32 %v4641_v62, %v3665_v63  ;;  %v3873_v62 = vld [vmem:[%s6971_s4 + $0x4d4] sm:$0xf0]  ;;  %s4938_s16 = smov 80   ;;  %s4944_s18 = smov [#allocation6]  }
  0x96   :  { %v3612_v19 = vor.u32 %v4634_v7, %v3611_v2  ;;  %v3403_v63 = vld [vmem:[%s6971_s4 + $0xf8] sm:$0xf]  ;;  %v4686_v2 = vld [vmem:[%s6971_s4 + $0x468] sm:$0xf0]  ;;  %s3227_s19 = sshll.u32 %s4944_s18, 4  ;;  %s4945_s1 = smov 256   ;;  %s3228_s19 = int_to_ptr.vmem [resolvable:$true] %s3227_s19 }
  0x97   :  { %1698 = vmatpush.bf16.msrb.mxu1 %v3920_v10  ;;  %v4027_v10 = vld [vmem:[%s6971_s4 + $0x5d8] sm:$0xf]  ;;  %v108_v12 = vpop.f32.mrf.mxu1 }
  0x98   :  { %1661 = vmatpush.bf16.msra.mxu2 %v3396_v26  ;;  %v6055_v14 = vadd.f32 %v108_v12, %v89_v3  ;;  %v4028_v20 = vor.u32 %v4738_v11, %v4027_v10  ;;  %v4725_v26 = vld [vmem:[%s6971_s4 + $0x5a0] sm:$0xf0]  ;;  %v3460_v11 = vor.u32 %v4589_v57, %v3457_v58 }
  0x99   :  { %1686 = vmatpush.bf16.msrb.mxu0 %v3452_v22  ;;  %1674 = vmatpush.bf16.msra.mxu3 %v3812_v27  ;;  %v4029_v22 = vld [vmem:[%s6971_s4 + $0x60c] sm:$0xf0]  ;;  %v3616_v27 = vor.u32 %v4628_v17, %v3613_v18  ;;  %v3976_v32 = vor.u32 %v4725_v26, %v3975_v25  ;;  %v3404_v18 = vor.u32 %v4582_v0, %v3403_v63  ;;  %v4673_v25 = vld [vmem:[%s6971_s4 + $0x400] sm:$0xf0] }
  0x9a   :  { %v4032_v28 = vor.u32 %v4732_v21, %v4029_v22  ;;  %v3821_v21 = vld [vmem:[%s6971_s4 + $0x46c] sm:$0xf0] }
  0x9b   :  { %1699 = vmatpush.bf16.msrb.mxu1 %v3868_v23  ;;  %v3559_v23 = vld [vmem:[%s6971_s4 + $0x230] sm:$0xf] }
  0x9c   :  { %1662 = vmatpush.bf16.msra.mxu2 %v3344_v41  ;;  %v3560_v31 = vor.u32 %v4621_v24, %v3559_v23  ;;  %v4712_v41 = vld [vmem:[%s6971_s4 + $0x538] sm:$0xf0]  ;;  %v3351_v22 = vld [vmem:[%s6971_s4 + $0x90] sm:$0xf]  ;;  %v4569_v23 = vld [vmem:[%s6971_s4 + $0xc0] sm:$0xf0] }
  0x9d   :  { %1687 = vmatpush.bf16.msrb.mxu0 %v3400_v35  ;;  %1675 = vmatpush.bf16.msra.mxu3 %v3760_v42  ;;  %v3977_v35 = vld [vmem:[%s6971_s4 + $0x5a4] sm:$0xf0]  ;;  %v6100_v37 = vpop.f32.mrf.mxu0  ;;  %v3924_v48 = vor.u32 %v4712_v41, %v3923_v39  ;;  %v3767_v24 = vld [vmem:[%s6971_s4 + $0x3d0] sm:$0xf]  ;;  %v4556_v39 = vld [vmem:[%s6971_s4 + $0x58] sm:$0xf0] }
  0x9e   :  { %v3980_v44 = vor.u32 %v4719_v33, %v3977_v35  ;;  %v3352_v35 = vor.u32 %v4569_v23, %v3351_v22  ;;  %v3715_v41 = vld [vmem:[%s6971_s4 + $0x368] sm:$0xf]  ;;  %v4739_v23 = vld [vmem:[%s6971_s4 + $0x610] sm:$0xf0] }
  0x9f   :  { %1700 = vmatpush.bf16.msrb.mxu1 %v3816_v36  ;;  %v3507_v36 = vld [vmem:[%s6971_s4 + $0x1c8] sm:$0xf]  ;;  %v6111_v42 = vpop.f32.mrf.mxu1 }
  0xa0   :  { %1663 = vmatpush.bf16.msra.mxu2 %v3292_v55  ;;  %v3508_v47 = vor.u32 %v4608_v38, %v3507_v36  ;;  %v3512_v55 = vor.u32 %v4602_v45, %v3509_v46  ;;  %v3768_v36 = vor.u32 %v4673_v25, %v3767_v24  ;;  %v3299_v38 = vld [vmem:[%s6971_s4 + $0x28] sm:$0xf] }
  0xa1   :  { %1688 = vmatpush.bf16.msrb.mxu0 %v3348_v52  ;;  %1676 = vmatpush.bf16.msra.mxu3 %v3708_v56  ;;  %v4595_v52 = vld [vmem:[%s6971_s4 + $0x190] sm:$0xf0]  ;;  %v3928_v56 = vor.u32 %v4706_v49, %v3925_v50 }
  0xa2   :  { %v3456_v59 = vor.u32 %v4595_v52, %v3455_v51  ;;  %v3300_v51 = vor.u32 %v4556_v39, %v3299_v38 }
  0xa3   :  { %1701 = vmatpush.bf16.msrb.mxu1 %v3764_v53  ;;  %1664 = vmatmul.bf16.vlgmr.msra.gmra.mxu2 %v5029_v8  ;;  %v3871_v53 = vld [vmem:[%s6971_s4 + $0x4a0] sm:$0xf] }
  0xa4   :  { %1708 = vmatpush.bf16.msrb.mxu2 %v3664_v60  ;;  %1677 = vmatmul.bf16.vlgmr.msra.gmra.mxu3 %v5031_v9  ;;  %v3872_v60 = vor.u32 %v4699_v54, %v3871_v53  ;;  %v3301_v53 = vld [vmem:[%s6971_s4 + $0x5c] sm:$0xf0]  ;;  %v4654_v54 = vld [vmem:[%s6971_s4 + $0x36c] sm:$0xf] }
  0xa5   :  { %1721 = vmatpush.bf16.msrb.mxu3 %v4080_v61  ;;  %1689 = vmatpush.bf16.msrb.mxu0 %v3296_v4  ;;  %v4693_v61 = vld [vmem:[%s6971_s4 + $0x4a4] sm:$0xf]  ;;  %v1483_v7 = vpop.f32.mrf.mxu0 }
  0xa6   :  { %v1457_v3 = vpop.f32.mrf.mxu2  ;;  %v3876_v12 = vor.u32 %v4693_v61, %v3873_v62 }
  0xa7   :  { %1702 = vmatpush.bf16.msrb.mxu1 %v3712_v5  ;;  %v1470_v4 = vpop.f32.mrf.mxu3  ;;  %v1496_v10 = vpop.f32.mrf.mxu1 }
  0xa8   :  { %1709 = vmatpush.bf16.msrb.mxu2 %v3612_v19  ;;  %1690 = vmatmul.bf16.vlgmr.msrb.gmra.mxu0 %v5029_v8  ;;  %v1471_v5 = vadd.f32 %v1470_v4, %v1457_v3  ;;  %v1497_v17 = vadd.f32 %v1496_v10, %v1483_v7  ;;  %v3820_v19 = vor.u32 %v4686_v2, %v3819_v1  ;;  %v3671_v7 = vld [vmem:[%s6971_s4 + $0x308] sm:$0xf]  ;;  %v4648_v10 = vld [vmem:[%s6971_s4 + $0x338] sm:$0xf0] }
  0xa9   :  { %1734 = vmatpush.bf16.msra.mxu0 %v3668_v15  ;;  %1722 = vmatpush.bf16.msrb.mxu3 %v4028_v20  ;;  %v4576_v15 = vld [vmem:[%s6971_s4 + $0xfc] sm:$0xf] }
  0xaa   :  { %1703 = vmatmul.bf16.vlgmr.msrb.gmra.mxu1 %v5031_v9  ;;  %v4680_v20 = vld [vmem:[%s6971_s4 + $0x43c] sm:$0xf]  ;;  %v1786_v26 = vpack.c.bf16 %v1497_v17, %v1471_v5 }
  0xab   :  { %1747 = vmatpush.bf16.msra.mxu1 %v4084_v16  ;;  %v3405_v16 = vld [vmem:[%s6971_s4 + $0x12c] sm:$0xf0]  ;;  %v3824_v29 = vor.u32 %v4680_v20, %v3821_v21  ;;  %v4635_v20 = vld [vmem:[%s6971_s4 + $0x2d0] sm:$0xf0]  ;;  %v4035_v21 = vld [vmem:[%s6971_s4 + $0x5e0] sm:$0xf] }
  0xac   :  { %1710 = vmatpush.bf16.msrb.mxu2 %v3560_v31  ;;  %v4667_v31 = vld [vmem:[%s6971_s4 + $0x3d4] sm:$0xf]  ;;  %1794 = vst.msk [vmem:[#allocation2] sm:$0xf] %vm1793_vm2, %v1786_v26  ;;  %v1800_v33 = vrot.slane %v1786_v26, 4  ;;  %1796 = vrot.lane.b32.xlu2 %v1786_v26, %s4931_s28  ;;  %v4036_v24 = vor.u32 %v4739_v23, %v4035_v21 }
  0xad   :  { %1735 = vmatpush.bf16.msra.mxu0 %v3616_v27  ;;  %1723 = vmatpush.bf16.msrb.mxu3 %v3976_v32  ;;  %v4563_v27 = vld [vmem:[%s6971_s4 + $0x94] sm:$0xf]  ;;  %v3769_v32 = vld [vmem:[%s6971_s4 + $0x404] sm:$0xf0]  ;;  %v1485_v49 = vpop.f32.mrf.mxu0  ;;  %v3567_v26 = vld [vmem:[%s6971_s4 + $0x238] sm:$0xf] }
  0xae   :  { %1802 = vst.msk [vmem:[#allocation2 + $0x8] sm:$0xf] %vm1793_vm2, %v1800_v33  ;;  %v3356_v46 = vor.u32 %v4563_v27, %v3353_v30  ;;  %v4622_v27 = vld [vmem:[%s6971_s4 + $0x268] sm:$0xf0]  ;;  %v3463_v49 = vld [vmem:[%s6971_s4 + $0x168] sm:$0xf] }
  0xaf   :  { %1748 = vmatpush.bf16.msra.mxu1 %v4032_v28  ;;  %v3408_v28 = vor.u32 %v4576_v15, %v3405_v16  ;;  %v1472_v45 = vpop.f32.mrf.mxu3  ;;  %v1498_v50 = vpop.f32.mrf.mxu1  ;;  %v4752_v15 = vld [vmem:[%s6971_s4 + $0x678] sm:$0xf0] }
  0xb0   :  { %1711 = vmatpush.bf16.msrb.mxu2 %v3508_v47  ;;  %v3772_v47 = vor.u32 %v4667_v31, %v3769_v32  ;;  %v3568_v31 = vor.u32 %v4622_v27, %v3567_v26  ;;  %v4726_v32 = vld [vmem:[%s6971_s4 + $0x5a8] sm:$0xf0]  ;;  %v4596_v50 = vld [vmem:[%s6971_s4 + $0x198] sm:$0xf0] }
  0xb1   :  { %1736 = vmatpush.bf16.msra.mxu0 %v3564_v43  ;;  %1724 = vmatpush.bf16.msrb.mxu3 %v3924_v48  ;;  %v4660_v43 = vld [vmem:[%s6971_s4 + $0x398] sm:$0xf0]  ;;  %v4550_v48 = vld [vmem:[%s6971_s4 + $0x2c] sm:$0xf] }
  0xb2   :  { %v3716_v52 = vor.u32 %v4660_v43, %v3715_v41  ;;  %v3515_v41 = vld [vmem:[%s6971_s4 + $0x1d0] sm:$0xf]  ;;  %v4609_v43 = vld [vmem:[%s6971_s4 + $0x200] sm:$0xf0] }
  0xb3   :  { %1749 = vmatpush.bf16.msra.mxu1 %v3980_v44  ;;  %v1459_v44 = vpop.f32.mrf.mxu2  ;;  %v3516_v45 = vor.u32 %v4609_v43, %v3515_v41 }
  0xb4   :  { %1712 = vmatpush.bf16.msrb.mxu2 %v3456_v59  ;;  %v3931_v44 = vld [vmem:[%s6971_s4 + $0x510] sm:$0xf] }
  0xb5   :  { %1737 = vmatpush.bf16.msra.mxu0 %v3512_v55  ;;  %1725 = vmatpush.bf16.msrb.mxu3 %v3872_v60  ;;  %v3717_v55 = vld [vmem:[%s6971_s4 + $0x39c] sm:$0xf0] }
  0xb6   :  { %v3720_v57 = vor.u32 %v4654_v54, %v3717_v55  ;;  %v3879_v54 = vld [vmem:[%s6971_s4 + $0x4a8] sm:$0xf]  ;;  %v4700_v55 = vld [vmem:[%s6971_s4 + $0x4d8] sm:$0xf0] }
  0xb7   :  { %1750 = vmatpush.bf16.msra.mxu1 %v3928_v56  ;;  %v3304_v56 = vor.u32 %v4550_v48, %v3301_v53  ;;  %v3464_v53 = vor.u32 %v4596_v50, %v3463_v49 }
  0xb8   :  { %1713 = vmatpush.bf16.msrb.mxu2 %v3404_v18 }
  0xb9   :  { %1738 = vmatpush.bf16.msra.mxu0 %v3460_v11  ;;  %1726 = vmatpush.bf16.msrb.mxu3 %v3820_v19  ;;  %v4087_v11 = vld [vmem:[%s6971_s4 + $0x648] sm:$0xf]  ;;  %v3619_v19 = vld [vmem:[%s6971_s4 + $0x2a0] sm:$0xf] }
  0xba   :  { %v4088_v16 = vor.u32 %v4752_v15, %v4087_v11  ;;  %v3620_v22 = vor.u32 %v4635_v20, %v3619_v19  ;;  %v4661_v11 = vld [vmem:[%s6971_s4 + $0x3a0] sm:$0xf0] }
  0xbb   :  { %1751 = vmatpush.bf16.msra.mxu1 %v3876_v12  ;;  %v3672_v12 = vor.u32 %v4648_v10, %v3671_v7  ;;  %v4557_v7 = vld [vmem:[%s6971_s4 + $0x60] sm:$0xf0]  ;;  %v3723_v10 = vld [vmem:[%s6971_s4 + $0x370] sm:$0xf] }
  0xbc   :  { %1714 = vmatpush.bf16.msrb.mxu2 %v3352_v35  ;;  %v3724_v15 = vor.u32 %v4661_v11, %v3723_v10 }
  0xbd   :  { %1739 = vmatpush.bf16.msra.mxu0 %v3408_v28  ;;  %1727 = vmatpush.bf16.msrb.mxu3 %v3768_v36  ;;  %v3983_v28 = vld [vmem:[%s6971_s4 + $0x578] sm:$0xf] }
  0xbe   :  { %v3984_v35 = vor.u32 %v4726_v32, %v3983_v28 }
  0xbf   :  { %1752 = vmatpush.bf16.msra.mxu1 %v3824_v29 }
  0xc0   :  { %1715 = vmatpush.bf16.msrb.mxu2 %v3300_v51 }
  0xc1   :  { %1740 = vmatpush.bf16.msra.mxu0 %v3356_v46  ;;  %1728 = vmatpush.bf16.msrb.mxu3 %v3716_v52  ;;  %v4713_v46 = vld [vmem:[%s6971_s4 + $0x540] sm:$0xf0] }
  0xc2   :  { %v3932_v48 = vor.u32 %v4713_v46, %v3931_v44 }
  0xc3   :  { %1753 = vmatpush.bf16.msra.mxu1 %v3772_v47  ;;  %1716 = vmatmul.bf16.vlgmr.msrb.gmra.mxu2 %v5029_v8 }
  0xc4   :  { %1729 = vmatmul.bf16.vlgmr.msrb.gmra.mxu3 %v5031_v9  ;;  %1760 = vmatpush.bf16.msra.mxu2 %v3672_v12 }
  0xc5   :  { %1741 = vmatpush.bf16.msra.mxu0 %v3304_v56  ;;  %v1535_v58 = vpop.f32.mrf.mxu0  ;;  %1773 = vmatpush.bf16.msra.mxu3 %v4088_v16  ;;  %v3411_v56 = vld [vmem:[%s6971_s4 + $0x100] sm:$0xf] }
  0xc6   :  { %v1509_v61 = vpop.f32.mrf.mxu2 }
  0xc7   :  { %1754 = vmatpush.bf16.msra.mxu1 %v3720_v57  ;;  %v1548_v59 = vpop.f32.mrf.mxu1  ;;  %v1522_v62 = vpop.f32.mrf.mxu3  ;;  %v3880_v57 = vor.u32 %v4700_v55, %v3879_v54 }
  0xc8   :  { %1742 = vmatmul.bf16.vlgmr.msra.gmra.mxu0 %v5029_v8  ;;  %v1549_v60 = vadd.f32 %v1548_v59, %v1535_v58  ;;  %v1523_v63 = vadd.f32 %v1522_v62, %v1509_v61  ;;  %1761 = vmatpush.bf16.msra.mxu2 %v3620_v22  ;;  %v4583_v58 = vld [vmem:[%s6971_s4 + $0x130] sm:$0xf0]  ;;  %v3827_v59 = vld [vmem:[%s6971_s4 + $0x440] sm:$0xf] }
  0xc9   :  { %1774 = vmatpush.bf16.msra.mxu3 %v4036_v24  ;;  %v3412_v61 = vor.u32 %v4583_v58, %v3411_v56 }
  0xca   :  { %1755 = vmatmul.bf16.vlgmr.msra.gmra.mxu1 %v5031_v9  ;;  %v1787_v0 = vpack.c.bf16 %v1549_v60, %v1523_v63  ;;  %v4687_v60 = vld [vmem:[%s6971_s4 + $0x470] sm:$0xf0]  ;;  %v3359_v63 = vld [vmem:[%s6971_s4 + $0x98] sm:$0xf] }
  0xcb   :  { %v3828_v62 = vor.u32 %v4687_v60, %v3827_v59 }
  0xcc   :  { %1806 = vst.msk [vmem:[#allocation2 + $0x10] sm:$0xf] %vm1793_vm2, %v1787_v0  ;;  %v1812_v1 = vrot.slane %v1787_v0, 4  ;;  %1808 = vrot.lane.b32.xlu1 %v1787_v0, %s4931_s28  ;;  %1762 = vmatpush.bf16.msra.mxu2 %v3568_v31  ;;  %v4570_v0 = vld [vmem:[%s6971_s4 + $0xc8] sm:$0xf0] }
  0xcd   :  { %v1537_v2 = vpop.f32.mrf.mxu0  ;;  %1775 = vmatpush.bf16.msra.mxu3 %v3984_v35 }
  0xce   :  { %1814 = vst.msk [vmem:[#allocation2 + $0x18] sm:$0xf] %vm1793_vm2, %v1812_v1  ;;  %v1511_v4 = vpop.f32.mrf.mxu2  ;;  %v3775_v1 = vld [vmem:[%s6971_s4 + $0x3d8] sm:$0xf]  ;;  %v4674_v2 = vld [vmem:[%s6971_s4 + $0x408] sm:$0xf0] }
  0xcf   :  { %v1550_v3 = vpop.f32.mrf.mxu1  ;;  %v1524_v5 = vpop.f32.mrf.mxu3  ;;  %v3776_v4 = vor.u32 %v4674_v2, %v3775_v1 }
  0xd0   :  { %1763 = vmatpush.bf16.msra.mxu2 %v3516_v45  ;;  %v3360_v3 = vor.u32 %v4570_v0, %v3359_v63  ;;  %v3307_v5 = vld [vmem:[%s6971_s4 + $0x30] sm:$0xf]  ;;  %s4933_s4 = smov 96  }
  0xd1   :  { %1776 = vmatpush.bf16.msra.mxu3 %v3932_v48  ;;  %v3308_v12 = vor.u32 %v4557_v7, %v3307_v5 }
  0xd4   :  { %1764 = vmatpush.bf16.msra.mxu2 %v3464_v53 }
  0xd5   :  { %1777 = vmatpush.bf16.msra.mxu3 %v3880_v57 }
  0xd8   :  { %1765 = vmatpush.bf16.msra.mxu2 %v3412_v61 }
  0xd9   :  { %1778 = vmatpush.bf16.msra.mxu3 %v3828_v62 }
  0xdc   :  { %1766 = vmatpush.bf16.msra.mxu2 %v3360_v3 }
  0xdd   :  { %1779 = vmatpush.bf16.msra.mxu3 %v3776_v4 }
  0xe0   :  { %1767 = vmatpush.bf16.msra.mxu2 %v3308_v12 }
  0xe1   :  { %1780 = vmatpush.bf16.msra.mxu3 %v3724_v15 }
  0xe3   :  { %1768 = vmatmul.bf16.vlgmr.msra.gmra.mxu2 %v5029_v8 }
  0xe4   :  { %1781 = vmatmul.bf16.vlgmr.msra.gmra.mxu3 %v5031_v9 }
  0xe5   :  { %v1587_v17 = vpop.f32.mrf.mxu0 }
  0xe6   :  { %v1561_v29 = vpop.f32.mrf.mxu2 }
  0xe7   :  { %v1600_v18 = vpop.f32.mrf.mxu1  ;;  %v1574_v30 = vpop.f32.mrf.mxu3 }
  0xe8   :  { %v1601_v25 = vadd.f32 %v1600_v18, %v1587_v17  ;;  %v1575_v33 = vadd.f32 %v1574_v30, %v1561_v29 }
  0xea   :  { %v6267_v36 = vpack.c.bf16 %v1601_v25, %v1575_v33 }
  0xec   :  { %1818 = vst.msk [vmem:[#allocation2 + $0x20] sm:$0xf] %vm1793_vm2, %v6267_v36  ;;  %v1824_v47 = vrot.slane %v6267_v36, 4 }
  0xed   :  { %v1589_v38 = vpop.f32.mrf.mxu0 }
  0xee   :  { %1826 = vst.msk [vmem:[#allocation2 + $0x28] sm:$0xf] %vm1793_vm2, %v1824_v47  ;;  %v1563_v51 = vpop.f32.mrf.mxu2 }
  0xef   :  { %v1602_v39 = vpop.f32.mrf.mxu1  ;;  %v1576_v52 = vpop.f32.mrf.mxu3 }
 0x105   :  { %v1639_v16 = vpop.f32.mrf.mxu0 }
 0x106   :  { %v1613_v19 = vpop.f32.mrf.mxu2  ;;  %v1797_v26 = vpop.permute.xlu2 %1796 }
 0x107   :  { %v1652_v17 = vpop.f32.mrf.mxu1  ;;  %v1626_v20 = vpop.f32.mrf.mxu3  ;;  %1799 = vst.msk [vmem:[#allocation2 + $0x4] sm:$0xf] %vm1793_vm2, %v1797_v26  ;;  %v1803_v8 = vrot.slane %v1797_v26, 4  ;;  %v6364_v26 = vld [vmem:[%s6969_s2] sm:$0xff] }
 0x108   :  { %v1653_v18 = vadd.f32 %v1652_v17, %v1639_v16  ;;  %v1627_v21 = vadd.f32 %v1626_v20, %v1613_v19 }
 0x109   :  { %1805 = vst.msk [vmem:[#allocation2 + $0xc] sm:$0xf] %vm1793_vm2, %v1803_v8 }
 0x10a   :  { %v1789_v22 = vpack.c.bf16 %v1653_v18, %v1627_v21 }
 0x10c   :  { %1830 = vst.msk [vmem:[#allocation2 + $0x30] sm:$0xf] %vm1793_vm2, %v1789_v22  ;;  %v1836_v23 = vrot.slane %v1789_v22, 4  ;;  %1832 = vrot.lane.b32.xlu0 %v1789_v22, %s4931_s28 }
 0x10d   :  { %v1641_v24 = vpop.f32.mrf.mxu0 }
 0x10e   :  { %1838 = vst.msk [vmem:[#allocation2 + $0x38] sm:$0xf] %vm1793_vm2, %v1836_v23  ;;  %v1615_v27 = vpop.f32.mrf.mxu2  ;;  %v4753_v22 = vld [vmem:[#allocation2] sm:$0xff] }
 0x10f   :  { %v1654_v25 = vpop.f32.mrf.mxu1  ;;  %v1628_v28 = vpop.f32.mrf.mxu3  ;;  %v1867_v23 = vld [vmem:[%s6970_s3] sm:$0xff]  ;;  %v4932_v27 = vmov 0   ;;  %s4937_s3 = smov 112  }
 0x110   :  { %v4754_v20 = vld [vmem:[#allocation2 + $0x8] sm:$0xff]  ;;  %v1900_v24 = vunpack.c.l.b16 %v1867_v23  ;;  %4874 = vset.pattern.permute.xlu0 %v4932_v27  ;;  %v4803_v27 = vld [vmem:[%s6975_s8 + $0xd4] sm:$0xf] }
 0x112   :  { %v1902_v25 = vpack.c.b16 %v1900_v24, %v1900_v24 }
 0x114   :  { %1820 = vrot.lane.b32.xlu0 %v6267_v36, %s4931_s28 }
 0x11c   :  { %1896 = vperm.xlu0 %4874, %v6364_v26  }
 0x125   :  { %v1691_v9 = vpop.f32.mrf.mxu0 }
 0x126   :  { %v1665_v31 = vpop.f32.mrf.mxu2 }
 0x127   :  { %v1704_v29 = vpop.f32.mrf.mxu1  ;;  %v1678_v32 = vpop.f32.mrf.mxu3 }
 0x128   :  { %v1705_v30 = vadd.f32 %v1704_v29, %v1691_v9  ;;  %v1679_v33 = vadd.f32 %v1678_v32, %v1665_v31  ;;  %v1901_v31 = vunpack.c.h.b16 %v1867_v23  ;;  %v4359_v23 = vld [vmem:[%s6975_s8 + $0x174] sm:$0xf0] }
 0x12a   :  { %v1790_v35 = vpack.c.bf16 %v1705_v30, %v1679_v33  ;;  %v1903_v33 = vpack.c.b16 %v1901_v31, %v1901_v31  ;;  %v4307_v31 = vld [vmem:[%s6975_s8 + $0x10c] sm:$0xf0] }
 0x12c   :  { %1842 = vst.msk [vmem:[#allocation2 + $0x40] sm:$0xf] %vm1793_vm2, %v1790_v35  ;;  %v1848_v38 = vrot.slane %v1790_v35, 4  ;;  %1844 = vrot.lane.b32.xlu2 %v1790_v35, %s4931_s28 }
 0x12d   :  { %v1693_v39 = vpop.f32.mrf.mxu0 }
 0x12e   :  { %1850 = vst.msk [vmem:[#allocation2 + $0x48] sm:$0xf] %vm1793_vm2, %v1848_v38  ;;  %v1667_v43 = vpop.f32.mrf.mxu2  ;;  %v4771_v39 = vld [vmem:[%s6973_s6 + $0x34] sm:$0xf] }
 0x12f   :  { %v1706_v41 = vpop.f32.mrf.mxu1  ;;  %v1680_v44 = vpop.f32.mrf.mxu3  ;;  %v4165_v43 = vld [vmem:[%s6973_s6 + $0x30] sm:$0xf] }
 0x130   :  { %v4167_v41 = vld [vmem:[%s6973_s6 + $0x38] sm:$0xf0] }
 0x131   :  { %v4170_v44 = vor.u32 %v4771_v39, %v4167_v41  ;;  %v4247_v39 = vld [vmem:[%s6975_s8 + $0x9c] sm:$0xf0]  ;;  %v4253_v41 = vld [vmem:[%s6975_s8 + $0x70] sm:$0xf] }
 0x133   :  { %2089 = vmatpush.bf16.msrb.mxu2 %v4170_v44  ;;  %v4791_v44 = vld [vmem:[%s6975_s8 + $0x74] sm:$0xf] }
 0x13e   :  { %v1809_v50 = vpop.permute.xlu1 %1808 }
 0x13f   :  { %1811 = vst.msk [vmem:[#allocation2 + $0x14] sm:$0xf] %vm1793_vm2, %v1809_v50  ;;  %v1815_v51 = vrot.slane %v1809_v50, 4  ;;  %v4159_v50 = vld [vmem:[%s6973_s6 + $0x28] sm:$0xf0] }
 0x141   :  { %1817 = vst.msk [vmem:[#allocation2 + $0x1c] sm:$0xf] %vm1793_vm2, %v1815_v51  ;;  %v4157_v51 = vld [vmem:[%s6973_s6 + $0x20] sm:$0xf] }
 0x145   :  { %v1743_v45 = vpop.f32.mrf.mxu0 }
 0x146   :  { %v1717_v47 = vpop.f32.mrf.mxu2  ;;  %v4755_v16 = vld [vmem:[#allocation2 + $0x10] sm:$0xff] }
 0x147   :  { %v1756_v36 = vpop.f32.mrf.mxu1  ;;  %v1730_v48 = vpop.f32.mrf.mxu3 }
 0x148   :  { %v1757_v46 = vadd.f32 %v1756_v36, %v1743_v45  ;;  %v1731_v49 = vadd.f32 %v1730_v48, %v1717_v47  ;;  %v4756_v15 = vld [vmem:[#allocation2 + $0x18] sm:$0xff] }
 0x149   :  { %v4772_v45 = vld [vmem:[%s6973_s6 + $0x34] sm:$0xf0] }
 0x14a   :  { %v1791_v52 = vpack.c.bf16 %v1757_v46, %v1731_v49  ;;  %v4349_v36 = vld [vmem:[%s6975_s8 + $0x138] sm:$0xf]  ;;  %v4822_v46 = vld [vmem:[%s6975_s8 + $0x168] sm:$0xf0]  ;;  %v4166_v47 = vor.u32 %v4772_v45, %v4165_v43  ;;  %v4769_v49 = vld [vmem:[%s6973_s6 + $0x24] sm:$0xf] }
 0x14b   :  { %v4350_v48 = vor.u32 %v4822_v46, %v4349_v36  ;;  %v4797_v43 = vld [vmem:[%s6975_s8 + $0xa0] sm:$0xf0]  ;;  %v4255_v45 = vld [vmem:[%s6975_s8 + $0xa4] sm:$0xf0] }
 0x14c   :  { %1854 = vst.msk [vmem:[#allocation2 + $0x50] sm:$0xf] %vm1793_vm2, %v1791_v52  ;;  %v1860_v55 = vrot.slane %v1791_v52, 4  ;;  %1856 = vrot.lane.b32.xlu1 %v1791_v52, %s4931_s28  ;;  %v4162_v52 = vor.u32 %v4769_v49, %v4159_v50  ;;  %v4777_v49 = vld [vmem:[%s6975_s8 + $0x4] sm:$0xf] }
 0x14d   :  { %v1745_v53 = vpop.f32.mrf.mxu0  ;;  %v4195_v50 = vld [vmem:[%s6975_s8 + $0x34] sm:$0xf0] }
 0x14e   :  { %1862 = vst.msk [vmem:[#allocation2 + $0x58] sm:$0xf] %vm1793_vm2, %v1860_v55  ;;  %v1719_v56 = vpop.f32.mrf.mxu2  ;;  %v4770_v53 = vld [vmem:[%s6973_s6 + $0x24] sm:$0xf0]  ;;  %v4809_v55 = vld [vmem:[%s6975_s8 + $0x100] sm:$0xf0]  ;;  %2090 = vmatpush.bf16.msrb.mxu2 %v4162_v52 }
 0x14f   :  { %v1758_v54 = vpop.f32.mrf.mxu1  ;;  %v1732_v57 = vpop.f32.mrf.mxu3  ;;  %v4158_v56 = vor.u32 %v4770_v53, %v4157_v51  ;;  %v4201_v51 = vld [vmem:[%s6975_s8 + $0x8] sm:$0xf]  ;;  %v4784_v52 = vld [vmem:[%s6975_s8 + $0x38] sm:$0xf0]  ;;  %v4778_v53 = vld [vmem:[%s6975_s8 + $0xc] sm:$0xf] }
 0x150   :  { %v4297_v54 = vld [vmem:[%s6975_s8 + $0xd0] sm:$0xf] }
 0x151   :  { %v4298_v57 = vor.u32 %v4809_v55, %v4297_v54  ;;  %v4203_v54 = vld [vmem:[%s6975_s8 + $0x3c] sm:$0xf0] }
 0x166   :  { %v1769_v1 = vpop.f32.mrf.mxu2 }
 0x167   :  { %v1782_v2 = vpop.f32.mrf.mxu3 }
 0x168   :  { %v1783_v3 = vadd.f32 %v1782_v2, %v1769_v1 }
 0x16a   :  { %v1792_v5 = vpack.c.bf16 %v1783_v3, %v1783_v3  ;;  %v4765_v3 = vld [vmem:[%s6973_s6 + $0x4] sm:$0xf] }
 0x16c   :  { %1866 = vst.msk [vmem:[#allocation2 + $0x60] sm:$0xf] %vm1793_vm2, %v1792_v5  ;;  %v4141_v5 = vld [vmem:[%s6973_s6] sm:$0xf] }
 0x16e   :  { %v1771_v10 = vpop.f32.mrf.mxu2 }
 0x16f   :  { %v1784_v11 = vpop.f32.mrf.mxu3  ;;  %v4766_v10 = vld [vmem:[%s6973_s6 + $0x4] sm:$0xf0] }
 0x170   :  { %v4193_v11 = vld [vmem:[%s6975_s8] sm:$0xf] }
 0x173   :  { %v1892_v17 = vld [vmem:[#allocation2 + $0x60] sm:$0xf] }
 0x174   :  { %v1954_v18 = vunpack.c.l.b16 %v1892_v17  ;;  %v4816_v17 = vld [vmem:[%s6975_s8 + $0x13c] sm:$0xf] }
 0x176   :  { %v1967_v19 = vpack.c.b16 %v1954_v18, %v1954_v18  ;;  %v4351_v18 = vld [vmem:[%s6975_s8 + $0x16c] sm:$0xf0] }
 0x178   :  { %v1985_v21 = vsel %vm68_vm0, %v1967_v19, 0  ;;  %v4357_v19 = vld [vmem:[%s6975_s8 + $0x140] sm:$0xf] }
 0x179   :  { %2003 = vmatpush.bf16.msrb.mxu1 %v1985_v21  ;;  %v4823_v21 = vld [vmem:[%s6975_s8 + $0x170] sm:$0xf0] }
 0x17a   :  { %v4358_v24 = vor.u32 %v4823_v21, %v4357_v19  ;;  %v4321_v19 = vld [vmem:[%s6975_s8 + $0xe8] sm:$0xf]  ;;  %v4806_v21 = vld [vmem:[%s6975_s8 + $0xec] sm:$0xf] }
 0x17e   :  { %v1833_v58 = vpop.permute.xlu0 %1832 }
 0x17f   :  { %1835 = vst.msk [vmem:[#allocation2 + $0x34] sm:$0xf] %vm1793_vm2, %v1833_v58  ;;  %v1839_v59 = vrot.slane %v1833_v58, 4  ;;  %v4767_v58 = vld [vmem:[%s6973_s6 + $0x14] sm:$0xf] }
 0x181   :  { %1841 = vst.msk [vmem:[#allocation2 + $0x3c] sm:$0xf] %vm1793_vm2, %v1839_v59  ;;  %v4151_v59 = vld [vmem:[%s6973_s6 + $0x18] sm:$0xf0] }
 0x186   :  { %v1845_v60 = vpop.permute.xlu2 %1844  ;;  %v1821_v62 = vpop.permute.xlu0 %1820  ;;  %v4759_v4 = vld [vmem:[#allocation2 + $0x30] sm:$0xff] }
 0x187   :  { %1847 = vst.msk [vmem:[#allocation2 + $0x44] sm:$0xf] %vm1793_vm2, %v1845_v60  ;;  %v1851_v61 = vrot.slane %v1845_v60, 4  ;;  %v1827_v63 = vrot.slane %v1821_v62, 4  ;;  %v4149_v60 = vld [vmem:[%s6973_s6 + $0x10] sm:$0xf] }
 0x188   :  { %1823 = vst.msk [vmem:[#allocation2 + $0x24] sm:$0xf] %vm1793_vm2, %v1821_v62  ;;  %v4760_v0 = vld [vmem:[#allocation2 + $0x38] sm:$0xff] }
 0x189   :  { %1853 = vst.msk [vmem:[#allocation2 + $0x4c] sm:$0xf] %vm1793_vm2, %v1851_v61  ;;  %1987 = vmatpush.bf16.msrb.mxu0 %v4760_v0  ;;  %v4154_v61 = vor.u32 %v4767_v58, %v4151_v59  ;;  %v4768_v62 = vld [vmem:[%s6973_s6 + $0x14] sm:$0xf0]  ;;  %v4796_v0 = vld [vmem:[%s6975_s8 + $0x98] sm:$0xf0]  ;;  %v4206_v58 = vor.u32 %v4778_v53, %v4203_v54 }
 0x18a   :  { %1829 = vst.msk [vmem:[#allocation2 + $0x2c] sm:$0xf] %vm1793_vm2, %v1827_v63  ;;  %v4245_v63 = vld [vmem:[%s6975_s8 + $0x68] sm:$0xf]  ;;  %v4150_v1 = vor.u32 %v4768_v62, %v4149_v60  ;;  %v4391_v53 = vld [vmem:[%s6975_s8 + $0x194] sm:$0xf0] }
 0x18b   :  { %v4246_v2 = vor.u32 %v4796_v0, %v4245_v63  ;;  %2091 = vmatpush.bf16.msrb.mxu2 %v4154_v61  ;;  %v4818_v0 = vld [vmem:[%s6975_s8 + $0x14c] sm:$0xf] }
 0x18d   :  { %1988 = vmatpush.bf16.msrb.mxu0 %v4759_v4  ;;  %v4143_v4 = vld [vmem:[%s6973_s6 + $0x8] sm:$0xf0] }
 0x18e   :  { %v4761_v32 = vld [vmem:[#allocation2 + $0x40] sm:$0xff]  ;;  %v1897_v46 = vpop.permute.xlu0 %1896 }
 0x18f   :  { %v4757_v12 = vld [vmem:[#allocation2 + $0x20] sm:$0xff] }
 0x190   :  { %v4762_v30 = vld [vmem:[#allocation2 + $0x48] sm:$0xff] }
 0x191   :  { %v4758_v7 = vld [vmem:[#allocation2 + $0x28] sm:$0xff] }
 0x192   :  { %1989 = vmatpush.bf16.msrb.mxu0 %v4758_v7  ;;  %v4146_v7 = vor.u32 %v4765_v3, %v4143_v4  ;;  %v4825_v3 = vld [vmem:[%s6975_s8 + $0x180] sm:$0xf0] }
 0x194   :  { %2092 = vmatpush.bf16.msrb.mxu2 %v4146_v7  ;;  %v4375_v7 = vld [vmem:[%s6975_s8 + $0x184] sm:$0xf0] }
 0x196   :  { %1990 = vmatpush.bf16.msrb.mxu0 %v4757_v12  ;;  %v4783_v12 = vld [vmem:[%s6975_s8 + $0x30] sm:$0xf0] }
 0x198   :  { %2551 = vmatpush.bf16.msra.mxu2 %v4358_v24 }
 0x19a   :  { %1991 = vmatpush.bf16.msrb.mxu0 %v4756_v15  ;;  %v4142_v15 = vor.u32 %v4766_v10, %v4141_v5  ;;  %v4819_v5 = vld [vmem:[%s6975_s8 + $0x154] sm:$0xf] }
 0x19e   :  { %1992 = vmatpush.bf16.msrb.mxu0 %v4755_v16  ;;  %v4194_v16 = vor.u32 %v4783_v12, %v4193_v11 }
 0x1a2   :  { %1993 = vmatpush.bf16.msrb.mxu0 %v4754_v20  ;;  %v4354_v20 = vor.u32 %v4816_v17, %v4351_v18  ;;  %v4805_v17 = vld [vmem:[%s6975_s8 + $0xe4] sm:$0xf]  ;;  %v4315_v18 = vld [vmem:[%s6975_s8 + $0x114] sm:$0xf0] }
 0x1a6   :  { %1994 = vmatpush.bf16.msrb.mxu0 %v4753_v22  ;;  %v4817_v22 = vld [vmem:[%s6975_s8 + $0x144] sm:$0xf] }
 0x1a9   :  { %1995 = vmatmul.bf16.vlgmr.msrb.gmra.mxu0 %v1902_v25  ;;  %v4362_v25 = vor.u32 %v4817_v22, %v4359_v23  ;;  %v4323_v22 = vld [vmem:[%s6975_s8 + $0x11c] sm:$0xf0]  ;;  %v4318_v23 = vor.u32 %v4805_v17, %v4315_v18  ;;  %v4227_v17 = vld [vmem:[%s6975_s8 + $0x54] sm:$0xf0]  ;;  %v4233_v18 = vld [vmem:[%s6975_s8 + $0x28] sm:$0xf] }
 0x1aa   :  { %2525 = vmatpush.bf16.msra.mxu0 %v4350_v48  ;;  %v4258_v48 = vor.u32 %v4791_v44, %v4255_v45  ;;  %v4780_v44 = vld [vmem:[%s6975_s8 + $0x1c] sm:$0xf]  ;;  %v4219_v45 = vld [vmem:[%s6975_s8 + $0x4c] sm:$0xf0] }
 0x1ae   :  { %2526 = vmatpush.bf16.msra.mxu0 %v4298_v57  ;;  %v4202_v57 = vor.u32 %v4784_v52, %v4201_v51  ;;  %v4827_v51 = vld [vmem:[%s6975_s8 + $0x190] sm:$0xf0]  ;;  %v4821_v52 = vld [vmem:[%s6975_s8 + $0x164] sm:$0xf] }
 0x1b2   :  { %2527 = vmatpush.bf16.msra.mxu0 %v4246_v2  ;;  %v4373_v2 = vld [vmem:[%s6975_s8 + $0x150] sm:$0xf] }
 0x1b6   :  { %2528 = vmatpush.bf16.msra.mxu0 %v4194_v16  ;;  %v4378_v16 = vor.u32 %v4819_v5, %v4375_v7  ;;  %v4795_v5 = vld [vmem:[%s6975_s8 + $0x94] sm:$0xf]  ;;  %v4287_v7 = vld [vmem:[%s6975_s8 + $0xc4] sm:$0xf0] }
 0x1ba   :  { %2564 = vmatpush.bf16.msrb.mxu0 %v4362_v25  ;;  %v4326_v25 = vor.u32 %v4806_v21, %v4323_v22  ;;  %v4235_v21 = vld [vmem:[%s6975_s8 + $0x5c] sm:$0xf0] }
 0x1be   :  { %v1857_v8 = vpop.permute.xlu1 %1856 }
 0x1bf   :  { %1859 = vst.msk [vmem:[#allocation2 + $0x54] sm:$0xf] %vm1793_vm2, %v1857_v8  ;;  %v1863_v28 = vrot.slane %v1857_v8, 4  ;;  %v4299_v8 = vld [vmem:[%s6975_s8 + $0x104] sm:$0xf0] }
 0x1c1   :  { %1865 = vst.msk [vmem:[#allocation2 + $0x5c] sm:$0xf] %vm1793_vm2, %v1863_v28  ;;  %v4305_v28 = vld [vmem:[%s6975_s8 + $0xd8] sm:$0xf] }
 0x1c6   :  { %v4763_v29 = vld [vmem:[#allocation2 + $0x50] sm:$0xff] }
 0x1c8   :  { %v4764_v9 = vld [vmem:[#allocation2 + $0x58] sm:$0xff] }
 0x1c9   :  { %2004 = vmatpush.bf16.msrb.mxu1 %v4764_v9  ;;  %v4302_v9 = vor.u32 %v4803_v27, %v4299_v8  ;;  %v4792_v27 = vld [vmem:[%s6975_s8 + $0x7c] sm:$0xf]  ;;  %v4263_v8 = vld [vmem:[%s6975_s8 + $0xac] sm:$0xf0] }
 0x1cd   :  { %2005 = vmatpush.bf16.msrb.mxu1 %v4763_v29  ;;  %v4810_v29 = vld [vmem:[%s6975_s8 + $0x108] sm:$0xf0] }
 0x1d1   :  { %2006 = vmatpush.bf16.msrb.mxu1 %v4762_v30  ;;  %v4804_v30 = vld [vmem:[%s6975_s8 + $0xdc] sm:$0xf] }
 0x1d5   :  { %2007 = vmatpush.bf16.msrb.mxu1 %v4761_v32  ;;  %v4306_v32 = vor.u32 %v4810_v29, %v4305_v28  ;;  %v4269_v28 = vld [vmem:[%s6975_s8 + $0x80] sm:$0xf]  ;;  %v4793_v29 = vld [vmem:[%s6975_s8 + $0x84] sm:$0xf] }
 0x1d7   :  { %2552 = vmatpush.bf16.msra.mxu2 %v4306_v32 }
 0x1d8   :  { %4137 = vmatmul.msk.bf16.vlgmr.msrb.gmra.mxu1 %vm1980_vm3, %v1903_v33  ;;  %v4310_v33 = vor.u32 %v4804_v30, %v4307_v31  ;;  %v4271_v30 = vld [vmem:[%s6975_s8 + $0xb4] sm:$0xf0]  ;;  %v4266_v31 = vor.u32 %v4792_v27, %v4263_v8 }
 0x1d9   :  { %2076 = vmatpush.bf16.msra.mxu1 %v4166_v47  ;;  %v4254_v47 = vor.u32 %v4797_v43, %v4253_v41  ;;  %v4217_v41 = vld [vmem:[%s6975_s8 + $0x18] sm:$0xf]  ;;  %v4786_v43 = vld [vmem:[%s6975_s8 + $0x48] sm:$0xf0] }
 0x1da   :  { %2565 = vmatpush.bf16.msrb.mxu0 %v4310_v33  ;;  %v4274_v33 = vor.u32 %v4793_v29, %v4271_v30 }
 0x1db   :  { %2553 = vmatpush.bf16.msra.mxu2 %v4254_v47  ;;  %v4222_v47 = vor.u32 %v4780_v44, %v4219_v45 }
 0x1dd   :  { %2077 = vmatpush.bf16.msra.mxu1 %v4158_v56  ;;  %v4198_v56 = vor.u32 %v4777_v49, %v4195_v50  ;;  %v4383_v49 = vld [vmem:[%s6975_s8 + $0x18c] sm:$0xf0]  ;;  %v4389_v50 = vld [vmem:[%s6975_s8 + $0x160] sm:$0xf] }
 0x1de   :  { %2566 = vmatpush.bf16.msrb.mxu0 %v4258_v48  ;;  %v4820_v48 = vld [vmem:[%s6975_s8 + $0x15c] sm:$0xf] }
 0x1df   :  { %2554 = vmatpush.bf16.msra.mxu2 %v4202_v57  ;;  %v4386_v54 = vor.u32 %v4820_v48, %v4383_v49  ;;  %v4807_v57 = vld [vmem:[%s6975_s8 + $0xf4] sm:$0xf] }
 0x1e1   :  { %2078 = vmatpush.bf16.msra.mxu1 %v4150_v1  ;;  %v4367_v1 = vld [vmem:[%s6975_s8 + $0x17c] sm:$0xf0] }
 0x1e2   :  { %2567 = vmatpush.bf16.msrb.mxu0 %v4206_v58  ;;  %v4370_v11 = vor.u32 %v4818_v0, %v4367_v1  ;;  %v4331_v58 = vld [vmem:[%s6975_s8 + $0x124] sm:$0xf0]  ;;  %v4794_v1 = vld [vmem:[%s6975_s8 + $0x8c] sm:$0xf] }
 0x1e5   :  { %2079 = vmatpush.bf16.msra.mxu1 %v4142_v15  ;;  %v4374_v15 = vor.u32 %v4825_v3, %v4373_v2  ;;  %v4279_v2 = vld [vmem:[%s6975_s8 + $0xbc] sm:$0xf0]  ;;  %v4285_v3 = vld [vmem:[%s6975_s8 + $0x90] sm:$0xf] }
 0x1e9   :  { %2538 = vmatpush.bf16.msrb.mxu1 %v4354_v20  ;;  %v4812_v20 = vld [vmem:[%s6975_s8 + $0x118] sm:$0xf0] }
 0x1ea   :  { %v4322_v24 = vor.u32 %v4812_v20, %v4321_v19  ;;  %v4788_v19 = vld [vmem:[%s6975_s8 + $0x58] sm:$0xf0]  ;;  %v4782_v20 = vld [vmem:[%s6975_s8 + $0x2c] sm:$0xf] }
 0x1ed   :  { %2539 = vmatpush.bf16.msrb.mxu1 %v4302_v9  ;;  %v4799_v9 = vld [vmem:[%s6975_s8 + $0xb0] sm:$0xf0] }
 0x1ee   :  { %v4270_v32 = vor.u32 %v4799_v9, %v4269_v28 }
 0x226   :  { %v6370_v35 = vpop.f32.mrf.mxu0 }
 0x227   :  { %v1997_v55 = vadd.f32 %v6370_v35, %v1897_v46  ;;  %v4218_v46 = vor.u32 %v4786_v43, %v4217_v41 }
 0x22e   :  { %v1998_v38 = vpop.f32.mrf.mxu0 }
 0x22f   :  { %v4790_v38 = vld [vmem:[%s6975_s8 + $0x6c] sm:$0xf] }
 0x230   :  { %v4250_v36 = vor.u32 %v4790_v38, %v4247_v39  ;;  %v4779_v38 = vld [vmem:[%s6975_s8 + $0x14] sm:$0xf]  ;;  %v4211_v39 = vld [vmem:[%s6975_s8 + $0x44] sm:$0xf0] }
 0x232   :  { %2540 = vmatpush.bf16.msrb.mxu1 %v4250_v36  ;;  %v4214_v36 = vor.u32 %v4779_v38, %v4211_v39 }
 0x236   :  { %2541 = vmatpush.bf16.msrb.mxu1 %v4198_v56  ;;  %v4394_v56 = vor.u32 %v4821_v52, %v4391_v53 }
 0x255   :  { %v2009_v59 = vpop.f32.mrf.mxu1 }
 0x256   :  { %v2010_v60 = vadd.f32 %v2009_v59, %v1997_v55  ;;  %v4390_v55 = vor.u32 %v4827_v51, %v4389_v50  ;;  %v4337_v59 = vld [vmem:[%s6975_s8 + $0xf8] sm:$0xf] }
 0x258   :  { %v2014_v61 = vmin.f32 %v2010_v60, 0.0  ;;  %vm2013_vm4 = vcmp.gt.f32.partialorder %v2010_v60, 0.0 }
 0x25a   :  { %v2015_v62 = vmul.f32 1.442695, %v2014_v61  ;;  %v4808_v61 = vld [vmem:[%s6975_s8 + $0xfc] sm:$0xf] }
 0x25c   :  { %4883 = vpow2.f32 %v2015_v62  ;;  %v4339_v62 = vld [vmem:[%s6975_s8 + $0x12c] sm:$0xf0] }
 0x25d   :  { %v2011_v63 = vpop.f32.mrf.mxu1 }
 0x25e   :  { %v4334_v63 = vor.u32 %v4807_v57, %v4331_v58 }
 0x262   :  { %v4884_v35 = vpop.eup %4883 }
 0x263   :  { %v4138_v4 = vadd.f32 -1.0, %v4884_v35  ;;  %v4342_v35 = vor.u32 %v4808_v61, %v4339_v62 }
 0x265   :  { %v2018_v10 = vsel %vm2013_vm4, %v2010_v60, %v4138_v4  ;;  %v4814_v60 = vld [vmem:[%s6975_s8 + $0x128] sm:$0xf0]  ;;  %v4801_v4 = vld [vmem:[%s6975_s8 + $0xc0] sm:$0xf0] }
 0x266   :  { %v6535_v12 = vpack.c.bf16 %v2018_v10, %v2018_v10  ;;  %v4338_v0 = vor.u32 %v4814_v60, %v4337_v59  ;;  %v4282_v10 = vor.u32 %v4794_v1, %v4279_v2 }
 0x268   :  { %4171 = vmatmul.msk.bf16.vlgmr.msra.gmra.mxu1 %vm2068_vm5, %v6535_v12  ;;  %4172 = vmatmul.msk.bf16.vlgmr.msrb.gmra.mxu2 %vm2068_vm5, %v6535_v12 }
 0x269   :  { %4399 = vmatmul.msk.bf16.vlgmr.msra.gmra.mxu0 %vm2068_vm5, %v6535_v12  ;;  %2590 = vmatpush.bf16.msra.mxu1 %v4370_v11  ;;  %v4286_v11 = vor.u32 %v4801_v4, %v4285_v3 }
 0x26a   :  { %2603 = vmatpush.bf16.msrb.mxu2 %v4374_v15  ;;  %2616 = vmatpush.bf16.msra.mxu0 %v4378_v16  ;;  %v4290_v15 = vor.u32 %v4795_v5, %v4287_v7  ;;  %v4781_v16 = vld [vmem:[%s6975_s8 + $0x24] sm:$0xf] }
 0x26b   :  { %v4230_v22 = vor.u32 %v4781_v16, %v4227_v17 }
 0x26d   :  { %2591 = vmatpush.bf16.msra.mxu1 %v4318_v23  ;;  %v4234_v23 = vor.u32 %v4788_v19, %v4233_v18  ;;  %v4365_v19 = vld [vmem:[%s6975_s8 + $0x148] sm:$0xf] }
 0x26e   :  { %2604 = vmatpush.bf16.msrb.mxu2 %v4322_v24  ;;  %2617 = vmatpush.bf16.msra.mxu0 %v4326_v25  ;;  %v4238_v24 = vor.u32 %v4782_v20, %v4235_v21  ;;  %v4824_v20 = vld [vmem:[%s6975_s8 + $0x178] sm:$0xf0] }
 0x26f   :  { %v4366_v21 = vor.u32 %v4824_v20, %v4365_v19 }
 0x271   :  { %2592 = vmatpush.bf16.msra.mxu1 %v4266_v31 }
 0x272   :  { %2605 = vmatpush.bf16.msrb.mxu2 %v4270_v32  ;;  %2618 = vmatpush.bf16.msra.mxu0 %v4274_v33 }
 0x275   :  { %2593 = vmatpush.bf16.msra.mxu1 %v4214_v36 }
 0x276   :  { %2606 = vmatpush.bf16.msrb.mxu2 %v4218_v46  ;;  %2619 = vmatpush.bf16.msra.mxu0 %v4222_v47 }
 0x278   :  { %4400 = vmatmul.msk.bf16.vlgmr.msrb.gmra.mxu1 %vm2068_vm5, %v6535_v12  ;;  %4401 = vmatmul.msk.bf16.vlgmr.msra.gmra.mxu2 %vm2068_vm5, %v6535_v12 }
 0x279   :  { %4402 = vmatmul.msk.bf16.vlgmr.msrb.gmra.mxu0 %vm2068_vm5, %v6535_v12  ;;  %2642 = vmatpush.bf16.msrb.mxu1 %v4386_v54 }
 0x27a   :  { %2655 = vmatpush.bf16.msra.mxu2 %v4390_v55  ;;  %2668 = vmatpush.bf16.msrb.mxu0 %v4394_v56 }
 0x27d   :  { %2643 = vmatpush.bf16.msrb.mxu1 %v4334_v63 }
 0x27e   :  { %2656 = vmatpush.bf16.msra.mxu2 %v4338_v0  ;;  %2669 = vmatpush.bf16.msrb.mxu0 %v4342_v35 }
 0x281   :  { %2644 = vmatpush.bf16.msrb.mxu1 %v4282_v10 }
 0x282   :  { %2657 = vmatpush.bf16.msra.mxu2 %v4286_v11  ;;  %2670 = vmatpush.bf16.msrb.mxu0 %v4290_v15  ;;  %v4939_v15 = vmov 1  }
 0x283   :  { %4875 = vset.pattern.permute.xlu0 %v4939_v15 }
 0x285   :  { %2645 = vmatpush.bf16.msrb.mxu1 %v4230_v22 }
 0x286   :  { %2658 = vmatpush.bf16.msra.mxu2 %v4234_v23  ;;  %2671 = vmatpush.bf16.msrb.mxu0 %v4238_v24  ;;  %v4313_v23 = vld [vmem:[%s6975_s8 + $0xe0] sm:$0xf]  ;;  %v4811_v24 = vld [vmem:[%s6975_s8 + $0x110] sm:$0xf0] }
 0x288   :  { %4404 = vmatmul.msk.bf16.vlgmr.msra.gmra.mxu1 %vm2068_vm5, %v6535_v12  ;;  %4405 = vmatmul.msk.bf16.vlgmr.msrb.gmra.mxu2 %vm2068_vm5, %v6535_v12 }
 0x289   :  { %4406 = vmatmul.msk.bf16.vlgmr.msra.gmra.mxu0 %vm2068_vm5, %v6535_v12 }
 0x298   :  { %4408 = vmatmul.msk.bf16.vlgmr.msrb.gmra.mxu1 %vm2068_vm5, %v6535_v12  ;;  %4409 = vmatmul.msk.bf16.vlgmr.msra.gmra.mxu2 %vm2068_vm5, %v6535_v12 }
 0x299   :  { %4410 = vmatmul.msk.bf16.vlgmr.msrb.gmra.mxu0 %vm2068_vm5, %v6535_v12 }
 0x2e5   :  { %v2081_v25 = vpop.f32.mrf.mxu1 }
 0x2e6   :  { %v2530_v27 = vpop.f32.mrf.mxu0 }
 0x2eb   :  { %v2094_v8 = vpop.f32.mrf.mxu2 }
 0x2ec   :  { %v2098_v28 = vpack.c.bf16 %v2094_v8, %v2081_v25  ;;  %v2133_v25 = vld [vmem:[%s6972_s5] sm:$0xf]  ;;  %v4261_v8 = vld [vmem:[%s6975_s8 + $0x78] sm:$0xf]  ;;  %s3229_s5 = sshll.u32 %s6979_s12, 4  ;;  %s3230_s5 = int_to_ptr.hbm [resolvable:$true] %s3229_s5 }
 0x2ed   :  { %v2083_v9 = vpop.f32.mrf.mxu1 }
 0x2ee   :  { %v2532_v29 = vpop.f32.mrf.mxu0  ;;  %2106 = vrot.lane.b32.xlu0 %v2098_v28, %s4933_s4  ;;  %2126 = vrot.lane.b32.xlu2 %v2098_v28, %s4934_s13  ;;  %v2130_v30 = vrot.slane %v2098_v28, 4  ;;  %2100 = vst.msk [vmem:[#allocation3] sm:$0xf] %vm2099_vm6, %v2098_v28 }
 0x2ef   :  { %2122 = vrot.lane.b32.xlu1 %v2098_v28, %s4935_s14  ;;  %v4209_v29 = vld [vmem:[%s6975_s8 + $0x10] sm:$0xf] }
 0x2f0   :  { %2132 = vst.msk [vmem:[#allocation3 + $0x20] sm:$0xf] %vm2099_vm6, %v2130_v30  ;;  %v4785_v30 = vld [vmem:[%s6975_s8 + $0x40] sm:$0xf0] }
 0x2f3   :  { %v2096_v31 = vpop.f32.mrf.mxu2 }
 0x2f4   :  { %v4381_v31 = vld [vmem:[%s6975_s8 + $0x158] sm:$0xf] }
 0x2f5   :  { %v2543_v32 = vpop.f32.mrf.mxu1 }
 0x2f6   :  { %v6692_v33 = vpack.c.bf16 %v2543_v32, %v2530_v27  ;;  %v2569_v38 = vpop.f32.mrf.mxu0  ;;  %2118 = vrot.lane.b32.xlu2 %v2098_v28, %s4936_s15  ;;  %2146 = vperm.xlu0 %4875, %v6364_v26   ;;  %v4314_v27 = vor.u32 %v4811_v24, %v4313_v23  ;;  %v4826_v32 = vld [vmem:[%s6975_s8 + $0x188] sm:$0xf0] }
 0x2f7   :  { %2114 = vrot.lane.b32.xlu1 %v2098_v28, %s4931_s28  ;;  %v2142_v39 = vld [vmem:[#allocation3 + $0x20] sm:$0xf] }
 0x2f8   :  { %2697 = vst.msk [vmem:[#allocation4] sm:$0xf] %vm1793_vm2, %v6692_v33  ;;  %v2703_v41 = vrot.slane %v6692_v33, 4  ;;  %v2166_v43 = vunpack.c.l.b16 %v2142_v39  ;;  %v4382_v39 = vor.u32 %v4826_v32, %v4381_v31 }
 0x2fa   :  { %2705 = vst.msk [vmem:[#allocation4 + $0x8] sm:$0xf] %vm1793_vm2, %v2703_v41  ;;  %v2171_v44 = vpack.c.b16 %v2166_v43, %v2166_v43  ;;  %v4329_v41 = vld [vmem:[%s6975_s8 + $0xf0] sm:$0xf]  ;;  %v4813_v43 = vld [vmem:[%s6975_s8 + $0x120] sm:$0xf0] }
 0x2fb   :  { %v2556_v45 = vpop.f32.mrf.mxu2 }
 0x2fc   :  { %v6700_v36 = vpack.c.bf16 %v2569_v38, %v2556_v45  ;;  %v2180_v46 = vsel %vm68_vm0, %v2171_v44, 0  ;;  %v4210_v38 = vor.u32 %v4785_v30, %v4209_v29  ;;  %v4330_v44 = vor.u32 %v4813_v43, %v4329_v41  ;;  %v4277_v45 = vld [vmem:[%s6975_s8 + $0x88] sm:$0xf] }
 0x2fd   :  { %2185 = vmatpush.bf16.msrb.mxu3 %v2180_v46  ;;  %v2545_v47 = vpop.f32.mrf.mxu1  ;;  %v4800_v46 = vld [vmem:[%s6975_s8 + $0xb8] sm:$0xf0]  ;;  %v4940_v43 = vmov 3  }
 0x2fe   :  { %2709 = vst.msk [vmem:[#allocation4 + $0x10] sm:$0xf] %vm1793_vm2, %v6700_v36  ;;  %v2715_v48 = vrot.slane %v6700_v36, 4  ;;  %v2571_v49 = vpop.f32.mrf.mxu0  ;;  %2102 = vrot.lane.b32.xlu2 %v2098_v28, %s4937_s3  ;;  %v4278_v47 = vor.u32 %v4800_v46, %v4277_v45  ;;  %4876 = vset.pattern.permute.xlu0 %v4940_v43 }
 0x2ff   :  { %2110 = vrot.lane.b32.xlu1 %v2098_v28, %s4938_s16  ;;  %v4798_v28 = vld [vmem:[%s6975_s8 + $0xa8] sm:$0xf0]  ;;  %v4787_v49 = vld [vmem:[%s6975_s8 + $0x50] sm:$0xf0] }
 0x300   :  { %2717 = vst.msk [vmem:[#allocation4 + $0x18] sm:$0xf] %vm1793_vm2, %v2715_v48  ;;  %v4262_v9 = vor.u32 %v4798_v28, %v4261_v8  ;;  %v4225_v48 = vld [vmem:[%s6975_s8 + $0x20] sm:$0xf]  ;;  %4877 = vset.pattern.permute.xlu1 %v4940_v43 }
 0x303   :  { %v2558_v50 = vpop.f32.mrf.mxu2 }
 0x304   :  { %v4397_v50 = vld [vmem:[%s6975_s8 + $0x168] sm:$0xf] }
 0x305   :  { %v6709_v51 = vpop.f32.mrf.mxu1 }
 0x306   :  { %v2621_v52 = vpop.f32.mrf.mxu0 }
 0x30b   :  { %v2608_v53 = vpop.f32.mrf.mxu2 }
 0x30c   :  { %v6711_v54 = vpack.c.bf16 %v2621_v52, %v2608_v53  ;;  %v4828_v52 = vld [vmem:[%s6975_s8 + $0x198] sm:$0xf0]  ;;  %v4226_v53 = vor.u32 %v4787_v49, %v4225_v48  ;;  %v4941_v48 = vmov 2  }
 0x30d   :  { %v2597_v55 = vpop.f32.mrf.mxu1  ;;  %4878 = vset.pattern.permute.xlu2 %v4941_v48 }
 0x30e   :  { %2733 = vst.msk [vmem:[#allocation4 + $0x30] sm:$0xf] %vm1793_vm2, %v6711_v54  ;;  %v2739_v56 = vrot.slane %v6711_v54, 4  ;;  %v2623_v57 = vpop.f32.mrf.mxu0  ;;  %v4398_v55 = vor.u32 %v4828_v52, %v4397_v50 }
 0x30f   :  { %v4815_v57 = vld [vmem:[%s6975_s8 + $0x130] sm:$0xf0] }
 0x310   :  { %2741 = vst.msk [vmem:[#allocation4 + $0x38] sm:$0xf] %vm1793_vm2, %v2739_v56  ;;  %v4345_v56 = vld [vmem:[%s6975_s8 + $0x100] sm:$0xf] }
 0x313   :  { %v2610_v58 = vpop.f32.mrf.mxu2 }
 0x314   :  { %v4346_v58 = vor.u32 %v4815_v57, %v4345_v56  ;;  %v4942_v56 = vmov 4  }
 0x315   :  { %v6717_v59 = vpop.f32.mrf.mxu1 }
 0x316   :  { %v2673_v60 = vpop.f32.mrf.mxu0 }
 0x31b   :  { %v2660_v61 = vpop.f32.mrf.mxu2 }
 0x31c   :  { %v6719_v62 = vpack.c.bf16 %v2673_v60, %v2660_v61  ;;  %v4293_v60 = vld [vmem:[%s6975_s8 + $0x98] sm:$0xf]  ;;  %v4802_v61 = vld [vmem:[%s6975_s8 + $0xc8] sm:$0xf0] }
 0x31d   :  { %v2649_v63 = vpop.f32.mrf.mxu1 }
 0x31e   :  { %2757 = vst.msk [vmem:[#allocation4 + $0x50] sm:$0xf] %vm1793_vm2, %v6719_v62  ;;  %v2763_v0 = vrot.slane %v6719_v62, 4  ;;  %v2675_v35 = vpop.f32.mrf.mxu0  ;;  %v4294_v63 = vor.u32 %v4802_v61, %v4293_v60 }
 0x31f   :  { %v4789_v35 = vld [vmem:[%s6975_s8 + $0x60] sm:$0xf0] }
 0x320   :  { %2765 = vst.msk [vmem:[#allocation4 + $0x58] sm:$0xf] %vm1793_vm2, %v2763_v0  ;;  %v4241_v0 = vld [vmem:[%s6975_s8 + $0x30] sm:$0xf] }
 0x323   :  { %v2662_v1 = vpop.f32.mrf.mxu2 }
 0x324   :  { %v4242_v1 = vor.u32 %v4789_v35, %v4241_v0 }
 0x348   :  { %v2127_v2 = vpop.permute.xlu2 %2126 }
 0x349   :  { %2129 = vst.msk [vmem:[#allocation3 + $0x1c] sm:$0xf] %vm2099_vm6, %v2127_v2  ;;  %v4843_v2 = vld [vmem:[%s6977_s10 + $0x4] sm:$0xf] }
 0x350   :  { %v2119_v3 = vpop.permute.xlu2 %2118 }
 0x351   :  { %2121 = vst.msk [vmem:[#allocation3 + $0x14] sm:$0xf] %vm2099_vm6, %v2119_v3  ;;  %v4475_v3 = vld [vmem:[%s6977_s10 + $0x8] sm:$0xf0] }
 0x358   :  { %v2103_v4 = vpop.permute.xlu2 %2102 }
 0x359   :  { %2105 = vst.msk [vmem:[#allocation3 + $0x4] sm:$0xf] %vm2099_vm6, %v2103_v4  ;;  %v4473_v4 = vld [vmem:[%s6977_s10] sm:$0xf] }
 0x360   :  { %v2107_v5 = vpop.permute.xlu0 %2106  ;;  %v4773_v22 = vld [vmem:[#allocation3] sm:$0xff] }
 0x361   :  { %2109 = vst.msk [vmem:[#allocation3 + $0x8] sm:$0xf] %vm2099_vm6, %v2107_v5  ;;  %v2123_v7 = vpop.permute.xlu1 %2122  ;;  %v4478_v5 = vor.u32 %v4843_v2, %v4475_v3 }
 0x362   :  { %2125 = vst.msk [vmem:[#allocation3 + $0x18] sm:$0xf] %vm2099_vm6, %v2123_v7  ;;  %v4844_v7 = vld [vmem:[%s6977_s10 + $0x4] sm:$0xf0] }
 0x369   :  { %v2115_v10 = vpop.permute.xlu1 %2114  ;;  %v4776_v11 = vld [vmem:[#allocation3 + $0x18] sm:$0xff] }
 0x36a   :  { %2117 = vst.msk [vmem:[#allocation3 + $0x10] sm:$0xf] %vm2099_vm6, %v2115_v10  ;;  %2186 = vmatpush.bf16.msrb.mxu3 %v4776_v11  ;;  %v4474_v10 = vor.u32 %v4844_v7, %v4473_v4 }
 0x36c   :  { %2963 = vmatpush.bf16.msra.mxu0 %v4474_v10 }
 0x371   :  { %v2111_v16 = vpop.permute.xlu1 %2110  ;;  %v4775_v17 = vld [vmem:[#allocation3 + $0x10] sm:$0xff] }
 0x372   :  { %2113 = vst.msk [vmem:[#allocation3 + $0xc] sm:$0xf] %vm2099_vm6, %v2111_v16  ;;  %2187 = vmatpush.bf16.msrb.mxu3 %v4775_v17 }
 0x379   :  { %v4774_v18 = vld [vmem:[#allocation3 + $0x8] sm:$0xff] }
 0x37a   :  { %2188 = vmatpush.bf16.msrb.mxu3 %v4774_v18 }
 0x37e   :  { %2189 = vmatpush.bf16.msrb.mxu3 %v4773_v22 }
 0x381   :  { %4189 = vmatmul.msk.bf16.vlgmr.msrb.gmra.mxu3 %vm1980_vm3, %v2133_v25 }
 0x382   :  { %2577 = vmatpush.bf16.msra.mxu3 %v4366_v21 }
 0x386   :  { %2578 = vmatpush.bf16.msra.mxu3 %v4314_v27 }
 0x38a   :  { %2579 = vmatpush.bf16.msra.mxu3 %v4262_v9 }
 0x38e   :  { %2580 = vmatpush.bf16.msra.mxu3 %v4210_v38 }
 0x391   :  { %4403 = vmatmul.msk.bf16.vlgmr.msra.gmra.mxu3 %vm2068_vm5, %v6535_v12 }
 0x392   :  { %2629 = vmatpush.bf16.msrb.mxu3 %v4382_v39 }
 0x396   :  { %2630 = vmatpush.bf16.msrb.mxu3 %v4330_v44 }
 0x39a   :  { %2631 = vmatpush.bf16.msrb.mxu3 %v4278_v47 }
 0x39e   :  { %2632 = vmatpush.bf16.msrb.mxu3 %v4226_v53 }
 0x3a1   :  { %4407 = vmatmul.msk.bf16.vlgmr.msrb.gmra.mxu3 %vm2068_vm5, %v6535_v12 }
 0x3a2   :  { %2681 = vmatpush.bf16.msra.mxu3 %v4398_v55 }
 0x3a6   :  { %2682 = vmatpush.bf16.msra.mxu3 %v4346_v58 }
 0x3aa   :  { %2683 = vmatpush.bf16.msra.mxu3 %v4294_v63 }
 0x3ae   :  { %2684 = vmatpush.bf16.msra.mxu3 %v4242_v1 }
 0x3b1   :  { %4411 = vmatmul.msk.bf16.vlgmr.msra.gmra.mxu3 %vm2068_vm5, %v6535_v12  ;;  %v2147_v12 = vpop.permute.xlu0 %2146 }
 0x3b2   :  { %2976 = vmatpush.bf16.msrb.mxu3 %v4478_v5 }
 0x404   :  { %v2191_v11 = vpop.f32.mrf.mxu3 }
 0x405   :  { %v2192_v15 = vadd.f32 %v2191_v11, %v2147_v12 }
 0x407   :  { %v2196_v16 = vmin.f32 %v2192_v15, 0.0  ;;  %vm2195_vm7 = vcmp.gt.f32.partialorder %v2192_v15, 0.0 }
 0x409   :  { %v2197_v17 = vmul.f32 1.442695, %v2196_v16 }
 0x40b   :  { %4885 = vpow2.f32 %v2197_v17 }
 0x40c   :  { %v2193_v18 = vpop.f32.mrf.mxu3 }
 0x40d   :  { %v4845_v18 = vld [vmem:[%s6976_s9] sm:$0xff] }
 0x411   :  { %v4886_v19 = vpop.eup %4885 }
 0x412   :  { %v4190_v20 = vadd.f32 -1.0, %v4886_v19 }
 0x414   :  { %v2200_v21 = vsel %vm2195_vm7, %v2192_v15, %v4190_v20  ;;  %v2582_v22 = vpop.f32.mrf.mxu3 }
 0x415   :  { %v2939_v23 = vpack.c.bf16 %v2200_v21, %v2200_v21  ;;  %v2692_v24 = vpack.c.bf16 %v6709_v51, %v2582_v22 }
 0x417   :  { %2721 = vst.msk [vmem:[#allocation4 + $0x20] sm:$0xf] %vm1793_vm2, %v2692_v24  ;;  %v2727_v25 = vrot.slane %v2692_v24, 4  ;;  %4479 = vmatmul.msk.bf16.vlgmr.msra.gmra.mxu0 %vm2952_vm8, %v2939_v23  ;;  %4480 = vmatmul.msk.bf16.vlgmr.msrb.gmra.mxu3 %vm2952_vm8, %v2939_v23 }
 0x419   :  { %2729 = vst.msk [vmem:[#allocation4 + $0x28] sm:$0xf] %vm1793_vm2, %v2727_v25 }
 0x41c   :  { %v2584_v27 = vpop.f32.mrf.mxu3 }
 0x424   :  { %v2634_v8 = vpop.f32.mrf.mxu3 }
 0x425   :  { %v2694_v28 = vpack.c.bf16 %v6717_v59, %v2634_v8 }
 0x427   :  { %2745 = vst.msk [vmem:[#allocation4 + $0x40] sm:$0xf] %vm1793_vm2, %v2694_v28  ;;  %v2751_v9 = vrot.slane %v2694_v28, 4 }
 0x429   :  { %2753 = vst.msk [vmem:[#allocation4 + $0x48] sm:$0xf] %vm1793_vm2, %v2751_v9  ;;  %v4829_v9 = vld [vmem:[%s6974_s7 + $0x4] sm:$0xf] }
 0x42c   :  { %v2636_v29 = vpop.f32.mrf.mxu3 }
 0x42d   :  { %v4416_v29 = vld [vmem:[%s6974_s7 + $0x8] sm:$0xf0] }
 0x434   :  { %v2686_v51 = vpop.f32.mrf.mxu3 }
 0x435   :  { %v2696_v30 = vpack.c.bf16 %v2686_v51, %v2686_v51  ;;  %v4414_v51 = vld [vmem:[%s6974_s7] sm:$0xf] }
 0x437   :  { %2769 = vst.msk [vmem:[#allocation4 + $0x60] sm:$0xf] %vm1793_vm2, %v2696_v30  ;;  %v4419_v30 = vor.u32 %v4829_v9, %v4416_v29 }
 0x43c   :  { %v2688_v31 = vpop.f32.mrf.mxu3 }
 0x43d   :  { %v4830_v31 = vld [vmem:[%s6974_s7 + $0x4] sm:$0xf0] }
 0x43e   :  { %v2796_v32 = vld [vmem:[#allocation4 + $0x60] sm:$0xf] }
 0x43f   :  { %v2867_v38 = vunpack.c.l.b16 %v2796_v32  ;;  %v4415_v32 = vor.u32 %v4830_v31, %v4414_v51 }
 0x441   :  { %v2880_v39 = vpack.c.b16 %v2867_v38, %v2867_v38  ;;  %v4506_v38 = vld [vmem:[%s6978_s11 + $0x8] sm:$0xf] }
 0x443   :  { %v2897_v41 = vsel %vm68_vm0, %v2880_v39, 0  ;;  %v4858_v39 = vld [vmem:[%s6978_s11 + $0x10] sm:$0xf0] }
 0x444   :  { %2916 = vmatpush.bf16.msrb.mxu2 %v2897_v41  ;;  %v4507_v41 = vor.u32 %v4858_v39, %v4506_v38 }
 0x494   :  { %v2965_v59 = vpop.f32.mrf.mxu0 }
 0x49a   :  { %v2978_v44 = vpop.f32.mrf.mxu3 }
 0x49b   :  { %v2982_v45 = vpack.c.bf16 %v2978_v44, %v2965_v59 }
 0x49c   :  { %v2967_v46 = vpop.f32.mrf.mxu0 }
 0x49d   :  { %2983 = vst.msk [vmem:[#allocation5] sm:$0xf] %vm2099_vm6, %v2982_v45  ;;  %2989 = vrot.lane.b32.xlu0 %v2982_v45, %s4933_s4  ;;  %3009 = vrot.lane.b32.xlu2 %v2982_v45, %s4934_s13  ;;  %v3013_v47 = vrot.slane %v2982_v45, 4 }
 0x49e   :  { %3005 = vrot.lane.b32.xlu1 %v2982_v45, %s4935_s14 }
 0x49f   :  { %3015 = vst.msk [vmem:[#allocation5 + $0x20] sm:$0xf] %vm2099_vm6, %v3013_v47 }
 0x4a2   :  { %v2980_v49 = vpop.f32.mrf.mxu3 }
 0x4a5   :  { %2735 = vrot.lane.b32.xlu0 %v6711_v54, %s4931_s28  ;;  %3001 = vrot.lane.b32.xlu2 %v2982_v45, %s4936_s15  ;;  %v114_v54 = vld [vmem:[%s6969_s2 + $0x8] sm:$0xff] }
 0x4a6   :  { %2997 = vrot.lane.b32.xlu1 %v2982_v45, %s4931_s28  ;;  %v3026_v50 = vld [vmem:[#allocation5 + $0x20] sm:$0xf] }
 0x4a7   :  { %v3061_v52 = vunpack.c.l.b16 %v3026_v50 }
 0x4a9   :  { %v3066_v53 = vpack.c.b16 %v3061_v52, %v3061_v52 }
 0x4ab   :  { %v3075_v55 = vsel %vm68_vm0, %v3066_v53, 0 }
 0x4ac   :  { %3080 = vmatpush.bf16.msrb.mxu0 %v3075_v55 }
 0x4ad   :  { %2711 = vrot.lane.b32.xlu0 %v6700_v36, %s4931_s28  ;;  %2985 = vrot.lane.b32.xlu2 %v2982_v45, %s4937_s3  ;;  %v156_v36 = vadd.f32 %v6111_v42, %v6100_v37 }
 0x4ae   :  { %2993 = vrot.lane.b32.xlu1 %v2982_v45, %s4938_s16 }
 0x4b5   :  { %3031 = vperm.xlu0 %4876, %v6364_v26   ;;  %2759 = vrot.lane.b32.xlu2 %v6719_v62, %s4931_s28 }
 0x4b6   :  { %2723 = vrot.lane.b32.xlu1 %v2692_v24, %s4931_s28 }
 0x4bd   :  { %4881 = vset.pattern.permute.xlu0 %v4942_v56  ;;  %2699 = vrot.lane.b32.xlu2 %v6692_v33, %s4931_s28 }
 0x4be   :  { %2747 = vrot.lane.b32.xlu1 %v2694_v28, %s4931_s28  ;;  %122 = vperm.xlu0 %4881, %v114_v54  }
 0x4c5   :  { %2801 = vperm.xlu2 %4878, %v6364_v26  }
 0x4c6   :  { %3036 = vperm.xlu1 %4877, %v114_v54   ;;  %4882 = vset.pattern.permute.xlu0 %v4940_v43 }
 0x4cd   :  { %4880 = vset.pattern.permute.xlu2 %v4942_v56  ;;  %v4857_v56 = vld [vmem:[%s6978_s11 + $0x50] sm:$0xf0] }
 0x4ce   :  { %4879 = vset.pattern.permute.xlu1 %v4941_v48  ;;  %117 = vperm.xlu2 %4880, %v6364_v26  }
 0x4cf   :  { %2806 = vperm.xlu1 %4879, %v114_v54   ;;  %v4535_v54 = vld [vmem:[%s6978_s11 + $0x48] sm:$0xf] }
 0x4f7   :  { %v3010_v62 = vpop.permute.xlu2 %3009  ;;  %157 = vadd.xlane.f32.xlu2 %v156_v36  ;;  %v4856_v36 = vld [vmem:[%s6978_s11 + $0x4c] sm:$0xf] }
 0x4f8   :  { %3012 = vst.msk [vmem:[#allocation5 + $0x1c] sm:$0xf] %vm2099_vm6, %v3010_v62 }
 0x4f9   :  { %154 = vadd.xlane.f32.xlu1 %v6055_v14 }
 0x4ff   :  { %v3002_v33 = vpop.permute.xlu2 %3001 }
 0x500   :  { %3004 = vst.msk [vmem:[#allocation5 + $0x14] sm:$0xf] %vm2099_vm6, %v3002_v33  ;;  %v4536_v33 = vor.u32 %v4857_v56, %v4535_v54 }
 0x502   :  { %3187 = vmatpush.bf16.msra.mxu3 %v4536_v33 }
 0x507   :  { %v2986_v57 = vpop.permute.xlu2 %2985 }
 0x508   :  { %2988 = vst.msk [vmem:[#allocation5 + $0x4] sm:$0xf] %vm2099_vm6, %v2986_v57  ;;  %v4537_v57 = vld [vmem:[%s6978_s11 + $0x54] sm:$0xf0] }
 0x50f   :  { %v2990_v58 = vpop.permute.xlu0 %2989  ;;  %v2760_v60 = vpop.permute.xlu2 %2759  ;;  %v4846_v17 = vld [vmem:[#allocation5] sm:$0xff] }
 0x510   :  { %2992 = vst.msk [vmem:[#allocation5 + $0x8] sm:$0xf] %vm2099_vm6, %v2990_v58  ;;  %v2766_v26 = vrot.slane %v2760_v60, 4  ;;  %v3006_v61 = vpop.permute.xlu1 %3005 }
 0x511   :  { %2762 = vst.msk [vmem:[#allocation4 + $0x54] sm:$0xf] %vm1793_vm2, %v2760_v60  ;;  %v4540_v60 = vor.u32 %v4856_v36, %v4537_v57 }
 0x512   :  { %2768 = vst.msk [vmem:[#allocation4 + $0x5c] sm:$0xf] %vm1793_vm2, %v2766_v26 }
 0x513   :  { %3008 = vst.msk [vmem:[#allocation5 + $0x18] sm:$0xf] %vm2099_vm6, %v3006_v61 }
 0x517   :  { %v2736_v37 = vpop.permute.xlu0 %2735  ;;  %v2700_v14 = vpop.permute.xlu2 %2699 }
 0x518   :  { %2738 = vst.msk [vmem:[#allocation4 + $0x34] sm:$0xf] %vm1793_vm2, %v2736_v37  ;;  %v2742_v42 = vrot.slane %v2736_v37, 4  ;;  %v2998_v63 = vpop.permute.xlu1 %2997  ;;  %v2706_v0 = vrot.slane %v2700_v14, 4  ;;  %v4841_v2 = vld [vmem:[#allocation4 + $0x50] sm:$0xff] }
 0x519   :  { %3000 = vst.msk [vmem:[#allocation5 + $0x10] sm:$0xf] %vm2099_vm6, %v2998_v63  ;;  %v4842_v35 = vld [vmem:[#allocation4 + $0x58] sm:$0xff]  ;;  %v4855_v63 = vld [vmem:[%s6978_s11 + $0x38] sm:$0xf0] }
 0x51a   :  { %2744 = vst.msk [vmem:[#allocation4 + $0x3c] sm:$0xf] %vm1793_vm2, %v2742_v42  ;;  %v4849_v1 = vld [vmem:[#allocation5 + $0x18] sm:$0xff]  ;;  %2917 = vmatpush.bf16.msrb.mxu2 %v4842_v35  ;;  %v4527_v42 = vld [vmem:[%s6978_s11 + $0x30] sm:$0xf] }
 0x51b   :  { %2702 = vst.msk [vmem:[#allocation4 + $0x4] sm:$0xf] %vm1793_vm2, %v2700_v14  ;;  %3081 = vmatpush.bf16.msrb.mxu0 %v4849_v1  ;;  %v4528_v1 = vor.u32 %v4855_v63, %v4527_v42 }
 0x51c   :  { %2708 = vst.msk [vmem:[#allocation4 + $0xc] sm:$0xf] %vm1793_vm2, %v2706_v0  ;;  %v4854_v0 = vld [vmem:[%s6978_s11 + $0x34] sm:$0xf] }
 0x51d   :  { %3188 = vmatpush.bf16.msra.mxu3 %v4528_v1 }
 0x51e   :  { %2918 = vmatpush.bf16.msrb.mxu2 %v4841_v2  ;;  %v4529_v2 = vld [vmem:[%s6978_s11 + $0x3c] sm:$0xf0] }
 0x51f   :  { %v2712_v3 = vpop.permute.xlu0 %2711  ;;  %v4837_v12 = vld [vmem:[#allocation4 + $0x30] sm:$0xff] }
 0x520   :  { %2714 = vst.msk [vmem:[#allocation4 + $0x14] sm:$0xf] %vm1793_vm2, %v2712_v3  ;;  %v2718_v4 = vrot.slane %v2712_v3, 4  ;;  %v2994_v5 = vpop.permute.xlu1 %2993  ;;  %v4848_v7 = vld [vmem:[#allocation5 + $0x10] sm:$0xff]  ;;  %v4519_v3 = vld [vmem:[%s6978_s11 + $0x18] sm:$0xf] }
 0x521   :  { %2996 = vst.msk [vmem:[#allocation5 + $0xc] sm:$0xf] %vm2099_vm6, %v2994_v5  ;;  %v4838_v10 = vld [vmem:[#allocation4 + $0x38] sm:$0xff]  ;;  %3082 = vmatpush.bf16.msrb.mxu0 %v4848_v7  ;;  %v4532_v5 = vor.u32 %v4854_v0, %v4529_v2  ;;  %v4852_v7 = vld [vmem:[%s6978_s11 + $0x1c] sm:$0xf] }
 0x522   :  { %2720 = vst.msk [vmem:[#allocation4 + $0x1c] sm:$0xf] %vm1793_vm2, %v2718_v4  ;;  %2899 = vmatpush.bf16.msra.mxu1 %v4838_v10  ;;  %v4831_v28 = vld [vmem:[#allocation4] sm:$0xff]  ;;  %v4853_v4 = vld [vmem:[%s6978_s11 + $0x20] sm:$0xf0] }
 0x523   :  { %v4832_v8 = vld [vmem:[#allocation4 + $0x8] sm:$0xff]  ;;  %v4521_v10 = vld [vmem:[%s6978_s11 + $0x24] sm:$0xf0] }
 0x526   :  { %2900 = vmatpush.bf16.msra.mxu1 %v4837_v12  ;;  %v4520_v12 = vor.u32 %v4853_v4, %v4519_v3 }
 0x527   :  { %v4833_v25 = vld [vmem:[#allocation4 + $0x10] sm:$0xff]  ;;  %v3032_v43 = vpop.permute.xlu0 %3031 }
 0x528   :  { %v2724_v11 = vpop.permute.xlu1 %2723  ;;  %v4847_v15 = vld [vmem:[#allocation5 + $0x8] sm:$0xff]  ;;  %3189 = vmatpush.bf16.msra.mxu3 %v4520_v12 }
 0x529   :  { %2726 = vst.msk [vmem:[#allocation4 + $0x24] sm:$0xf] %vm1793_vm2, %v2724_v11  ;;  %v2730_v16 = vrot.slane %v2724_v11, 4  ;;  %3083 = vmatpush.bf16.msrb.mxu0 %v4847_v15  ;;  %v4834_v23 = vld [vmem:[#allocation4 + $0x18] sm:$0xff]  ;;  %v4524_v11 = vor.u32 %v4852_v7, %v4521_v10 }
 0x52b   :  { %2732 = vst.msk [vmem:[#allocation4 + $0x2c] sm:$0xf] %vm1793_vm2, %v2730_v16  ;;  %v2802_v16 = vpop.permute.xlu2 %2801 }
 0x52d   :  { %3084 = vmatpush.bf16.msrb.mxu0 %v4846_v17  ;;  %v4511_v17 = vld [vmem:[%s6978_s11] sm:$0xf] }
 0x530   :  { %v2748_v19 = vpop.permute.xlu1 %2747  ;;  %4501 = vmatmul.msk.bf16.vlgmr.msrb.gmra.mxu0 %vm1980_vm3, %v4845_v18  ;;  %v4835_v22 = vld [vmem:[#allocation4 + $0x20] sm:$0xff] }
 0x531   :  { %2750 = vst.msk [vmem:[#allocation4 + $0x44] sm:$0xf] %vm1793_vm2, %v2748_v19  ;;  %v2754_v20 = vrot.slane %v2748_v19, 4  ;;  %v4851_v18 = vld [vmem:[%s6978_s11 + $0x8] sm:$0xf0] }
 0x532   :  { %v4836_v21 = vld [vmem:[#allocation4 + $0x28] sm:$0xff]  ;;  %v4850_v19 = vld [vmem:[%s6978_s11 + $0x4] sm:$0xf] }
 0x533   :  { %2756 = vst.msk [vmem:[#allocation4 + $0x4c] sm:$0xf] %vm1793_vm2, %v2754_v20  ;;  %2901 = vmatpush.bf16.msra.mxu1 %v4836_v21 }
 0x537   :  { %2902 = vmatpush.bf16.msra.mxu1 %v4835_v22  ;;  %v4512_v22 = vor.u32 %v4851_v18, %v4511_v17 }
 0x538   :  { %v4839_v27 = vld [vmem:[#allocation4 + $0x40] sm:$0xff]  ;;  %v3037_v47 = vpop.permute.xlu1 %3036 }
 0x539   :  { %3190 = vmatpush.bf16.msra.mxu3 %v4512_v22 }
 0x53a   :  { %v4840_v24 = vld [vmem:[#allocation4 + $0x48] sm:$0xff] }
 0x53b   :  { %2903 = vmatpush.bf16.msra.mxu1 %v4834_v23  ;;  %2919 = vmatpush.bf16.msrb.mxu2 %v4840_v24  ;;  %v4513_v23 = vld [vmem:[%s6978_s11 + $0xc] sm:$0xf0] }
 0x53f   :  { %2904 = vmatpush.bf16.msra.mxu1 %v4833_v25  ;;  %2920 = vmatpush.bf16.msrb.mxu2 %v4839_v27  ;;  %v4516_v25 = vor.u32 %v4850_v19, %v4513_v23 }
 0x541   :  { %v2807_v20 = vpop.permute.xlu1 %2806 }
 0x542   :  { %4468 = vmatmul.msk.bf16.vlgmr.msrb.gmra.mxu2 %vm1980_vm3, %v4419_v30 }
 0x543   :  { %2905 = vmatpush.bf16.msra.mxu1 %v4832_v8  ;;  %3130 = vmatpush.bf16.msra.mxu2 %v4507_v41 }
 0x547   :  { %2906 = vmatpush.bf16.msra.mxu1 %v4831_v28 }
 0x54a   :  { %2907 = vmatmul.bf16.vlgmr.msra.gmra.mxu1 %v4415_v32 }
 0x54b   :  { %3201 = vmatpush.bf16.msrb.mxu1 %v4540_v60 }
 0x54f   :  { %3202 = vmatpush.bf16.msrb.mxu1 %v4532_v5 }
 0x553   :  { %3203 = vmatpush.bf16.msrb.mxu1 %v4524_v11 }
 0x557   :  { %3204 = vmatpush.bf16.msrb.mxu1 %v4516_v25 }
 0x5ad   :  { %v3086_v59 = vpop.f32.mrf.mxu0 }
 0x5ae   :  { %v3087_v44 = vadd.f32 %v3086_v59, %v3032_v43 }
 0x5b0   :  { %v3093_v45 = vmin.f32 %v3087_v44, 0.0  ;;  %vm3091_vm9 = vcmp.gt.f32.partialorder %v3087_v44, 0.0 }
 0x5b2   :  { %v3095_v46 = vmul.f32 1.442695, %v3093_v45 }
 0x5b4   :  { %4887 = vpow2.f32 %v3095_v46 }
 0x5b5   :  { %v3088_v48 = vpop.f32.mrf.mxu0 }
 0x5b6   :  { %v3089_v49 = vadd.f32 %v3088_v48, %v3037_v47  ;;  %v118_v48 = vpop.permute.xlu2 %117 }
 0x5b7   :  { %v125_v54 = vadd.f32 %v118_v48, %v5927_v6 }
 0x5b8   :  { %v3094_v50 = vmin.f32 %v3089_v49, 0.0  ;;  %vm3092_vm10 = vcmp.gt.f32.partialorder %v3089_v49, 0.0 }
 0x5b9   :  { %v133_v33 = vmin.f32 %v125_v54, 0.0  ;;  %vm129_vm15 = vcmp.gt.f32.partialorder %v125_v54, 0.0 }
 0x5ba   :  { %v3097_v52 = vmul.f32 1.442695, %v3094_v50  ;;  %v4888_v53 = vpop.eup %4887  ;;  %v126_v50 = vadd.f32 %v118_v48, %v5935_v13 }
 0x5bb   :  { %v4502_v55 = vadd.f32 -1.0, %v4888_v53  ;;  %v137_v60 = vmul.f32 1.442695, %v133_v33 }
 0x5bc   :  { %4889 = vpow2.f32 %v3097_v52  ;;  %v134_v53 = vmin.f32 %v126_v50, 0.0  ;;  %vm130_vm14 = vcmp.gt.f32.partialorder %v126_v50, 0.0 }
 0x5bd   :  { %v3101_v26 = vsel %vm3091_vm9, %v3087_v44, %v4502_v55  ;;  %v123_v55 = vpop.permute.xlu0 %122 }
 0x5be   :  { %v139_v36 = vmul.f32 1.442695, %v134_v53  ;;  %v158_v12 = vpop.xlane.xlu2 %157 }
 0x5c2   :  { %v4890_v62 = vpop.eup %4889 }
 0x5c3   :  { %v4503_v58 = vadd.f32 -1.0, %v4890_v62  ;;  %v128_v62 = vadd.f32 %v123_v55, %v5990_v40 }
 0x5c5   :  { %v3102_v61 = vsel %vm3092_vm10, %v3089_v49, %v4503_v58  ;;  %v2922_v35 = vpop.f32.mrf.mxu2  ;;  %v4943_v49 = vmov 256.0   ;;  %v136_v58 = vmin.f32 %v128_v62, 0.0  ;;  %vm132_vm0 = vcmp.gt.f32.partialorder %v128_v62, 0.0 }
 0x5c6   :  { %v3113_v37 = vpack.c.bf16 %v3102_v61, %v3101_v26  ;;  %v127_v26 = vadd.f32 %v123_v55, %v5979_v34 }
 0x5c7   :  { %v2908_v14 = vpop.f32.mrf.mxu1 }
 0x5c8   :  { %4508 = vmatmul.msk.bf16.vlgmr.msra.gmra.mxu2 %vm2952_vm8, %v3113_v37  ;;  %v2909_v21 = vadd.f32 %v2908_v14, %v2802_v16  ;;  %v143_v37 = vmul.f32 1.442695, %v136_v58  ;;  %v135_v13 = vmin.f32 %v127_v26, 0.0  ;;  %vm131_vm1 = vcmp.gt.f32.partialorder %v127_v26, 0.0 }
 0x5ca   :  { %v2923_v8 = vadd.f32 %v2922_v35, %v2909_v21  ;;  %v141_v63 = vmul.f32 1.442695, %v135_v13  ;;  %v155_v35 = vpop.xlane.xlu1 %154 }
 0x5cc   :  { %v2929_v9 = vmin.f32 %v2923_v8, 0.0  ;;  %vm2927_vm11 = vcmp.gt.f32.partialorder %v2923_v8, 0.0 }
 0x5cd   :  { %v2924_v27 = vpop.f32.mrf.mxu2 }
 0x5ce   :  { %v2931_v51 = vmul.f32 1.442695, %v2929_v9 }
 0x5cf   :  { %v2910_v15 = vpop.f32.mrf.mxu1 }
 0x5d0   :  { %v2911_v24 = vadd.f32 %v2910_v15, %v2807_v20  ;;  %4891 = vpow2.f32 %v2931_v51 }
 0x5d2   :  { %v2925_v28 = vadd.f32 %v2924_v27, %v2911_v24 }
 0x5d4   :  { %v2930_v29 = vmin.f32 %v2925_v28, 0.0  ;;  %vm2928_vm12 = vcmp.gt.f32.partialorder %v2925_v28, 0.0 }
 0x5d6   :  { %v2933_v30 = vmul.f32 1.442695, %v2930_v29  ;;  %v4892_v31 = vpop.eup %4891 }
 0x5d7   :  { %v4469_v39 = vadd.f32 -1.0, %v4892_v31 }
 0x5d8   :  { %4893 = vpow2.f32 %v2933_v30 }
 0x5d9   :  { %v2937_v43 = vsel %vm2927_vm11, %v2923_v8, %v4469_v39  ;;  %4895 = vrcp.f32 %v4943_v49 }
 0x5da   :  { %4897 = vpow2.f32 %v139_v36 }
 0x5db   :  { %4899 = vpow2.f32 %v137_v60 }
 0x5dc   :  { %4901 = vpow2.f32 %v143_v37 }
 0x5dd   :  { %4903 = vpow2.f32 %v141_v63 }
 0x5de   :  { %v4894_v38 = vpop.eup %4893 }
 0x5df   :  { %v4470_v41 = vadd.f32 -1.0, %v4894_v38  ;;  %v4896_v52 = vpop.eup %4895 }
 0x5e0   :  { %v160_v56 = vmul.f32 256.0, %v4896_v52  ;;  %v4898_v14 = vpop.eup %4897  ;;  %vm164_vm13 = vweird.f32 %v4896_v52 }
 0x5e1   :  { %v2938_v59 = vsel %vm2928_vm12, %v2925_v28, %v4470_v41  ;;  %v3254_v6 = vadd.f32 -1.0, %v4898_v14  ;;  %v4900_v40 = vpop.eup %4899 }
 0x5e2   :  { %v161_v57 = vsub.f32 1.0, %v160_v56  ;;  %v4902_v3 = vpop.eup %4901  ;;  %v3253_v5 = vadd.f32 -1.0, %v4900_v40 }
 0x5e3   :  { %v150_v1 = vsel %vm130_vm14, %v126_v50, %v3254_v6  ;;  %v3256_v10 = vadd.f32 -1.0, %v4902_v3  ;;  %v4904_v16 = vpop.eup %4903 }
 0x5e4   :  { %v162_v61 = vmul.f32 %v4896_v52, %v161_v57  ;;  %v149_v11 = vsel %vm129_vm15, %v125_v54, %v3253_v5  ;;  %v3255_v23 = vadd.f32 -1.0, %v4904_v16 }
 0x5e5   :  { %v152_v18 = vsel %vm132_vm0, %v128_v62, %v3256_v10 }
 0x5e6   :  { %v163_v42 = vadd.f32 %v4896_v52, %v162_v61  ;;  %v151_v25 = vsel %vm131_vm1, %v127_v26, %v3255_v23 }
 0x5e8   :  { %v165_v0 = vsel %vm164_vm13, %v4896_v52, %v163_v42 }
 0x5e9   :  { %v166_v4 = vmul.f32 %v165_v0, %v155_v35  ;;  %v167_v20 = vmul.f32 %v165_v0, %v158_v12 }
 0x64b   :  { %v3132_v32 = vpop.f32.mrf.mxu2 }
 0x64c   :  { %v3137_v45 = vadd.f32 %v3132_v32, %v2937_v43 }
 0x653   :  { %v3134_v44 = vpop.f32.mrf.mxu2 }
 0x654   :  { %v3138_v46 = vadd.f32 %v3134_v44, %v2938_v59 }
 0x656   :  { %v3139_v47 = vpack.c.bf16 %v3138_v46, %v3137_v45 }
 0x658   :  { %4541 = vmatmul.msk.bf16.vlgmr.msra.gmra.mxu3 %vm2068_vm5, %v3139_v47  ;;  %4542 = vmatmul.msk.bf16.vlgmr.msrb.gmra.mxu1 %vm2068_vm5, %v3139_v47 }
 0x6d5   :  { %v3206_v2 = vpop.f32.mrf.mxu1 }
 0x6d6   :  { %v3212_v34 = vmul.f32 %v3206_v2, %v150_v1 }
 0x6d8   :  { %v3216_v7 = vadd.f32 %v3212_v34, %v166_v4 }
 0x6da   :  { %3220 = vst [vmem:[#allocation6 + $0x8] sm:$0xff] %v3216_v7 }
 0x6db   :  { %v3192_v15 = vpop.f32.mrf.mxu3 }
 0x6dc   :  { %v3211_v17 = vmul.f32 %v3192_v15, %v149_v11 }
 0x6dd   :  { %v3208_v19 = vpop.f32.mrf.mxu1 }
 0x6de   :  { %v3215_v21 = vadd.f32 %v3211_v17, %v166_v4  ;;  %v3214_v22 = vmul.f32 %v3208_v19, %v152_v18 }
 0x6e0   :  { %3219 = vst [vmem:[#allocation6] sm:$0xff] %v3215_v21  ;;  %v3218_v24 = vadd.f32 %v3214_v22, %v167_v20 }
 0x6e2   :  { %3222 = vst [vmem:[#allocation6 + $0x18] sm:$0xff] %v3218_v24 }
 0x6e3   :  { %v3194_v27 = vpop.f32.mrf.mxu3 }
 0x6e4   :  { %v3213_v8 = vmul.f32 %v3194_v27, %v151_v25 }
 0x6e6   :  { %v3217_v28 = vadd.f32 %v3213_v8, %v167_v20 }
 0x6e8   :  { %3221 = vst [vmem:[#allocation6 + $0x10] sm:$0xff] %v3217_v28 }
 0x6e9   :  { %3235 = dma.vmem_to_hbm [thread:$0]  %s3228_s19, 512, %s3230_s5, [#allocation7], %s4945_s1, %s4945_s1, %s4934_s13  }
 0x6ea   :  { %4929 = dma.done.wait [#allocation7], 512  }
 0x6eb   :  { %4930 = vsyncadd [#allocation7], 4294966784 }
 0x6ec   :  { %3240 = vsyncpa [#allocation7], 1 }

</bundles_post_ra>
